<compile_context>
chip_gen: v6e
topology: v6e:2x2x1
jax: 0.10.0
libtpu: 0.0.40
codegen_flags: <defaults>
</compile_context>

<pallas_src>
import functools
import math

import jax
import jax.numpy as jnp
from jax.experimental import pallas as pl
from jax.experimental.pallas import tpu as pltpu

F32 = jnp.float32


# --------------------------------------------------------------------------------------
# BlockSpec helpers
# --------------------------------------------------------------------------------------
def _vmem_full():
    # whole array resident in VMEM, no grid tiling
    return pl.BlockSpec(memory_space=pltpu.MemorySpace.VMEM)


def _branch_spec(shape):
    # whole-array block indexed by the leading (branch) grid axis; branch dim squeezed
    n = len(shape)
    return pl.BlockSpec((None,) + tuple(shape), lambda s: (s,) + (0,) * n)


def _shared_spec(shape):
    # whole-array block shared across the branch grid axis
    n = len(shape)
    return pl.BlockSpec(tuple(shape), lambda s: (0,) * n)


# --------------------------------------------------------------------------------------
# Pallas kernel 1: one bidirectional LSTM layer (both directions fused).
# PyTorch nn.LSTM semantics with gate columns pre-permuted to [i, f, o, g] so a single
# wide sigmoid + a single tanh cover all gates.  A real [i, f, g, o] checkpoint would
# need a one-time offline column permutation.
# --------------------------------------------------------------------------------------
def _bilstm_layer_kernel(x_ref, wih_ref, whh_ref, b_ref, y_ref,
                         gxf_scr, gxb_scr, yf_scr, yb_scr, h_scr, c_scr):
    # x_ref: (T, B, Din)   wih_ref: (2, Din, 4H)   whh_ref: (2, H, 4H)   b_ref: (2, 1, 4H)
    # y_ref: (T, B, 2H)    gx*_scr: (T, B, 4H)     y*_scr: (T, B, H)     h/c_scr: (2, B, H)
    T, B, Din = x_ref.shape
    H = whh_ref.shape[1]

    # ---- hoisted input projection: one big MXU matmul per direction, bias folded in ----
    x2 = x_ref[...].reshape(T * B, Din)
    wih = wih_ref[...]
    b = b_ref[...]
    gxf_scr[...] = (jnp.dot(x2, wih[0], preferred_element_type=F32)
                    + b[0]).reshape(T, B, 4 * H)
    gxb_scr[...] = (jnp.dot(x2, wih[1], preferred_element_type=F32)
                    + b[1]).reshape(T, B, 4 * H)

    h_scr[...] = jnp.zeros_like(h_scr)
    c_scr[...] = jnp.zeros_like(c_scr)
    whh = whh_ref[...]                                   # loop-invariant (2, H, 4H)

    @pl.loop(0, T)
    def _(t):
        rt = T - 1 - t
        h = h_scr[...]                                   # (2, B, H)
        c = c_scr[...]
        # fwd consumes x[t], bwd consumes x[T-1-t] (reverse scan), stacked on a dir axis
        gx = jnp.stack([gxf_scr[t], gxb_scr[rt]], axis=0)            # (2, B, 4H)
        gates = gx + jnp.einsum('dbh,dhg->dbg', h, whh,
                                preferred_element_type=F32)          # (2, B, 4H)
        sg = jax.nn.sigmoid(gates[..., 0:3 * H])
        i_g = sg[..., 0:H]
        f_g = sg[..., H:2 * H]
        o_g = sg[..., 2 * H:3 * H]
        g_g = jnp.tanh(gates[..., 3 * H:4 * H])
        c_new = f_g * c + i_g * g_g
        h_new = o_g * jnp.tanh(c_new)
        c_scr[...] = c_new
        h_scr[...] = h_new
        yf_scr[t] = h_new[0]                             # fwd hidden at original time t
        yb_scr[rt] = h_new[1]                            # bwd hidden at original time rt

    # single lane-concat + full store at the end (no per-step partial-lane stores)
    y_ref[...] = jnp.concatenate([yf_scr[...], yb_scr[...]], axis=-1)


def _bilstm_layer(x_tbd, wih, whh, b):
    T, B, _ = x_tbd.shape
    H = whh.shape[1]
    return pl.pallas_call(
        _bilstm_layer_kernel,
        out_shape=jax.ShapeDtypeStruct((T, B, 2 * H), F32),
        in_specs=[_vmem_full()] * 4,
        out_specs=_vmem_full(),
        scratch_shapes=[pltpu.VMEM((T, B, 4 * H), F32),
                        pltpu.VMEM((T, B, 4 * H), F32),
                        pltpu.VMEM((T, B, H), F32),
                        pltpu.VMEM((T, B, H), F32),
                        pltpu.VMEM((2, B, H), F32),
                        pltpu.VMEM((2, B, H), F32)],
    )(x_tbd, wih, whh, b)


def bilstm_2layer(x_tbd, layers):
    """2-layer bidirectional LSTM over a time-major (T, B, Din) sequence."""
    h = x_tbd
    for lp in layers:
        h = _bilstm_layer(h, lp["wih"], lp["whh"], lp["b"])
    return h                                             # (T, B, 2H)


# --------------------------------------------------------------------------------------
# Pallas kernel 2: SCD (two stacked SCD_cells) over the whole sequence, for both the
# stock-specific and market-induced branches via a grid=(2,) "parallel" axis.
# Row/column layout of the PyTorch code ((feat, B) matrices) is transposed to (B, feat).
# --------------------------------------------------------------------------------------
def _scd_kernel(x_ref, u11_1_ref, u21_1_ref, w01_1_ref, b1_ref,
                u11_2_ref, w01_2_ref, b2_ref, out_ref,
                sx_scr, h1_s, c1_s, z1_s, h2_s, c2_s, z2_s, *, alpha):
    T, B, D = x_ref.shape
    H1 = u11_1_ref.shape[0]
    H2 = u11_2_ref.shape[0]

    for ref in (h1_s, c1_s, z1_s, h2_s, c2_s, z2_s):
        ref[...] = jnp.zeros_like(ref)

    # hoisted cell-1 bottom-up projection (z_bottom == 1 for cell 1): x_t @ W01_1 + bias
    x2 = x_ref[...].reshape(T * B, D)
    sx_scr[...] = (jnp.dot(x2, w01_1_ref[...], preferred_element_type=F32)
                   + b1_ref[...]).reshape(T, B, 4 * H1 + 1)

    u11_1 = u11_1_ref[...]
    u21_1 = u21_1_ref[...]
    u11_2 = u11_2_ref[...]
    w01_2 = w01_2_ref[...]
    b2 = b2_ref[...]

    # TODO(synk): `hard_sigm` is not defined in the provided source; using the standard
    # HM-LSTM hard sigmoid clamp((alpha*x + 1)/2, 0, 1).
    def hard_sigm(v):
        return jnp.clip((alpha * v + 1.0) * 0.5, 0.0, 1.0)

    @pl.loop(0, T)
    def _(t):
        h1, c1, z1 = h1_s[...], c1_s[...], z1_s[...]
        h2, c2, z2 = h2_s[...], c2_s[...], z2_s[...]

        # ---- cell 1 (not last layer), z_bottom == 1 ----
        fs1 = ((1.0 - z1) * jnp.dot(h1, u11_1, preferred_element_type=F32)
               + z1 * jnp.dot(h2, u21_1, preferred_element_type=F32)
               + sx_scr[t])                                          # (B, 4H1+1)
        sg1 = jax.nn.sigmoid(fs1[:, 0:3 * H1])                       # [f, i, o] contiguous
        f1 = sg1[:, 0:H1]
        i1 = sg1[:, H1:2 * H1]
        o1 = sg1[:, 2 * H1:3 * H1]
        g1 = jnp.tanh(fs1[:, 3 * H1:4 * H1])
        z1n = hard_sigm(fs1[:, 4 * H1:4 * H1 + 1])
        a1 = i1 * g1
        c1n = z1 * a1 + (1.0 - z1) * (f1 * c1 + a1)                  # z_bottom == 1 branch
        h1n = o1 * jnp.tanh(c1n)                                     # simplified (zb == 1)

        # ---- cell 2 (last layer): h_bottom = h1n, z_bottom = z1n, no top-down ----
        fs2 = ((1.0 - z2) * jnp.dot(h2, u11_2, preferred_element_type=F32)
               + z1n * jnp.dot(h1n, w01_2, preferred_element_type=F32)
               + b2)                                                 # (B, 4H2+1)
        sg2 = jax.nn.sigmoid(fs2[:, 0:3 * H2])
        f2 = sg2[:, 0:H2]
        i2 = sg2[:, H2:2 * H2]
        o2 = sg2[:, 2 * H2:3 * H2]
        g2 = jnp.tanh(fs2[:, 3 * H2:4 * H2])
        z2n = hard_sigm(fs2[:, 4 * H2:4 * H2 + 1])
        a2 = i2 * g2
        c2n = z2 * a2 + (1.0 - z2) * ((1.0 - z1n) * c2 + z1n * (f2 * c2 + a2))
        t2 = jnp.tanh(c2n)
        h2n = o2 * t2 * (z2 + (1.0 - z2) * z1n) + (1.0 - z2) * (1.0 - z1n) * h2

        h1_s[...] = h1n; c1_s[...] = c1n; z1_s[...] = z1n
        h2_s[...] = h2n; c2_s[...] = c2n; z2_s[...] = z2n
        out_ref[t] = h2n * z2n                       # SCD output h_2 * z_2 (dropout = id)


def scd_forward_pair(x_pair_tbd, p, alpha):
    """x_pair_tbd: (2, T, B, D) — stock / market branches; params stacked on axis 0."""
    S, T, B, D = x_pair_tbd.shape
    H1 = p["u11_1"].shape[1]
    H2 = p["u11_2"].shape[1]
    G1 = 4 * H1 + 1
    G2 = 4 * H2 + 1
    kernel = functools.partial(_scd_kernel, alpha=alpha)
    return pl.pallas_call(
        kernel,
        out_shape=jax.ShapeDtypeStruct((S, T, B, H2), F32),
        grid=(S,),
        in_specs=[_branch_spec((T, B, D)),
                  _branch_spec((H1, G1)), _branch_spec((H2, G1)),
                  _branch_spec((D, G1)), _branch_spec((1, G1)),
                  _branch_spec((H2, G2)), _branch_spec((H1, G2)),
                  _branch_spec((1, G2))],
        out_specs=_branch_spec((T, B, H2)),
        scratch_shapes=[pltpu.VMEM((T, B, G1), F32),
                        pltpu.VMEM((B, H1), F32), pltpu.VMEM((B, H1), F32),
                        pltpu.VMEM((B, 1), F32),
                        pltpu.VMEM((B, H2), F32), pltpu.VMEM((B, H2), F32),
                        pltpu.VMEM((B, 1), F32)],
        compiler_params=pltpu.CompilerParams(dimension_semantics=("parallel",)),
    )(x_pair_tbd, p["u11_1"], p["u21_1"], p["w01_1"], p["b1"],
      p["u11_2"], p["w01_2"], p["b2"])


# --------------------------------------------------------------------------------------
# Pallas kernel 3: one fused rotary-transformer encoder layer (pre-norm RMSNorm, fused
# QKV projection, RoPE, attention, output projection, GELU FFN, both residuals), gridded
# over the two encoders (stock / market) with stacked parameters.
# TODO(synk): `TransformerRotatry` source was not provided; this is the same standard
# pre-norm RMSNorm + half-split RoPE + GELU-FFN reconstruction as the previous version
# (n_layers=2, last-timestep readout → output [Batch, 2*hid_dim]).
# --------------------------------------------------------------------------------------
def _rotary_layer_kernel(x_ref, sin_ref, cos_ref,
                         an_ref, wqkv_ref, bqkv_ref, wo_ref, bo_ref,
                         fn_ref, w1_ref, b1_ref, w2_ref, b2_ref,
                         out_ref, *, n_heads, eps, scale):
    B, T, D = x_ref.shape
    dh = D // n_heads
    half = dh // 2

    x = x_ref[...]                                       # (B, T, D) residual stream
    x2 = x.reshape(B * T, D)

    # ---- attention block ----
    ms = jnp.mean(x2 * x2, axis=-1, keepdims=True)
    xn = x2 * jax.lax.rsqrt(ms + eps) * an_ref[...]
    qkv = jnp.dot(xn, wqkv_ref[...], preferred_element_type=F32) + bqkv_ref[...]
    q = qkv[:, 0:D].reshape(B, T, D)
    k = qkv[:, D:2 * D].reshape(B, T, D)
    v = qkv[:, 2 * D:3 * D].reshape(B, T, D)
    sin = sin_ref[...][None]                             # (1, T, half)
    cos = cos_ref[...][None]

    def rope(u):                                         # u: (B, T, dh), half-split conv.
        u1 = u[..., 0:half]
        u2 = u[..., half:dh]
        return jnp.concatenate([u1 * cos - u2 * sin, u1 * sin + u2 * cos], axis=-1)

    heads = []
    for hidx in range(n_heads):                          # static unroll over heads
        sl = slice(hidx * dh, (hidx + 1) * dh)
        qh = rope(q[:, :, sl])
        kh = rope(k[:, :, sl])
        vh = v[:, :, sl]
        s = jnp.einsum('bqd,bkd->bqk', qh, kh, preferred_element_type=F32) * scale
        s = s - jnp.max(s, axis=-1, keepdims=True)
        p = jnp.exp(s)
        p = p * pl.reciprocal(jnp.sum(p, axis=-1, keepdims=True), approx=True)
        heads.append(jnp.einsum('bqk,bkd->bqd', p, vh, preferred_element_type=F32))
    attn = jnp.concatenate(heads, axis=-1).reshape(B * T, D)
    h_mid = x2 + jnp.dot(attn, wo_ref[...], preferred_element_type=F32) + bo_ref[...]

    # ---- FFN block ----
    ms2 = jnp.mean(h_mid * h_mid, axis=-1, keepdims=True)
    hn = h_mid * jax.lax.rsqrt(ms2 + eps) * fn_ref[...]
    g = jax.nn.gelu(jnp.dot(hn, w1_ref[...], preferred_element_type=F32) + b1_ref[...])
    y = h_mid + jnp.dot(g, w2_ref[...], preferred_element_type=F32) + b2_ref[...]
    out_ref[...] = y.reshape(B, T, D)


def _rope_tables(T, dh):
    half = dh // 2
    inv_freq = 1.0 / (10000.0 ** (jnp.arange(0, half, dtype=F32) / half))
    freqs = jnp.outer(jnp.arange(T, dtype=F32), inv_freq)       # (T, half)
    return jnp.sin(freqs), jnp.cos(freqs)


def transformer_rotary_pair(x_pair, p, n_heads, eps):
    """x_pair: (2, B, T, D) — stock / market encoder streams with stacked params."""
    S, B, T, D = x_pair.shape
    dh = D // n_heads
    sin, cos = _rope_tables(T, dh)
    scale = 1.0 / math.sqrt(dh)
    kernel = functools.partial(_rotary_layer_kernel, n_heads=n_heads, eps=eps, scale=scale)

    h = x_pair
    for lp in p["layers"]:
        h = pl.pallas_call(
            kernel,
            out_shape=jax.ShapeDtypeStruct((S, B, T, D), F32),
            grid=(S,),
            in_specs=[_branch_spec((B, T, D)),
                      _shared_spec((T, dh // 2)), _shared_spec((T, dh // 2)),
                      _branch_spec((1, D)), _branch_spec((D, 3 * D)),
                      _branch_spec((1, 3 * D)),
                      _branch_spec((D, D)), _branch_spec((1, D)),
                      _branch_spec((1, D)), _branch_spec((D, 4 * D)),
                      _branch_spec((1, 4 * D)),
                      _branch_spec((4 * D, D)), _branch_spec((1, D))],
            out_specs=_branch_spec((B, T, D)),
            compiler_params=pltpu.CompilerParams(dimension_semantics=("parallel",)),
        )(h, sin, cos,
          lp["attn_norm"], lp["wqkv"], lp["bqkv"], lp["wo"], lp["bo"],
          lp["ffn_norm"], lp["w1"], lp["b1"], lp["w2"], lp["b2"])

    # final RMSNorm + last-timestep readout (tiny, plain JAX)
    ms = jnp.mean(h * h, axis=-1, keepdims=True)
    h = h * jax.lax.rsqrt(ms + eps) * p["final_norm"][:, None, None, :]
    return h[:, :, -1, :]                                # (2, B, D)


# --------------------------------------------------------------------------------------
# parameter initialization (deterministic, synthetic — reset_parameters() in the source
# calls an undefined free function, so we simply use scaled normal init here).
# --------------------------------------------------------------------------------------
def init_params(key, ipt_dim, hid_dim, scale=0.1):
    keys = iter(jax.random.split(key, 256))

    def nrm(shape):
        return jax.random.normal(next(keys), shape, F32) * scale

    H = hid_dim
    D2 = 2 * hid_dim

    def lstm_params(in_dim):
        # gate columns pre-ordered [i, f, o, g]; combined bias = b_ih + b_hh.
        layers, d = [], in_dim
        for _ in range(2):                               # num_layers = 2
            layers.append(dict(wih=nrm((2, d, 4 * H)),   # stacked fwd/bwd W_ih^T
                               whh=nrm((2, H, 4 * H)),   # stacked fwd/bwd W_hh^T
                               b=nrm((2, 1, 4 * H))))
            d = 2 * H
        return layers

    def scd_pair_params():
        # stock / market SCD branches stacked on a leading axis of 2
        H1 = H2 = D2                                     # size_list = [2*hid, 2*hid]
        G1, G2 = 4 * H1 + 1, 4 * H2 + 1
        return dict(
            u11_1=nrm((2, H1, G1)), u21_1=nrm((2, H2, G1)),
            w01_1=nrm((2, D2, G1)), b1=nrm((2, 1, G1)),
            u11_2=nrm((2, H2, G2)), w01_2=nrm((2, H1, G2)), b2=nrm((2, 1, G2)))

    def transformer_pair_params():
        D = D2
        layers = []
        for _ in range(2):                               # n_layers = 2
            layers.append(dict(
                attn_norm=jnp.ones((2, 1, D), F32),
                ffn_norm=jnp.ones((2, 1, D), F32),
                wqkv=nrm((2, D, 3 * D)), bqkv=nrm((2, 1, 3 * D)),
                wo=nrm((2, D, D)), bo=nrm((2, 1, D)),
                w1=nrm((2, D, 4 * D)), b1=nrm((2, 1, 4 * D)),
                w2=nrm((2, 4 * D, D)), b2=nrm((2, 1, D))))
        return dict(layers=layers, final_norm=jnp.ones((2, D), F32))

    return dict(lstm=lstm_params(ipt_dim),
                lstm_sim=lstm_params(ipt_dim * 2),
                scd_pair=scd_pair_params(),
                tr_pair=transformer_pair_params())


# --------------------------------------------------------------------------------------
# full SequentialModule forward
# --------------------------------------------------------------------------------------
def sequential_module_forward(params, x, *, alpha, n_heads, norm_eps):
    B, T, F = x.shape
    xt = jnp.transpose(x, (1, 0, 2))                     # (T, B, F) time-major
    x_market = jnp.broadcast_to(jnp.mean(xt, axis=1, keepdims=True), (T, B, F))

    # ---- MRS (two 2-layer bidirectional LSTMs) ----
    opts = bilstm_2layer(xt, params["lstm"])                             # (T, B, 2H)
    opts_sim = bilstm_2layer(jnp.concatenate([xt, x_market], axis=-1),
                             params["lstm_sim"])                          # (T, B, 2H)
    stock_specific = opts - opts_sim
    market_induced = opts_sim

    # ---- SCD: both branches in one grid-parallel kernel ----
    scd_in = jnp.stack([stock_specific, market_induced], axis=0)          # (2, T, B, 2H)
    h_pair = scd_forward_pair(scd_in, params["scd_pair"], alpha)          # (2, T, B, 2H)

    # ---- rotary Transformer encoders: both branches, one fused kernel per layer ----
    h_pair = jnp.transpose(h_pair, (0, 2, 1, 3))                          # (2, B, T, 2H)
    v_pair = transformer_rotary_pair(h_pair, params["tr_pair"], n_heads, norm_eps)
    return v_pair[0], v_pair[1]                                           # each (B, 2H)


if __name__ == "__main__":
    B, T, ipt_dim, hid_dim = 2, 8, 4, 16
    alpha, nheads, norm_eps = 1.0, 4, 1e-4

    key = jax.random.PRNGKey(0)
    pkey, xkey = jax.random.split(key)
    params = init_params(pkey, ipt_dim, hid_dim)
    x = jax.random.normal(xkey, (B, T, ipt_dim), F32)

    fwd = jax.jit(functools.partial(sequential_module_forward,
                                    alpha=alpha, n_heads=nheads, norm_eps=norm_eps))
    v_ss, v_mi = fwd(params, x)
    jax.block_until_ready((v_ss, v_mi))

    assert v_ss.shape == (B, 2 * hid_dim) and v_mi.shape == (B, 2 * hid_dim)
    assert jnp.all(jnp.isfinite(v_ss)) and jnp.all(jnp.isfinite(v_mi))
    print("KERNEL_OK")
</pallas_src>

<mosaic_0001>
module attributes {stable_mosaic.version = 11 : i64} {
  func.func @_bilstm_layer_kernel(%arg0: memref<8x2x4xf32, #tpu.memory_space<vmem>>, %arg1: memref<2x4x64xf32, #tpu.memory_space<vmem>>, %arg2: memref<2x16x64xf32, #tpu.memory_space<vmem>>, %arg3: memref<2x1x64xf32, #tpu.memory_space<vmem>>, %arg4: memref<8x2x32xf32, #tpu.memory_space<vmem>>, %arg5: memref<8x2x64xf32, #tpu.memory_space<vmem>>, %arg6: memref<8x2x64xf32, #tpu.memory_space<vmem>>, %arg7: memref<8x2x16xf32, #tpu.memory_space<vmem>>, %arg8: memref<8x2x16xf32, #tpu.memory_space<vmem>>, %arg9: memref<2x2x16xf32, #tpu.memory_space<vmem>>, %arg10: memref<2x2x16xf32, #tpu.memory_space<vmem>>) attributes {dimension_semantics = [], scalar_prefetch = 0 : i64, scratch_operands = 6 : i64, tpu.core_type = #tpu.core_type<tc>} {
    %c0 = arith.constant 0 : index
    %c0_0 = arith.constant 0 : index
    %c0_1 = arith.constant 0 : index
    %0 = vector.load %arg0[%c0, %c0_0, %c0_1] : memref<8x2x4xf32, #tpu.memory_space<vmem>>, vector<8x2x4xf32>
    %1 = vector.shape_cast %0 : vector<8x2x4xf32> to vector<16x4xf32>
    %c0_2 = arith.constant 0 : index
    %c0_3 = arith.constant 0 : index
    %c0_4 = arith.constant 0 : index
    %2 = vector.load %arg1[%c0_2, %c0_3, %c0_4] : memref<2x4x64xf32, #tpu.memory_space<vmem>>, vector<2x4x64xf32>
    %c0_5 = arith.constant 0 : index
    %c0_6 = arith.constant 0 : index
    %c0_7 = arith.constant 0 : index
    %3 = vector.load %arg3[%c0_5, %c0_6, %c0_7] : memref<2x1x64xf32, #tpu.memory_space<vmem>>, vector<2x1x64xf32>
    %4 = vector.extract_strided_slice %2 {offsets = [0, 0, 0], sizes = [1, 4, 64], strides = [1, 1, 1]} : vector<2x4x64xf32> to vector<1x4x64xf32>
    %5 = vector.shape_cast %4 : vector<1x4x64xf32> to vector<4x64xf32>
    %cst = arith.constant dense<0.000000e+00> : vector<16x64xf32>
    %6 = tpu.matmul %1, %5, %cst {dimension_numbers = #tpu.dot_dimension_numbers<[1], [0], [0], [1], [0, 0, 1, 1], [], []>} : vector<16x4xf32>, vector<4x64xf32>, vector<16x64xf32> -> vector<16x64xf32>
    %7 = vector.extract_strided_slice %3 {offsets = [0, 0, 0], sizes = [1, 1, 64], strides = [1, 1, 1]} : vector<2x1x64xf32> to vector<1x1x64xf32>
    %8 = vector.shape_cast %7 : vector<1x1x64xf32> to vector<1x64xf32>
    %9 = vector.broadcast %8 : vector<1x64xf32> to vector<16x64xf32>
    %10 = arith.addf %6, %9 : vector<16x64xf32>
    %11 = vector.shape_cast %10 : vector<16x64xf32> to vector<8x2x64xf32>
    %c0_8 = arith.constant 0 : index
    %c0_9 = arith.constant 0 : index
    %c0_10 = arith.constant 0 : index
    %12 = vector.load %arg5[%c0_8, %c0_9, %c0_10] : memref<8x2x64xf32, #tpu.memory_space<vmem>>, vector<8x2x64xf32>
    tpu.vector_store %arg5[%c0_8, %c0_9, %c0_10], %11 {strides = array<i32>} : memref<8x2x64xf32, #tpu.memory_space<vmem>>, vector<8x2x64xf32>,
    %13 = vector.extract_strided_slice %2 {offsets = [1, 0, 0], sizes = [1, 4, 64], strides = [1, 1, 1]} : vector<2x4x64xf32> to vector<1x4x64xf32>
    %14 = vector.shape_cast %13 : vector<1x4x64xf32> to vector<4x64xf32>
    %cst_11 = arith.constant dense<0.000000e+00> : vector<16x64xf32>
    %15 = tpu.matmul %1, %14, %cst_11 {dimension_numbers = #tpu.dot_dimension_numbers<[1], [0], [0], [1], [0, 0, 1, 1], [], []>} : vector<16x4xf32>, vector<4x64xf32>, vector<16x64xf32> -> vector<16x64xf32>
    %16 = vector.extract_strided_slice %3 {offsets = [1, 0, 0], sizes = [1, 1, 64], strides = [1, 1, 1]} : vector<2x1x64xf32> to vector<1x1x64xf32>
    %17 = vector.shape_cast %16 : vector<1x1x64xf32> to vector<1x64xf32>
    %18 = vector.broadcast %17 : vector<1x64xf32> to vector<16x64xf32>
    %19 = arith.addf %15, %18 : vector<16x64xf32>
    %20 = vector.shape_cast %19 : vector<16x64xf32> to vector<8x2x64xf32>
    %c0_12 = arith.constant 0 : index
    %c0_13 = arith.constant 0 : index
    %c0_14 = arith.constant 0 : index
    %21 = vector.load %arg6[%c0_12, %c0_13, %c0_14] : memref<8x2x64xf32, #tpu.memory_space<vmem>>, vector<8x2x64xf32>
    tpu.vector_store %arg6[%c0_12, %c0_13, %c0_14], %20 {strides = array<i32>} : memref<8x2x64xf32, #tpu.memory_space<vmem>>, vector<8x2x64xf32>,
    %cst_15 = arith.constant 0.000000e+00 : f32
    %22 = vector.broadcast %cst_15 : f32 to vector<2x2x16xf32>
    %c0_16 = arith.constant 0 : index
    %c0_17 = arith.constant 0 : index
    %c0_18 = arith.constant 0 : index
    %23 = vector.load %arg9[%c0_16, %c0_17, %c0_18] : memref<2x2x16xf32, #tpu.memory_space<vmem>>, vector<2x2x16xf32>
    tpu.vector_store %arg9[%c0_16, %c0_17, %c0_18], %22 {strides = array<i32>} : memref<2x2x16xf32, #tpu.memory_space<vmem>>, vector<2x2x16xf32>,
    %cst_19 = arith.constant 0.000000e+00 : f32
    %24 = vector.broadcast %cst_19 : f32 to vector<2x2x16xf32>
    %c0_20 = arith.constant 0 : index
    %c0_21 = arith.constant 0 : index
    %c0_22 = arith.constant 0 : index
    %25 = vector.load %arg10[%c0_20, %c0_21, %c0_22] : memref<2x2x16xf32, #tpu.memory_space<vmem>>, vector<2x2x16xf32>
    tpu.vector_store %arg10[%c0_20, %c0_21, %c0_22], %24 {strides = array<i32>} : memref<2x2x16xf32, #tpu.memory_space<vmem>>, vector<2x2x16xf32>,
    %c0_23 = arith.constant 0 : index
    %c0_24 = arith.constant 0 : index
    %c0_25 = arith.constant 0 : index
    %26 = vector.load %arg2[%c0_23, %c0_24, %c0_25] : memref<2x16x64xf32, #tpu.memory_space<vmem>>, vector<2x16x64xf32>
    %c0_i32 = arith.constant 0 : i32
    %c8_i32 = arith.constant 8 : i32
    %27 = arith.addi %c0_i32, %c8_i32 : i32
    %c1_i32 = arith.constant 1 : i32
    scf.for %arg11 = %c0_i32 to %27 step %c1_i32  : i32 {
      %c1_i32_36 = arith.constant 1 : i32
      %32 = arith.muli %arg11, %c1_i32_36 : i32
      %c0_i32_37 = arith.constant 0 : i32
      %33 = arith.addi %c0_i32_37, %32 : i32
      %c7_i32 = arith.constant 7 : i32
      %34 = arith.subi %c7_i32, %33 : i32
      %c0_38 = arith.constant 0 : index
      %c0_39 = arith.constant 0 : index
      %c0_40 = arith.constant 0 : index
      %35 = vector.load %arg9[%c0_38, %c0_39, %c0_40] : memref<2x2x16xf32, #tpu.memory_space<vmem>>, vector<2x2x16xf32>
      %c0_41 = arith.constant 0 : index
      %c0_42 = arith.constant 0 : index
      %c0_43 = arith.constant 0 : index
      %36 = vector.load %arg10[%c0_41, %c0_42, %c0_43] : memref<2x2x16xf32, #tpu.memory_space<vmem>>, vector<2x2x16xf32>
      %37 = arith.index_cast %33 : i32 to index
      %c0_44 = arith.constant 0 : index
      %c0_45 = arith.constant 0 : index
      %38 = vector.load %arg5[%37, %c0_44, %c0_45] : memref<8x2x64xf32, #tpu.memory_space<vmem>>, vector<1x2x64xf32>
      %39 = vector.shape_cast %38 : vector<1x2x64xf32> to vector<2x64xf32>
      %40 = arith.index_cast %34 : i32 to index
      %c0_46 = arith.constant 0 : index
      %c0_47 = arith.constant 0 : index
      %41 = vector.load %arg6[%40, %c0_46, %c0_47] : memref<8x2x64xf32, #tpu.memory_space<vmem>>, vector<1x2x64xf32>
      %42 = vector.shape_cast %41 : vector<1x2x64xf32> to vector<2x64xf32>
      %43 = vector.shape_cast %39 : vector<2x64xf32> to vector<1x2x64xf32>
      %44 = vector.shape_cast %42 : vector<2x64xf32> to vector<1x2x64xf32>
      %45 = tpu.concatenate %43, %44 in 0 : vector<1x2x64xf32>, vector<1x2x64xf32> -> vector<2x2x64xf32>
      "tpu.trace_start"() <{level = 10 : i32, message = "dbh,dhg->dbg"}> : () -> ()
      %cst_48 = arith.constant dense<0.000000e+00> : vector<2x2x64xf32>
      %46 = tpu.matmul %35, %26, %cst_48 {dimension_numbers = #tpu.dot_dimension_numbers<[2], [1], [1], [2], [0, 0, 0, 1, 1, 2], [0], [0]>} : vector<2x2x16xf32>, vector<2x16x64xf32>, vector<2x2x64xf32> -> vector<2x2x64xf32>
      "tpu.trace_stop"() : () -> ()
      %47 = arith.addf %45, %46 : vector<2x2x64xf32>
      %48 = vector.extract_strided_slice %47 {offsets = [0, 0, 0], sizes = [2, 2, 48], strides = [1, 1, 1]} : vector<2x2x64xf32> to vector<2x2x48xf32>
      %49 = arith.negf %48 : vector<2x2x48xf32>
      %50 = math.exp %49 : vector<2x2x48xf32>
      %cst_49 = arith.constant 1.000000e+00 : f32
      %51 = vector.broadcast %cst_49 : f32 to vector<2x2x48xf32>
      %52 = arith.addf %51, %50 : vector<2x2x48xf32>
      %53 = arith.divf %51, %52 : vector<2x2x48xf32>
      %54 = vector.extract_strided_slice %53 {offsets = [0, 0, 0], sizes = [2, 2, 16], strides = [1, 1, 1]} : vector<2x2x48xf32> to vector<2x2x16xf32>
      %55 = vector.extract_strided_slice %53 {offsets = [0, 0, 16], sizes = [2, 2, 16], strides = [1, 1, 1]} : vector<2x2x48xf32> to vector<2x2x16xf32>
      %56 = vector.extract_strided_slice %53 {offsets = [0, 0, 32], sizes = [2, 2, 16], strides = [1, 1, 1]} : vector<2x2x48xf32> to vector<2x2x16xf32>
      %57 = vector.extract_strided_slice %47 {offsets = [0, 0, 48], sizes = [2, 2, 16], strides = [1, 1, 1]} : vector<2x2x64xf32> to vector<2x2x16xf32>
      %58 = math.tanh %57 : vector<2x2x16xf32>
      %59 = arith.mulf %55, %36 : vector<2x2x16xf32>
      %60 = arith.mulf %54, %58 : vector<2x2x16xf32>
      %61 = arith.addf %59, %60 : vector<2x2x16xf32>
      %62 = math.tanh %61 : vector<2x2x16xf32>
      %63 = arith.mulf %56, %62 : vector<2x2x16xf32>
      %c0_50 = arith.constant 0 : index
      %c0_51 = arith.constant 0 : index
      %c0_52 = arith.constant 0 : index
      %64 = vector.load %arg10[%c0_50, %c0_51, %c0_52] : memref<2x2x16xf32, #tpu.memory_space<vmem>>, vector<2x2x16xf32>
      tpu.vector_store %arg10[%c0_50, %c0_51, %c0_52], %61 {strides = array<i32>} : memref<2x2x16xf32, #tpu.memory_space<vmem>>, vector<2x2x16xf32>,
      %c0_53 = arith.constant 0 : index
      %c0_54 = arith.constant 0 : index
      %c0_55 = arith.constant 0 : index
      %65 = vector.load %arg9[%c0_53, %c0_54, %c0_55] : memref<2x2x16xf32, #tpu.memory_space<vmem>>, vector<2x2x16xf32>
      tpu.vector_store %arg9[%c0_53, %c0_54, %c0_55], %63 {strides = array<i32>} : memref<2x2x16xf32, #tpu.memory_space<vmem>>, vector<2x2x16xf32>,
      %66 = vector.extract_strided_slice %63 {offsets = [0, 0, 0], sizes = [1, 2, 16], strides = [1, 1, 1]} : vector<2x2x16xf32> to vector<1x2x16xf32>
      %67 = vector.shape_cast %66 : vector<1x2x16xf32> to vector<2x16xf32>
      %68 = arith.index_cast %33 : i32 to index
      %c0_56 = arith.constant 0 : index
      %c0_57 = arith.constant 0 : index
      %69 = vector.load %arg7[%68, %c0_56, %c0_57] : memref<8x2x16xf32, #tpu.memory_space<vmem>>, vector<1x2x16xf32>
      %70 = vector.shape_cast %69 : vector<1x2x16xf32> to vector<2x16xf32>
      %71 = vector.shape_cast %67 : vector<2x16xf32> to vector<1x2x16xf32>
      tpu.vector_store %arg7[%68, %c0_56, %c0_57], %71 {strides = array<i32>} : memref<8x2x16xf32, #tpu.memory_space<vmem>>, vector<1x2x16xf32>,
      %72 = vector.extract_strided_slice %63 {offsets = [1, 0, 0], sizes = [1, 2, 16], strides = [1, 1, 1]} : vector<2x2x16xf32> to vector<1x2x16xf32>
      %73 = vector.shape_cast %72 : vector<1x2x16xf32> to vector<2x16xf32>
      %74 = arith.index_cast %34 : i32 to index
      %c0_58 = arith.constant 0 : index
      %c0_59 = arith.constant 0 : index
      %75 = vector.load %arg8[%74, %c0_58, %c0_59] : memref<8x2x16xf32, #tpu.memory_space<vmem>>, vector<1x2x16xf32>
      %76 = vector.shape_cast %75 : vector<1x2x16xf32> to vector<2x16xf32>
      %77 = vector.shape_cast %73 : vector<2x16xf32> to vector<1x2x16xf32>
      tpu.vector_store %arg8[%74, %c0_58, %c0_59], %77 {strides = array<i32>} : memref<8x2x16xf32, #tpu.memory_space<vmem>>, vector<1x2x16xf32>,
    }
    %c8_i32_26 = arith.constant 8 : i32
    %c0_27 = arith.constant 0 : index
    %c0_28 = arith.constant 0 : index
    %c0_29 = arith.constant 0 : index
    %28 = vector.load %arg7[%c0_27, %c0_28, %c0_29] : memref<8x2x16xf32, #tpu.memory_space<vmem>>, vector<8x2x16xf32>
    %c0_30 = arith.constant 0 : index
    %c0_31 = arith.constant 0 : index
    %c0_32 = arith.constant 0 : index
    %29 = vector.load %arg8[%c0_30, %c0_31, %c0_32] : memref<8x2x16xf32, #tpu.memory_space<vmem>>, vector<8x2x16xf32>
    %30 = tpu.concatenate %28, %29 in 2 : vector<8x2x16xf32>, vector<8x2x16xf32> -> vector<8x2x32xf32>
    %c0_33 = arith.constant 0 : index
    %c0_34 = arith.constant 0 : index
    %c0_35 = arith.constant 0 : index
    %31 = vector.load %arg4[%c0_33, %c0_34, %c0_35] : memref<8x2x32xf32, #tpu.memory_space<vmem>>, vector<8x2x32xf32>
    tpu.vector_store %arg4[%c0_33, %c0_34, %c0_35], %30 {strides = array<i32>} : memref<8x2x32xf32, #tpu.memory_space<vmem>>, vector<8x2x32xf32>,
    return
  }
}

module attributes {stable_mosaic.version = 11 : i64} {
  func.func @_bilstm_layer_kernel(%arg0: memref<8x2x32xf32, #tpu.memory_space<vmem>>, %arg1: memref<2x32x64xf32, #tpu.memory_space<vmem>>, %arg2: memref<2x16x64xf32, #tpu.memory_space<vmem>>, %arg3: memref<2x1x64xf32, #tpu.memory_space<vmem>>, %arg4: memref<8x2x32xf32, #tpu.memory_space<vmem>>, %arg5: memref<8x2x64xf32, #tpu.memory_space<vmem>>, %arg6: memref<8x2x64xf32, #tpu.memory_space<vmem>>, %arg7: memref<8x2x16xf32, #tpu.memory_space<vmem>>, %arg8: memref<8x2x16xf32, #tpu.memory_space<vmem>>, %arg9: memref<2x2x16xf32, #tpu.memory_space<vmem>>, %arg10: memref<2x2x16xf32, #tpu.memory_space<vmem>>) attributes {dimension_semantics = [], scalar_prefetch = 0 : i64, scratch_operands = 6 : i64, tpu.core_type = #tpu.core_type<tc>} {
    %c0 = arith.constant 0 : index
    %c0_0 = arith.constant 0 : index
    %c0_1 = arith.constant 0 : index
    %0 = vector.load %arg0[%c0, %c0_0, %c0_1] : memref<8x2x32xf32, #tpu.memory_space<vmem>>, vector<8x2x32xf32>
    %1 = vector.shape_cast %0 : vector<8x2x32xf32> to vector<16x32xf32>
    %c0_2 = arith.constant 0 : index
    %c0_3 = arith.constant 0 : index
    %c0_4 = arith.constant 0 : index
    %2 = vector.load %arg1[%c0_2, %c0_3, %c0_4] : memref<2x32x64xf32, #tpu.memory_space<vmem>>, vector<2x32x64xf32>
    %c0_5 = arith.constant 0 : index
    %c0_6 = arith.constant 0 : index
    %c0_7 = arith.constant 0 : index
    %3 = vector.load %arg3[%c0_5, %c0_6, %c0_7] : memref<2x1x64xf32, #tpu.memory_space<vmem>>, vector<2x1x64xf32>
    %4 = vector.extract_strided_slice %2 {offsets = [0, 0, 0], sizes = [1, 32, 64], strides = [1, 1, 1]} : vector<2x32x64xf32> to vector<1x32x64xf32>
    %5 = vector.shape_cast %4 : vector<1x32x64xf32> to vector<32x64xf32>
    %cst = arith.constant dense<0.000000e+00> : vector<16x64xf32>
    %6 = tpu.matmul %1, %5, %cst {dimension_numbers = #tpu.dot_dimension_numbers<[1], [0], [0], [1], [0, 0, 1, 1], [], []>} : vector<16x32xf32>, vector<32x64xf32>, vector<16x64xf32> -> vector<16x64xf32>
    %7 = vector.extract_strided_slice %3 {offsets = [0, 0, 0], sizes = [1, 1, 64], strides = [1, 1, 1]} : vector<2x1x64xf32> to vector<1x1x64xf32>
    %8 = vector.shape_cast %7 : vector<1x1x64xf32> to vector<1x64xf32>
    %9 = vector.broadcast %8 : vector<1x64xf32> to vector<16x64xf32>
    %10 = arith.addf %6, %9 : vector<16x64xf32>
    %11 = vector.shape_cast %10 : vector<16x64xf32> to vector<8x2x64xf32>
    %c0_8 = arith.constant 0 : index
    %c0_9 = arith.constant 0 : index
    %c0_10 = arith.constant 0 : index
    %12 = vector.load %arg5[%c0_8, %c0_9, %c0_10] : memref<8x2x64xf32, #tpu.memory_space<vmem>>, vector<8x2x64xf32>
    tpu.vector_store %arg5[%c0_8, %c0_9, %c0_10], %11 {strides = array<i32>} : memref<8x2x64xf32, #tpu.memory_space<vmem>>, vector<8x2x64xf32>,
    %13 = vector.extract_strided_slice %2 {offsets = [1, 0, 0], sizes = [1, 32, 64], strides = [1, 1, 1]} : vector<2x32x64xf32> to vector<1x32x64xf32>
    %14 = vector.shape_cast %13 : vector<1x32x64xf32> to vector<32x64xf32>
    %cst_11 = arith.constant dense<0.000000e+00> : vector<16x64xf32>
    %15 = tpu.matmul %1, %14, %cst_11 {dimension_numbers = #tpu.dot_dimension_numbers<[1], [0], [0], [1], [0, 0, 1, 1], [], []>} : vector<16x32xf32>, vector<32x64xf32>, vector<16x64xf32> -> vector<16x64xf32>
    %16 = vector.extract_strided_slice %3 {offsets = [1, 0, 0], sizes = [1, 1, 64], strides = [1, 1, 1]} : vector<2x1x64xf32> to vector<1x1x64xf32>
    %17 = vector.shape_cast %16 : vector<1x1x64xf32> to vector<1x64xf32>
    %18 = vector.broadcast %17 : vector<1x64xf32> to vector<16x64xf32>
    %19 = arith.addf %15, %18 : vector<16x64xf32>
    %20 = vector.shape_cast %19 : vector<16x64xf32> to vector<8x2x64xf32>
    %c0_12 = arith.constant 0 : index
    %c0_13 = arith.constant 0 : index
    %c0_14 = arith.constant 0 : index
    %21 = vector.load %arg6[%c0_12, %c0_13, %c0_14] : memref<8x2x64xf32, #tpu.memory_space<vmem>>, vector<8x2x64xf32>
    tpu.vector_store %arg6[%c0_12, %c0_13, %c0_14], %20 {strides = array<i32>} : memref<8x2x64xf32, #tpu.memory_space<vmem>>, vector<8x2x64xf32>,
    %cst_15 = arith.constant 0.000000e+00 : f32
    %22 = vector.broadcast %cst_15 : f32 to vector<2x2x16xf32>
    %c0_16 = arith.constant 0 : index
    %c0_17 = arith.constant 0 : index
    %c0_18 = arith.constant 0 : index
    %23 = vector.load %arg9[%c0_16, %c0_17, %c0_18] : memref<2x2x16xf32, #tpu.memory_space<vmem>>, vector<2x2x16xf32>
    tpu.vector_store %arg9[%c0_16, %c0_17, %c0_18], %22 {strides = array<i32>} : memref<2x2x16xf32, #tpu.memory_space<vmem>>, vector<2x2x16xf32>,
    %cst_19 = arith.constant 0.000000e+00 : f32
    %24 = vector.broadcast %cst_19 : f32 to vector<2x2x16xf32>
    %c0_20 = arith.constant 0 : index
    %c0_21 = arith.constant 0 : index
    %c0_22 = arith.constant 0 : index
    %25 = vector.load %arg10[%c0_20, %c0_21, %c0_22] : memref<2x2x16xf32, #tpu.memory_space<vmem>>, vector<2x2x16xf32>
    tpu.vector_store %arg10[%c0_20, %c0_21, %c0_22], %24 {strides = array<i32>} : memref<2x2x16xf32, #tpu.memory_space<vmem>>, vector<2x2x16xf32>,
    %c0_23 = arith.constant 0 : index
    %c0_24 = arith.constant 0 : index
    %c0_25 = arith.constant 0 : index
    %26 = vector.load %arg2[%c0_23, %c0_24, %c0_25] : memref<2x16x64xf32, #tpu.memory_space<vmem>>, vector<2x16x64xf32>
    %c0_i32 = arith.constant 0 : i32
    %c8_i32 = arith.constant 8 : i32
    %27 = arith.addi %c0_i32, %c8_i32 : i32
    %c1_i32 = arith.constant 1 : i32
    scf.for %arg11 = %c0_i32 to %27 step %c1_i32  : i32 {
      %c1_i32_36 = arith.constant 1 : i32
      %32 = arith.muli %arg11, %c1_i32_36 : i32
      %c0_i32_37 = arith.constant 0 : i32
      %33 = arith.addi %c0_i32_37, %32 : i32
      %c7_i32 = arith.constant 7 : i32
      %34 = arith.subi %c7_i32, %33 : i32
      %c0_38 = arith.constant 0 : index
      %c0_39 = arith.constant 0 : index
      %c0_40 = arith.constant 0 : index
      %35 = vector.load %arg9[%c0_38, %c0_39, %c0_40] : memref<2x2x16xf32, #tpu.memory_space<vmem>>, vector<2x2x16xf32>
      %c0_41 = arith.constant 0 : index
      %c0_42 = arith.constant 0 : index
      %c0_43 = arith.constant 0 : index
      %36 = vector.load %arg10[%c0_41, %c0_42, %c0_43] : memref<2x2x16xf32, #tpu.memory_space<vmem>>, vector<2x2x16xf32>
      %37 = arith.index_cast %33 : i32 to index
      %c0_44 = arith.constant 0 : index
      %c0_45 = arith.constant 0 : index
      %38 = vector.load %arg5[%37, %c0_44, %c0_45] : memref<8x2x64xf32, #tpu.memory_space<vmem>>, vector<1x2x64xf32>
      %39 = vector.shape_cast %38 : vector<1x2x64xf32> to vector<2x64xf32>
      %40 = arith.index_cast %34 : i32 to index
      %c0_46 = arith.constant 0 : index
      %c0_47 = arith.constant 0 : index
      %41 = vector.load %arg6[%40, %c0_46, %c0_47] : memref<8x2x64xf32, #tpu.memory_space<vmem>>, vector<1x2x64xf32>
      %42 = vector.shape_cast %41 : vector<1x2x64xf32> to vector<2x64xf32>
      %43 = vector.shape_cast %39 : vector<2x64xf32> to vector<1x2x64xf32>
      %44 = vector.shape_cast %42 : vector<2x64xf32> to vector<1x2x64xf32>
      %45 = tpu.concatenate %43, %44 in 0 : vector<1x2x64xf32>, vector<1x2x64xf32> -> vector<2x2x64xf32>
      "tpu.trace_start"() <{level = 10 : i32, message = "dbh,dhg->dbg"}> : () -> ()
      %cst_48 = arith.constant dense<0.000000e+00> : vector<2x2x64xf32>
      %46 = tpu.matmul %35, %26, %cst_48 {dimension_numbers = #tpu.dot_dimension_numbers<[2], [1], [1], [2], [0, 0, 0, 1, 1, 2], [0], [0]>} : vector<2x2x16xf32>, vector<2x16x64xf32>, vector<2x2x64xf32> -> vector<2x2x64xf32>
      "tpu.trace_stop"() : () -> ()
      %47 = arith.addf %45, %46 : vector<2x2x64xf32>
      %48 = vector.extract_strided_slice %47 {offsets = [0, 0, 0], sizes = [2, 2, 48], strides = [1, 1, 1]} : vector<2x2x64xf32> to vector<2x2x48xf32>
      %49 = arith.negf %48 : vector<2x2x48xf32>
      %50 = math.exp %49 : vector<2x2x48xf32>
      %cst_49 = arith.constant 1.000000e+00 : f32
      %51 = vector.broadcast %cst_49 : f32 to vector<2x2x48xf32>
      %52 = arith.addf %51, %50 : vector<2x2x48xf32>
      %53 = arith.divf %51, %52 : vector<2x2x48xf32>
      %54 = vector.extract_strided_slice %53 {offsets = [0, 0, 0], sizes = [2, 2, 16], strides = [1, 1, 1]} : vector<2x2x48xf32> to vector<2x2x16xf32>
      %55 = vector.extract_strided_slice %53 {offsets = [0, 0, 16], sizes = [2, 2, 16], strides = [1, 1, 1]} : vector<2x2x48xf32> to vector<2x2x16xf32>
      %56 = vector.extract_strided_slice %53 {offsets = [0, 0, 32], sizes = [2, 2, 16], strides = [1, 1, 1]} : vector<2x2x48xf32> to vector<2x2x16xf32>
      %57 = vector.extract_strided_slice %47 {offsets = [0, 0, 48], sizes = [2, 2, 16], strides = [1, 1, 1]} : vector<2x2x64xf32> to vector<2x2x16xf32>
      %58 = math.tanh %57 : vector<2x2x16xf32>
      %59 = arith.mulf %55, %36 : vector<2x2x16xf32>
      %60 = arith.mulf %54, %58 : vector<2x2x16xf32>
      %61 = arith.addf %59, %60 : vector<2x2x16xf32>
      %62 = math.tanh %61 : vector<2x2x16xf32>
      %63 = arith.mulf %56, %62 : vector<2x2x16xf32>
      %c0_50 = arith.constant 0 : index
      %c0_51 = arith.constant 0 : index
      %c0_52 = arith.constant 0 : index
      %64 = vector.load %arg10[%c0_50, %c0_51, %c0_52] : memref<2x2x16xf32, #tpu.memory_space<vmem>>, vector<2x2x16xf32>
      tpu.vector_store %arg10[%c0_50, %c0_51, %c0_52], %61 {strides = array<i32>} : memref<2x2x16xf32, #tpu.memory_space<vmem>>, vector<2x2x16xf32>,
      %c0_53 = arith.constant 0 : index
      %c0_54 = arith.constant 0 : index
      %c0_55 = arith.constant 0 : index
      %65 = vector.load %arg9[%c0_53, %c0_54, %c0_55] : memref<2x2x16xf32, #tpu.memory_space<vmem>>, vector<2x2x16xf32>
      tpu.vector_store %arg9[%c0_53, %c0_54, %c0_55], %63 {strides = array<i32>} : memref<2x2x16xf32, #tpu.memory_space<vmem>>, vector<2x2x16xf32>,
      %66 = vector.extract_strided_slice %63 {offsets = [0, 0, 0], sizes = [1, 2, 16], strides = [1, 1, 1]} : vector<2x2x16xf32> to vector<1x2x16xf32>
      %67 = vector.shape_cast %66 : vector<1x2x16xf32> to vector<2x16xf32>
      %68 = arith.index_cast %33 : i32 to index
      %c0_56 = arith.constant 0 : index
      %c0_57 = arith.constant 0 : index
      %69 = vector.load %arg7[%68, %c0_56, %c0_57] : memref<8x2x16xf32, #tpu.memory_space<vmem>>, vector<1x2x16xf32>
      %70 = vector.shape_cast %69 : vector<1x2x16xf32> to vector<2x16xf32>
      %71 = vector.shape_cast %67 : vector<2x16xf32> to vector<1x2x16xf32>
      tpu.vector_store %arg7[%68, %c0_56, %c0_57], %71 {strides = array<i32>} : memref<8x2x16xf32, #tpu.memory_space<vmem>>, vector<1x2x16xf32>,
      %72 = vector.extract_strided_slice %63 {offsets = [1, 0, 0], sizes = [1, 2, 16], strides = [1, 1, 1]} : vector<2x2x16xf32> to vector<1x2x16xf32>
      %73 = vector.shape_cast %72 : vector<1x2x16xf32> to vector<2x16xf32>
      %74 = arith.index_cast %34 : i32 to index
      %c0_58 = arith.constant 0 : index
      %c0_59 = arith.constant 0 : index
      %75 = vector.load %arg8[%74, %c0_58, %c0_59] : memref<8x2x16xf32, #tpu.memory_space<vmem>>, vector<1x2x16xf32>
      %76 = vector.shape_cast %75 : vector<1x2x16xf32> to vector<2x16xf32>
      %77 = vector.shape_cast %73 : vector<2x16xf32> to vector<1x2x16xf32>
      tpu.vector_store %arg8[%74, %c0_58, %c0_59], %77 {strides = array<i32>} : memref<8x2x16xf32, #tpu.memory_space<vmem>>, vector<1x2x16xf32>,
    }
    %c8_i32_26 = arith.constant 8 : i32
    %c0_27 = arith.constant 0 : index
    %c0_28 = arith.constant 0 : index
    %c0_29 = arith.constant 0 : index
    %28 = vector.load %arg7[%c0_27, %c0_28, %c0_29] : memref<8x2x16xf32, #tpu.memory_space<vmem>>, vector<8x2x16xf32>
    %c0_30 = arith.constant 0 : index
    %c0_31 = arith.constant 0 : index
    %c0_32 = arith.constant 0 : index
    %29 = vector.load %arg8[%c0_30, %c0_31, %c0_32] : memref<8x2x16xf32, #tpu.memory_space<vmem>>, vector<8x2x16xf32>
    %30 = tpu.concatenate %28, %29 in 2 : vector<8x2x16xf32>, vector<8x2x16xf32> -> vector<8x2x32xf32>
    %c0_33 = arith.constant 0 : index
    %c0_34 = arith.constant 0 : index
    %c0_35 = arith.constant 0 : index
    %31 = vector.load %arg4[%c0_33, %c0_34, %c0_35] : memref<8x2x32xf32, #tpu.memory_space<vmem>>, vector<8x2x32xf32>
    tpu.vector_store %arg4[%c0_33, %c0_34, %c0_35], %30 {strides = array<i32>} : memref<8x2x32xf32, #tpu.memory_space<vmem>>, vector<8x2x32xf32>,
    return
  }
}

module attributes {stable_mosaic.version = 11 : i64} {
  func.func @_bilstm_layer_kernel(%arg0: memref<8x2x8xf32, #tpu.memory_space<vmem>>, %arg1: memref<2x8x64xf32, #tpu.memory_space<vmem>>, %arg2: memref<2x16x64xf32, #tpu.memory_space<vmem>>, %arg3: memref<2x1x64xf32, #tpu.memory_space<vmem>>, %arg4: memref<8x2x32xf32, #tpu.memory_space<vmem>>, %arg5: memref<8x2x64xf32, #tpu.memory_space<vmem>>, %arg6: memref<8x2x64xf32, #tpu.memory_space<vmem>>, %arg7: memref<8x2x16xf32, #tpu.memory_space<vmem>>, %arg8: memref<8x2x16xf32, #tpu.memory_space<vmem>>, %arg9: memref<2x2x16xf32, #tpu.memory_space<vmem>>, %arg10: memref<2x2x16xf32, #tpu.memory_space<vmem>>) attributes {dimension_semantics = [], scalar_prefetch = 0 : i64, scratch_operands = 6 : i64, tpu.core_type = #tpu.core_type<tc>} {
    %c0 = arith.constant 0 : index
    %c0_0 = arith.constant 0 : index
    %c0_1 = arith.constant 0 : index
    %0 = vector.load %arg0[%c0, %c0_0, %c0_1] : memref<8x2x8xf32, #tpu.memory_space<vmem>>, vector<8x2x8xf32>
    %1 = vector.shape_cast %0 : vector<8x2x8xf32> to vector<16x8xf32>
    %c0_2 = arith.constant 0 : index
    %c0_3 = arith.constant 0 : index
    %c0_4 = arith.constant 0 : index
    %2 = vector.load %arg1[%c0_2, %c0_3, %c0_4] : memref<2x8x64xf32, #tpu.memory_space<vmem>>, vector<2x8x64xf32>
    %c0_5 = arith.constant 0 : index
    %c0_6 = arith.constant 0 : index
    %c0_7 = arith.constant 0 : index
    %3 = vector.load %arg3[%c0_5, %c0_6, %c0_7] : memref<2x1x64xf32, #tpu.memory_space<vmem>>, vector<2x1x64xf32>
    %4 = vector.extract_strided_slice %2 {offsets = [0, 0, 0], sizes = [1, 8, 64], strides = [1, 1, 1]} : vector<2x8x64xf32> to vector<1x8x64xf32>
    %5 = vector.shape_cast %4 : vector<1x8x64xf32> to vector<8x64xf32>
    %cst = arith.constant dense<0.000000e+00> : vector<16x64xf32>
    %6 = tpu.matmul %1, %5, %cst {dimension_numbers = #tpu.dot_dimension_numbers<[1], [0], [0], [1], [0, 0, 1, 1], [], []>} : vector<16x8xf32>, vector<8x64xf32>, vector<16x64xf32> -> vector<16x64xf32>
    %7 = vector.extract_strided_slice %3 {offsets = [0, 0, 0], sizes = [1, 1, 64], strides = [1, 1, 1]} : vector<2x1x64xf32> to vector<1x1x64xf32>
    %8 = vector.shape_cast %7 : vector<1x1x64xf32> to vector<1x64xf32>
    %9 = vector.broadcast %8 : vector<1x64xf32> to vector<16x64xf32>
    %10 = arith.addf %6, %9 : vector<16x64xf32>
    %11 = vector.shape_cast %10 : vector<16x64xf32> to vector<8x2x64xf32>
    %c0_8 = arith.constant 0 : index
    %c0_9 = arith.constant 0 : index
    %c0_10 = arith.constant 0 : index
    %12 = vector.load %arg5[%c0_8, %c0_9, %c0_10] : memref<8x2x64xf32, #tpu.memory_space<vmem>>, vector<8x2x64xf32>
    tpu.vector_store %arg5[%c0_8, %c0_9, %c0_10], %11 {strides = array<i32>} : memref<8x2x64xf32, #tpu.memory_space<vmem>>, vector<8x2x64xf32>,
    %13 = vector.extract_strided_slice %2 {offsets = [1, 0, 0], sizes = [1, 8, 64], strides = [1, 1, 1]} : vector<2x8x64xf32> to vector<1x8x64xf32>
    %14 = vector.shape_cast %13 : vector<1x8x64xf32> to vector<8x64xf32>
    %cst_11 = arith.constant dense<0.000000e+00> : vector<16x64xf32>
    %15 = tpu.matmul %1, %14, %cst_11 {dimension_numbers = #tpu.dot_dimension_numbers<[1], [0], [0], [1], [0, 0, 1, 1], [], []>} : vector<16x8xf32>, vector<8x64xf32>, vector<16x64xf32> -> vector<16x64xf32>
    %16 = vector.extract_strided_slice %3 {offsets = [1, 0, 0], sizes = [1, 1, 64], strides = [1, 1, 1]} : vector<2x1x64xf32> to vector<1x1x64xf32>
    %17 = vector.shape_cast %16 : vector<1x1x64xf32> to vector<1x64xf32>
    %18 = vector.broadcast %17 : vector<1x64xf32> to vector<16x64xf32>
    %19 = arith.addf %15, %18 : vector<16x64xf32>
    %20 = vector.shape_cast %19 : vector<16x64xf32> to vector<8x2x64xf32>
    %c0_12 = arith.constant 0 : index
    %c0_13 = arith.constant 0 : index
    %c0_14 = arith.constant 0 : index
    %21 = vector.load %arg6[%c0_12, %c0_13, %c0_14] : memref<8x2x64xf32, #tpu.memory_space<vmem>>, vector<8x2x64xf32>
    tpu.vector_store %arg6[%c0_12, %c0_13, %c0_14], %20 {strides = array<i32>} : memref<8x2x64xf32, #tpu.memory_space<vmem>>, vector<8x2x64xf32>,
    %cst_15 = arith.constant 0.000000e+00 : f32
    %22 = vector.broadcast %cst_15 : f32 to vector<2x2x16xf32>
    %c0_16 = arith.constant 0 : index
    %c0_17 = arith.constant 0 : index
    %c0_18 = arith.constant 0 : index
    %23 = vector.load %arg9[%c0_16, %c0_17, %c0_18] : memref<2x2x16xf32, #tpu.memory_space<vmem>>, vector<2x2x16xf32>
    tpu.vector_store %arg9[%c0_16, %c0_17, %c0_18], %22 {strides = array<i32>} : memref<2x2x16xf32, #tpu.memory_space<vmem>>, vector<2x2x16xf32>,
    %cst_19 = arith.constant 0.000000e+00 : f32
    %24 = vector.broadcast %cst_19 : f32 to vector<2x2x16xf32>
    %c0_20 = arith.constant 0 : index
    %c0_21 = arith.constant 0 : index
    %c0_22 = arith.constant 0 : index
    %25 = vector.load %arg10[%c0_20, %c0_21, %c0_22] : memref<2x2x16xf32, #tpu.memory_space<vmem>>, vector<2x2x16xf32>
    tpu.vector_store %arg10[%c0_20, %c0_21, %c0_22], %24 {strides = array<i32>} : memref<2x2x16xf32, #tpu.memory_space<vmem>>, vector<2x2x16xf32>,
    %c0_23 = arith.constant 0 : index
    %c0_24 = arith.constant 0 : index
    %c0_25 = arith.constant 0 : index
    %26 = vector.load %arg2[%c0_23, %c0_24, %c0_25] : memref<2x16x64xf32, #tpu.memory_space<vmem>>, vector<2x16x64xf32>
    %c0_i32 = arith.constant 0 : i32
    %c8_i32 = arith.constant 8 : i32
    %27 = arith.addi %c0_i32, %c8_i32 : i32
    %c1_i32 = arith.constant 1 : i32
    scf.for %arg11 = %c0_i32 to %27 step %c1_i32  : i32 {
      %c1_i32_36 = arith.constant 1 : i32
      %32 = arith.muli %arg11, %c1_i32_36 : i32
      %c0_i32_37 = arith.constant 0 : i32
      %33 = arith.addi %c0_i32_37, %32 : i32
      %c7_i32 = arith.constant 7 : i32
      %34 = arith.subi %c7_i32, %33 : i32
      %c0_38 = arith.constant 0 : index
      %c0_39 = arith.constant 0 : index
      %c0_40 = arith.constant 0 : index
      %35 = vector.load %arg9[%c0_38, %c0_39, %c0_40] : memref<2x2x16xf32, #tpu.memory_space<vmem>>, vector<2x2x16xf32>
      %c0_41 = arith.constant 0 : index
      %c0_42 = arith.constant 0 : index
      %c0_43 = arith.constant 0 : index
      %36 = vector.load %arg10[%c0_41, %c0_42, %c0_43] : memref<2x2x16xf32, #tpu.memory_space<vmem>>, vector<2x2x16xf32>
      %37 = arith.index_cast %33 : i32 to index
      %c0_44 = arith.constant 0 : index
      %c0_45 = arith.constant 0 : index
      %38 = vector.load %arg5[%37, %c0_44, %c0_45] : memref<8x2x64xf32, #tpu.memory_space<vmem>>, vector<1x2x64xf32>
      %39 = vector.shape_cast %38 : vector<1x2x64xf32> to vector<2x64xf32>
      %40 = arith.index_cast %34 : i32 to index
      %c0_46 = arith.constant 0 : index
      %c0_47 = arith.constant 0 : index
      %41 = vector.load %arg6[%40, %c0_46, %c0_47] : memref<8x2x64xf32, #tpu.memory_space<vmem>>, vector<1x2x64xf32>
      %42 = vector.shape_cast %41 : vector<1x2x64xf32> to vector<2x64xf32>
      %43 = vector.shape_cast %39 : vector<2x64xf32> to vector<1x2x64xf32>
      %44 = vector.shape_cast %42 : vector<2x64xf32> to vector<1x2x64xf32>
      %45 = tpu.concatenate %43, %44 in 0 : vector<1x2x64xf32>, vector<1x2x64xf32> -> vector<2x2x64xf32>
      "tpu.trace_start"() <{level = 10 : i32, message = "dbh,dhg->dbg"}> : () -> ()
      %cst_48 = arith.constant dense<0.000000e+00> : vector<2x2x64xf32>
      %46 = tpu.matmul %35, %26, %cst_48 {dimension_numbers = #tpu.dot_dimension_numbers<[2], [1], [1], [2], [0, 0, 0, 1, 1, 2], [0], [0]>} : vector<2x2x16xf32>, vector<2x16x64xf32>, vector<2x2x64xf32> -> vector<2x2x64xf32>
      "tpu.trace_stop"() : () -> ()
      %47 = arith.addf %45, %46 : vector<2x2x64xf32>
      %48 = vector.extract_strided_slice %47 {offsets = [0, 0, 0], sizes = [2, 2, 48], strides = [1, 1, 1]} : vector<2x2x64xf32> to vector<2x2x48xf32>
      %49 = arith.negf %48 : vector<2x2x48xf32>
      %50 = math.exp %49 : vector<2x2x48xf32>
      %cst_49 = arith.constant 1.000000e+00 : f32
      %51 = vector.broadcast %cst_49 : f32 to vector<2x2x48xf32>
      %52 = arith.addf %51, %50 : vector<2x2x48xf32>
      %53 = arith.divf %51, %52 : vector<2x2x48xf32>
      %54 = vector.extract_strided_slice %53 {offsets = [0, 0, 0], sizes = [2, 2, 16], strides = [1, 1, 1]} : vector<2x2x48xf32> to vector<2x2x16xf32>
      %55 = vector.extract_strided_slice %53 {offsets = [0, 0, 16], sizes = [2, 2, 16], strides = [1, 1, 1]} : vector<2x2x48xf32> to vector<2x2x16xf32>
      %56 = vector.extract_strided_slice %53 {offsets = [0, 0, 32], sizes = [2, 2, 16], strides = [1, 1, 1]} : vector<2x2x48xf32> to vector<2x2x16xf32>
      %57 = vector.extract_strided_slice %47 {offsets = [0, 0, 48], sizes = [2, 2, 16], strides = [1, 1, 1]} : vector<2x2x64xf32> to vector<2x2x16xf32>
      %58 = math.tanh %57 : vector<2x2x16xf32>
      %59 = arith.mulf %55, %36 : vector<2x2x16xf32>
      %60 = arith.mulf %54, %58 : vector<2x2x16xf32>
      %61 = arith.addf %59, %60 : vector<2x2x16xf32>
      %62 = math.tanh %61 : vector<2x2x16xf32>
      %63 = arith.mulf %56, %62 : vector<2x2x16xf32>
      %c0_50 = arith.constant 0 : index
      %c0_51 = arith.constant 0 : index
      %c0_52 = arith.constant 0 : index
      %64 = vector.load %arg10[%c0_50, %c0_51, %c0_52] : memref<2x2x16xf32, #tpu.memory_space<vmem>>, vector<2x2x16xf32>
      tpu.vector_store %arg10[%c0_50, %c0_51, %c0_52], %61 {strides = array<i32>} : memref<2x2x16xf32, #tpu.memory_space<vmem>>, vector<2x2x16xf32>,
      %c0_53 = arith.constant 0 : index
      %c0_54 = arith.constant 0 : index
      %c0_55 = arith.constant 0 : index
      %65 = vector.load %arg9[%c0_53, %c0_54, %c0_55] : memref<2x2x16xf32, #tpu.memory_space<vmem>>, vector<2x2x16xf32>
      tpu.vector_store %arg9[%c0_53, %c0_54, %c0_55], %63 {strides = array<i32>} : memref<2x2x16xf32, #tpu.memory_space<vmem>>, vector<2x2x16xf32>,
      %66 = vector.extract_strided_slice %63 {offsets = [0, 0, 0], sizes = [1, 2, 16], strides = [1, 1, 1]} : vector<2x2x16xf32> to vector<1x2x16xf32>
      %67 = vector.shape_cast %66 : vector<1x2x16xf32> to vector<2x16xf32>
      %68 = arith.index_cast %33 : i32 to index
      %c0_56 = arith.constant 0 : index
      %c0_57 = arith.constant 0 : index
      %69 = vector.load %arg7[%68, %c0_56, %c0_57] : memref<8x2x16xf32, #tpu.memory_space<vmem>>, vector<1x2x16xf32>
      %70 = vector.shape_cast %69 : vector<1x2x16xf32> to vector<2x16xf32>
      %71 = vector.shape_cast %67 : vector<2x16xf32> to vector<1x2x16xf32>
      tpu.vector_store %arg7[%68, %c0_56, %c0_57], %71 {strides = array<i32>} : memref<8x2x16xf32, #tpu.memory_space<vmem>>, vector<1x2x16xf32>,
      %72 = vector.extract_strided_slice %63 {offsets = [1, 0, 0], sizes = [1, 2, 16], strides = [1, 1, 1]} : vector<2x2x16xf32> to vector<1x2x16xf32>
      %73 = vector.shape_cast %72 : vector<1x2x16xf32> to vector<2x16xf32>
      %74 = arith.index_cast %34 : i32 to index
      %c0_58 = arith.constant 0 : index
      %c0_59 = arith.constant 0 : index
      %75 = vector.load %arg8[%74, %c0_58, %c0_59] : memref<8x2x16xf32, #tpu.memory_space<vmem>>, vector<1x2x16xf32>
      %76 = vector.shape_cast %75 : vector<1x2x16xf32> to vector<2x16xf32>
      %77 = vector.shape_cast %73 : vector<2x16xf32> to vector<1x2x16xf32>
      tpu.vector_store %arg8[%74, %c0_58, %c0_59], %77 {strides = array<i32>} : memref<8x2x16xf32, #tpu.memory_space<vmem>>, vector<1x2x16xf32>,
    }
    %c8_i32_26 = arith.constant 8 : i32
    %c0_27 = arith.constant 0 : index
    %c0_28 = arith.constant 0 : index
    %c0_29 = arith.constant 0 : index
    %28 = vector.load %arg7[%c0_27, %c0_28, %c0_29] : memref<8x2x16xf32, #tpu.memory_space<vmem>>, vector<8x2x16xf32>
    %c0_30 = arith.constant 0 : index
    %c0_31 = arith.constant 0 : index
    %c0_32 = arith.constant 0 : index
    %29 = vector.load %arg8[%c0_30, %c0_31, %c0_32] : memref<8x2x16xf32, #tpu.memory_space<vmem>>, vector<8x2x16xf32>
    %30 = tpu.concatenate %28, %29 in 2 : vector<8x2x16xf32>, vector<8x2x16xf32> -> vector<8x2x32xf32>
    %c0_33 = arith.constant 0 : index
    %c0_34 = arith.constant 0 : index
    %c0_35 = arith.constant 0 : index
    %31 = vector.load %arg4[%c0_33, %c0_34, %c0_35] : memref<8x2x32xf32, #tpu.memory_space<vmem>>, vector<8x2x32xf32>
    tpu.vector_store %arg4[%c0_33, %c0_34, %c0_35], %30 {strides = array<i32>} : memref<8x2x32xf32, #tpu.memory_space<vmem>>, vector<8x2x32xf32>,
    return
  }
}

module attributes {stable_mosaic.version = 11 : i64} {
  func.func @_bilstm_layer_kernel(%arg0: memref<8x2x32xf32, #tpu.memory_space<vmem>>, %arg1: memref<2x32x64xf32, #tpu.memory_space<vmem>>, %arg2: memref<2x16x64xf32, #tpu.memory_space<vmem>>, %arg3: memref<2x1x64xf32, #tpu.memory_space<vmem>>, %arg4: memref<8x2x32xf32, #tpu.memory_space<vmem>>, %arg5: memref<8x2x64xf32, #tpu.memory_space<vmem>>, %arg6: memref<8x2x64xf32, #tpu.memory_space<vmem>>, %arg7: memref<8x2x16xf32, #tpu.memory_space<vmem>>, %arg8: memref<8x2x16xf32, #tpu.memory_space<vmem>>, %arg9: memref<2x2x16xf32, #tpu.memory_space<vmem>>, %arg10: memref<2x2x16xf32, #tpu.memory_space<vmem>>) attributes {dimension_semantics = [], scalar_prefetch = 0 : i64, scratch_operands = 6 : i64, tpu.core_type = #tpu.core_type<tc>} {
    %c0 = arith.constant 0 : index
    %c0_0 = arith.constant 0 : index
    %c0_1 = arith.constant 0 : index
    %0 = vector.load %arg0[%c0, %c0_0, %c0_1] : memref<8x2x32xf32, #tpu.memory_space<vmem>>, vector<8x2x32xf32>
    %1 = vector.shape_cast %0 : vector<8x2x32xf32> to vector<16x32xf32>
    %c0_2 = arith.constant 0 : index
    %c0_3 = arith.constant 0 : index
    %c0_4 = arith.constant 0 : index
    %2 = vector.load %arg1[%c0_2, %c0_3, %c0_4] : memref<2x32x64xf32, #tpu.memory_space<vmem>>, vector<2x32x64xf32>
    %c0_5 = arith.constant 0 : index
    %c0_6 = arith.constant 0 : index
    %c0_7 = arith.constant 0 : index
    %3 = vector.load %arg3[%c0_5, %c0_6, %c0_7] : memref<2x1x64xf32, #tpu.memory_space<vmem>>, vector<2x1x64xf32>
    %4 = vector.extract_strided_slice %2 {offsets = [0, 0, 0], sizes = [1, 32, 64], strides = [1, 1, 1]} : vector<2x32x64xf32> to vector<1x32x64xf32>
    %5 = vector.shape_cast %4 : vector<1x32x64xf32> to vector<32x64xf32>
    %cst = arith.constant dense<0.000000e+00> : vector<16x64xf32>
    %6 = tpu.matmul %1, %5, %cst {dimension_numbers = #tpu.dot_dimension_numbers<[1], [0], [0], [1], [0, 0, 1, 1], [], []>} : vector<16x32xf32>, vector<32x64xf32>, vector<16x64xf32> -> vector<16x64xf32>
    %7 = vector.extract_strided_slice %3 {offsets = [0, 0, 0], sizes = [1, 1, 64], strides = [1, 1, 1]} : vector<2x1x64xf32> to vector<1x1x64xf32>
    %8 = vector.shape_cast %7 : vector<1x1x64xf32> to vector<1x64xf32>
    %9 = vector.broadcast %8 : vector<1x64xf32> to vector<16x64xf32>
    %10 = arith.addf %6, %9 : vector<16x64xf32>
    %11 = vector.shape_cast %10 : vector<16x64xf32> to vector<8x2x64xf32>
    %c0_8 = arith.constant 0 : index
    %c0_9 = arith.constant 0 : index
    %c0_10 = arith.constant 0 : index
    %12 = vector.load %arg5[%c0_8, %c0_9, %c0_10] : memref<8x2x64xf32, #tpu.memory_space<vmem>>, vector<8x2x64xf32>
    tpu.vector_store %arg5[%c0_8, %c0_9, %c0_10], %11 {strides = array<i32>} : memref<8x2x64xf32, #tpu.memory_space<vmem>>, vector<8x2x64xf32>,
    %13 = vector.extract_strided_slice %2 {offsets = [1, 0, 0], sizes = [1, 32, 64], strides = [1, 1, 1]} : vector<2x32x64xf32> to vector<1x32x64xf32>
    %14 = vector.shape_cast %13 : vector<1x32x64xf32> to vector<32x64xf32>
    %cst_11 = arith.constant dense<0.000000e+00> : vector<16x64xf32>
    %15 = tpu.matmul %1, %14, %cst_11 {dimension_numbers = #tpu.dot_dimension_numbers<[1], [0], [0], [1], [0, 0, 1, 1], [], []>} : vector<16x32xf32>, vector<32x64xf32>, vector<16x64xf32> -> vector<16x64xf32>
    %16 = vector.extract_strided_slice %3 {offsets = [1, 0, 0], sizes = [1, 1, 64], strides = [1, 1, 1]} : vector<2x1x64xf32> to vector<1x1x64xf32>
    %17 = vector.shape_cast %16 : vector<1x1x64xf32> to vector<1x64xf32>
    %18 = vector.broadcast %17 : vector<1x64xf32> to vector<16x64xf32>
    %19 = arith.addf %15, %18 : vector<16x64xf32>
    %20 = vector.shape_cast %19 : vector<16x64xf32> to vector<8x2x64xf32>
    %c0_12 = arith.constant 0 : index
    %c0_13 = arith.constant 0 : index
    %c0_14 = arith.constant 0 : index
    %21 = vector.load %arg6[%c0_12, %c0_13, %c0_14] : memref<8x2x64xf32, #tpu.memory_space<vmem>>, vector<8x2x64xf32>
    tpu.vector_store %arg6[%c0_12, %c0_13, %c0_14], %20 {strides = array<i32>} : memref<8x2x64xf32, #tpu.memory_space<vmem>>, vector<8x2x64xf32>,
    %cst_15 = arith.constant 0.000000e+00 : f32
    %22 = vector.broadcast %cst_15 : f32 to vector<2x2x16xf32>
    %c0_16 = arith.constant 0 : index
    %c0_17 = arith.constant 0 : index
    %c0_18 = arith.constant 0 : index
    %23 = vector.load %arg9[%c0_16, %c0_17, %c0_18] : memref<2x2x16xf32, #tpu.memory_space<vmem>>, vector<2x2x16xf32>
    tpu.vector_store %arg9[%c0_16, %c0_17, %c0_18], %22 {strides = array<i32>} : memref<2x2x16xf32, #tpu.memory_space<vmem>>, vector<2x2x16xf32>,
    %cst_19 = arith.constant 0.000000e+00 : f32
    %24 = vector.broadcast %cst_19 : f32 to vector<2x2x16xf32>
    %c0_20 = arith.constant 0 : index
    %c0_21 = arith.constant 0 : index
    %c0_22 = arith.constant 0 : index
    %25 = vector.load %arg10[%c0_20, %c0_21, %c0_22] : memref<2x2x16xf32, #tpu.memory_space<vmem>>, vector<2x2x16xf32>
    tpu.vector_store %arg10[%c0_20, %c0_21, %c0_22], %24 {strides = array<i32>} : memref<2x2x16xf32, #tpu.memory_space<vmem>>, vector<2x2x16xf32>,
    %c0_23 = arith.constant 0 : index
    %c0_24 = arith.constant 0 : index
    %c0_25 = arith.constant 0 : index
    %26 = vector.load %arg2[%c0_23, %c0_24, %c0_25] : memref<2x16x64xf32, #tpu.memory_space<vmem>>, vector<2x16x64xf32>
    %c0_i32 = arith.constant 0 : i32
    %c8_i32 = arith.constant 8 : i32
    %27 = arith.addi %c0_i32, %c8_i32 : i32
    %c1_i32 = arith.constant 1 : i32
    scf.for %arg11 = %c0_i32 to %27 step %c1_i32  : i32 {
      %c1_i32_36 = arith.constant 1 : i32
      %32 = arith.muli %arg11, %c1_i32_36 : i32
      %c0_i32_37 = arith.constant 0 : i32
      %33 = arith.addi %c0_i32_37, %32 : i32
      %c7_i32 = arith.constant 7 : i32
      %34 = arith.subi %c7_i32, %33 : i32
      %c0_38 = arith.constant 0 : index
      %c0_39 = arith.constant 0 : index
      %c0_40 = arith.constant 0 : index
      %35 = vector.load %arg9[%c0_38, %c0_39, %c0_40] : memref<2x2x16xf32, #tpu.memory_space<vmem>>, vector<2x2x16xf32>
      %c0_41 = arith.constant 0 : index
      %c0_42 = arith.constant 0 : index
      %c0_43 = arith.constant 0 : index
      %36 = vector.load %arg10[%c0_41, %c0_42, %c0_43] : memref<2x2x16xf32, #tpu.memory_space<vmem>>, vector<2x2x16xf32>
      %37 = arith.index_cast %33 : i32 to index
      %c0_44 = arith.constant 0 : index
      %c0_45 = arith.constant 0 : index
      %38 = vector.load %arg5[%37, %c0_44, %c0_45] : memref<8x2x64xf32, #tpu.memory_space<vmem>>, vector<1x2x64xf32>
      %39 = vector.shape_cast %38 : vector<1x2x64xf32> to vector<2x64xf32>
      %40 = arith.index_cast %34 : i32 to index
      %c0_46 = arith.constant 0 : index
      %c0_47 = arith.constant 0 : index
      %41 = vector.load %arg6[%40, %c0_46, %c0_47] : memref<8x2x64xf32, #tpu.memory_space<vmem>>, vector<1x2x64xf32>
      %42 = vector.shape_cast %41 : vector<1x2x64xf32> to vector<2x64xf32>
      %43 = vector.shape_cast %39 : vector<2x64xf32> to vector<1x2x64xf32>
      %44 = vector.shape_cast %42 : vector<2x64xf32> to vector<1x2x64xf32>
      %45 = tpu.concatenate %43, %44 in 0 : vector<1x2x64xf32>, vector<1x2x64xf32> -> vector<2x2x64xf32>
      "tpu.trace_start"() <{level = 10 : i32, message = "dbh,dhg->dbg"}> : () -> ()
      %cst_48 = arith.constant dense<0.000000e+00> : vector<2x2x64xf32>
      %46 = tpu.matmul %35, %26, %cst_48 {dimension_numbers = #tpu.dot_dimension_numbers<[2], [1], [1], [2], [0, 0, 0, 1, 1, 2], [0], [0]>} : vector<2x2x16xf32>, vector<2x16x64xf32>, vector<2x2x64xf32> -> vector<2x2x64xf32>
      "tpu.trace_stop"() : () -> ()
      %47 = arith.addf %45, %46 : vector<2x2x64xf32>
      %48 = vector.extract_strided_slice %47 {offsets = [0, 0, 0], sizes = [2, 2, 48], strides = [1, 1, 1]} : vector<2x2x64xf32> to vector<2x2x48xf32>
      %49 = arith.negf %48 : vector<2x2x48xf32>
      %50 = math.exp %49 : vector<2x2x48xf32>
      %cst_49 = arith.constant 1.000000e+00 : f32
      %51 = vector.broadcast %cst_49 : f32 to vector<2x2x48xf32>
      %52 = arith.addf %51, %50 : vector<2x2x48xf32>
      %53 = arith.divf %51, %52 : vector<2x2x48xf32>
      %54 = vector.extract_strided_slice %53 {offsets = [0, 0, 0], sizes = [2, 2, 16], strides = [1, 1, 1]} : vector<2x2x48xf32> to vector<2x2x16xf32>
      %55 = vector.extract_strided_slice %53 {offsets = [0, 0, 16], sizes = [2, 2, 16], strides = [1, 1, 1]} : vector<2x2x48xf32> to vector<2x2x16xf32>
      %56 = vector.extract_strided_slice %53 {offsets = [0, 0, 32], sizes = [2, 2, 16], strides = [1, 1, 1]} : vector<2x2x48xf32> to vector<2x2x16xf32>
      %57 = vector.extract_strided_slice %47 {offsets = [0, 0, 48], sizes = [2, 2, 16], strides = [1, 1, 1]} : vector<2x2x64xf32> to vector<2x2x16xf32>
      %58 = math.tanh %57 : vector<2x2x16xf32>
      %59 = arith.mulf %55, %36 : vector<2x2x16xf32>
      %60 = arith.mulf %54, %58 : vector<2x2x16xf32>
      %61 = arith.addf %59, %60 : vector<2x2x16xf32>
      %62 = math.tanh %61 : vector<2x2x16xf32>
      %63 = arith.mulf %56, %62 : vector<2x2x16xf32>
      %c0_50 = arith.constant 0 : index
      %c0_51 = arith.constant 0 : index
      %c0_52 = arith.constant 0 : index
      %64 = vector.load %arg10[%c0_50, %c0_51, %c0_52] : memref<2x2x16xf32, #tpu.memory_space<vmem>>, vector<2x2x16xf32>
      tpu.vector_store %arg10[%c0_50, %c0_51, %c0_52], %61 {strides = array<i32>} : memref<2x2x16xf32, #tpu.memory_space<vmem>>, vector<2x2x16xf32>,
      %c0_53 = arith.constant 0 : index
      %c0_54 = arith.constant 0 : index
      %c0_55 = arith.constant 0 : index
      %65 = vector.load %arg9[%c0_53, %c0_54, %c0_55] : memref<2x2x16xf32, #tpu.memory_space<vmem>>, vector<2x2x16xf32>
      tpu.vector_store %arg9[%c0_53, %c0_54, %c0_55], %63 {strides = array<i32>} : memref<2x2x16xf32, #tpu.memory_space<vmem>>, vector<2x2x16xf32>,
      %66 = vector.extract_strided_slice %63 {offsets = [0, 0, 0], sizes = [1, 2, 16], strides = [1, 1, 1]} : vector<2x2x16xf32> to vector<1x2x16xf32>
      %67 = vector.shape_cast %66 : vector<1x2x16xf32> to vector<2x16xf32>
      %68 = arith.index_cast %33 : i32 to index
      %c0_56 = arith.constant 0 : index
      %c0_57 = arith.constant 0 : index
      %69 = vector.load %arg7[%68, %c0_56, %c0_57] : memref<8x2x16xf32, #tpu.memory_space<vmem>>, vector<1x2x16xf32>
      %70 = vector.shape_cast %69 : vector<1x2x16xf32> to vector<2x16xf32>
      %71 = vector.shape_cast %67 : vector<2x16xf32> to vector<1x2x16xf32>
      tpu.vector_store %arg7[%68, %c0_56, %c0_57], %71 {strides = array<i32>} : memref<8x2x16xf32, #tpu.memory_space<vmem>>, vector<1x2x16xf32>,
      %72 = vector.extract_strided_slice %63 {offsets = [1, 0, 0], sizes = [1, 2, 16], strides = [1, 1, 1]} : vector<2x2x16xf32> to vector<1x2x16xf32>
      %73 = vector.shape_cast %72 : vector<1x2x16xf32> to vector<2x16xf32>
      %74 = arith.index_cast %34 : i32 to index
      %c0_58 = arith.constant 0 : index
      %c0_59 = arith.constant 0 : index
      %75 = vector.load %arg8[%74, %c0_58, %c0_59] : memref<8x2x16xf32, #tpu.memory_space<vmem>>, vector<1x2x16xf32>
      %76 = vector.shape_cast %75 : vector<1x2x16xf32> to vector<2x16xf32>
      %77 = vector.shape_cast %73 : vector<2x16xf32> to vector<1x2x16xf32>
      tpu.vector_store %arg8[%74, %c0_58, %c0_59], %77 {strides = array<i32>} : memref<8x2x16xf32, #tpu.memory_space<vmem>>, vector<1x2x16xf32>,
    }
    %c8_i32_26 = arith.constant 8 : i32
    %c0_27 = arith.constant 0 : index
    %c0_28 = arith.constant 0 : index
    %c0_29 = arith.constant 0 : index
    %28 = vector.load %arg7[%c0_27, %c0_28, %c0_29] : memref<8x2x16xf32, #tpu.memory_space<vmem>>, vector<8x2x16xf32>
    %c0_30 = arith.constant 0 : index
    %c0_31 = arith.constant 0 : index
    %c0_32 = arith.constant 0 : index
    %29 = vector.load %arg8[%c0_30, %c0_31, %c0_32] : memref<8x2x16xf32, #tpu.memory_space<vmem>>, vector<8x2x16xf32>
    %30 = tpu.concatenate %28, %29 in 2 : vector<8x2x16xf32>, vector<8x2x16xf32> -> vector<8x2x32xf32>
    %c0_33 = arith.constant 0 : index
    %c0_34 = arith.constant 0 : index
    %c0_35 = arith.constant 0 : index
    %31 = vector.load %arg4[%c0_33, %c0_34, %c0_35] : memref<8x2x32xf32, #tpu.memory_space<vmem>>, vector<8x2x32xf32>
    tpu.vector_store %arg4[%c0_33, %c0_34, %c0_35], %30 {strides = array<i32>} : memref<8x2x32xf32, #tpu.memory_space<vmem>>, vector<8x2x32xf32>,
    return
  }
}

module attributes {stable_mosaic.version = 11 : i64} {
  func.func @_scd_kernel(%arg0: i32, %arg1: memref<1x8x2x32xf32, #tpu.memory_space<vmem>>, %arg2: memref<1x32x129xf32, #tpu.memory_space<vmem>>, %arg3: memref<1x32x129xf32, #tpu.memory_space<vmem>>, %arg4: memref<1x32x129xf32, #tpu.memory_space<vmem>>, %arg5: memref<1x1x129xf32, #tpu.memory_space<vmem>>, %arg6: memref<1x32x129xf32, #tpu.memory_space<vmem>>, %arg7: memref<1x32x129xf32, #tpu.memory_space<vmem>>, %arg8: memref<1x1x129xf32, #tpu.memory_space<vmem>>, %arg9: memref<1x8x2x32xf32, #tpu.memory_space<vmem>>, %arg10: memref<8x2x129xf32, #tpu.memory_space<vmem>>, %arg11: memref<2x32xf32, #tpu.memory_space<vmem>>, %arg12: memref<2x32xf32, #tpu.memory_space<vmem>>, %arg13: memref<2x1xf32, #tpu.memory_space<vmem>>, %arg14: memref<2x32xf32, #tpu.memory_space<vmem>>, %arg15: memref<2x32xf32, #tpu.memory_space<vmem>>, %arg16: memref<2x1xf32, #tpu.memory_space<vmem>>) attributes {dimension_semantics = [#tpu.dimension_semantics<parallel>], iteration_bounds = array<i64: 2>, scalar_prefetch = 0 : i64, scratch_operands = 7 : i64, tpu.core_type = #tpu.core_type<tc>, window_params = [{transform_indices = @transform_0, window_bounds = array<i64: 1, 8, 2, 32>}, {transform_indices = @transform_1, window_bounds = array<i64: 1, 32, 129>}, {transform_indices = @transform_2, window_bounds = array<i64: 1, 32, 129>}, {transform_indices = @transform_3, window_bounds = array<i64: 1, 32, 129>}, {transform_indices = @transform_4, window_bounds = array<i64: 1, 1, 129>}, {transform_indices = @transform_5, window_bounds = array<i64: 1, 32, 129>}, {transform_indices = @transform_6, window_bounds = array<i64: 1, 32, 129>}, {transform_indices = @transform_7, window_bounds = array<i64: 1, 1, 129>}, {transform_indices = @transform_8, window_bounds = array<i64: 1, 8, 2, 32>}]} {
    %cst = arith.constant 0.000000e+00 : f32
    %0 = vector.broadcast %cst : f32 to vector<2x32xf32>
    %c0 = arith.constant 0 : index
    %c0_0 = arith.constant 0 : index
    %1 = vector.load %arg11[%c0, %c0_0] : memref<2x32xf32, #tpu.memory_space<vmem>>, vector<2x32xf32>
    tpu.vector_store %arg11[%c0, %c0_0], %0 {strides = array<i32>} : memref<2x32xf32, #tpu.memory_space<vmem>>, vector<2x32xf32>,
    %cst_1 = arith.constant 0.000000e+00 : f32
    %2 = vector.broadcast %cst_1 : f32 to vector<2x32xf32>
    %c0_2 = arith.constant 0 : index
    %c0_3 = arith.constant 0 : index
    %3 = vector.load %arg12[%c0_2, %c0_3] : memref<2x32xf32, #tpu.memory_space<vmem>>, vector<2x32xf32>
    tpu.vector_store %arg12[%c0_2, %c0_3], %2 {strides = array<i32>} : memref<2x32xf32, #tpu.memory_space<vmem>>, vector<2x32xf32>,
    %cst_4 = arith.constant 0.000000e+00 : f32
    %4 = vector.broadcast %cst_4 : f32 to vector<2x1xf32>
    %c0_5 = arith.constant 0 : index
    %c0_6 = arith.constant 0 : index
    %5 = vector.load %arg13[%c0_5, %c0_6] : memref<2x1xf32, #tpu.memory_space<vmem>>, vector<2x1xf32>
    tpu.vector_store %arg13[%c0_5, %c0_6], %4 {strides = array<i32>} : memref<2x1xf32, #tpu.memory_space<vmem>>, vector<2x1xf32>,
    %cst_7 = arith.constant 0.000000e+00 : f32
    %6 = vector.broadcast %cst_7 : f32 to vector<2x32xf32>
    %c0_8 = arith.constant 0 : index
    %c0_9 = arith.constant 0 : index
    %7 = vector.load %arg14[%c0_8, %c0_9] : memref<2x32xf32, #tpu.memory_space<vmem>>, vector<2x32xf32>
    tpu.vector_store %arg14[%c0_8, %c0_9], %6 {strides = array<i32>} : memref<2x32xf32, #tpu.memory_space<vmem>>, vector<2x32xf32>,
    %cst_10 = arith.constant 0.000000e+00 : f32
    %8 = vector.broadcast %cst_10 : f32 to vector<2x32xf32>
    %c0_11 = arith.constant 0 : index
    %c0_12 = arith.constant 0 : index
    %9 = vector.load %arg15[%c0_11, %c0_12] : memref<2x32xf32, #tpu.memory_space<vmem>>, vector<2x32xf32>
    tpu.vector_store %arg15[%c0_11, %c0_12], %8 {strides = array<i32>} : memref<2x32xf32, #tpu.memory_space<vmem>>, vector<2x32xf32>,
    %cst_13 = arith.constant 0.000000e+00 : f32
    %10 = vector.broadcast %cst_13 : f32 to vector<2x1xf32>
    %c0_14 = arith.constant 0 : index
    %c0_15 = arith.constant 0 : index
    %11 = vector.load %arg16[%c0_14, %c0_15] : memref<2x1xf32, #tpu.memory_space<vmem>>, vector<2x1xf32>
    tpu.vector_store %arg16[%c0_14, %c0_15], %10 {strides = array<i32>} : memref<2x1xf32, #tpu.memory_space<vmem>>, vector<2x1xf32>,
    %c0_16 = arith.constant 0 : index
    %c0_17 = arith.constant 0 : index
    %c0_18 = arith.constant 0 : index
    %c0_19 = arith.constant 0 : index
    %12 = vector.load %arg1[%c0_16, %c0_17, %c0_18, %c0_19] : memref<1x8x2x32xf32, #tpu.memory_space<vmem>>, vector<1x8x2x32xf32>
    %13 = vector.shape_cast %12 : vector<1x8x2x32xf32> to vector<8x2x32xf32>
    %14 = vector.shape_cast %13 : vector<8x2x32xf32> to vector<16x32xf32>
    %c0_20 = arith.constant 0 : index
    %c0_21 = arith.constant 0 : index
    %c0_22 = arith.constant 0 : index
    %15 = vector.load %arg4[%c0_20, %c0_21, %c0_22] : memref<1x32x129xf32, #tpu.memory_space<vmem>>, vector<1x32x129xf32>
    %16 = vector.shape_cast %15 : vector<1x32x129xf32> to vector<32x129xf32>
    %cst_23 = arith.constant dense<0.000000e+00> : vector<16x129xf32>
    %17 = tpu.matmul %14, %16, %cst_23 {dimension_numbers = #tpu.dot_dimension_numbers<[1], [0], [0], [1], [0, 0, 1, 1], [], []>} : vector<16x32xf32>, vector<32x129xf32>, vector<16x129xf32> -> vector<16x129xf32>
    %c0_24 = arith.constant 0 : index
    %c0_25 = arith.constant 0 : index
    %c0_26 = arith.constant 0 : index
    %18 = vector.load %arg5[%c0_24, %c0_25, %c0_26] : memref<1x1x129xf32, #tpu.memory_space<vmem>>, vector<1x1x129xf32>
    %19 = vector.shape_cast %18 : vector<1x1x129xf32> to vector<1x129xf32>
    %20 = vector.broadcast %19 : vector<1x129xf32> to vector<16x129xf32>
    %21 = arith.addf %17, %20 : vector<16x129xf32>
    %22 = vector.shape_cast %21 : vector<16x129xf32> to vector<8x2x129xf32>
    %c0_27 = arith.constant 0 : index
    %c0_28 = arith.constant 0 : index
    %c0_29 = arith.constant 0 : index
    %23 = vector.load %arg10[%c0_27, %c0_28, %c0_29] : memref<8x2x129xf32, #tpu.memory_space<vmem>>, vector<8x2x129xf32>
    tpu.vector_store %arg10[%c0_27, %c0_28, %c0_29], %22 {strides = array<i32>} : memref<8x2x129xf32, #tpu.memory_space<vmem>>, vector<8x2x129xf32>,
    %c0_30 = arith.constant 0 : index
    %c0_31 = arith.constant 0 : index
    %c0_32 = arith.constant 0 : index
    %24 = vector.load %arg2[%c0_30, %c0_31, %c0_32] : memref<1x32x129xf32, #tpu.memory_space<vmem>>, vector<1x32x129xf32>
    %25 = vector.shape_cast %24 : vector<1x32x129xf32> to vector<32x129xf32>
    %c0_33 = arith.constant 0 : index
    %c0_34 = arith.constant 0 : index
    %c0_35 = arith.constant 0 : index
    %26 = vector.load %arg3[%c0_33, %c0_34, %c0_35] : memref<1x32x129xf32, #tpu.memory_space<vmem>>, vector<1x32x129xf32>
    %27 = vector.shape_cast %26 : vector<1x32x129xf32> to vector<32x129xf32>
    %c0_36 = arith.constant 0 : index
    %c0_37 = arith.constant 0 : index
    %c0_38 = arith.constant 0 : index
    %28 = vector.load %arg6[%c0_36, %c0_37, %c0_38] : memref<1x32x129xf32, #tpu.memory_space<vmem>>, vector<1x32x129xf32>
    %29 = vector.shape_cast %28 : vector<1x32x129xf32> to vector<32x129xf32>
    %c0_39 = arith.constant 0 : index
    %c0_40 = arith.constant 0 : index
    %c0_41 = arith.constant 0 : index
    %30 = vector.load %arg7[%c0_39, %c0_40, %c0_41] : memref<1x32x129xf32, #tpu.memory_space<vmem>>, vector<1x32x129xf32>
    %31 = vector.shape_cast %30 : vector<1x32x129xf32> to vector<32x129xf32>
    %c0_42 = arith.constant 0 : index
    %c0_43 = arith.constant 0 : index
    %c0_44 = arith.constant 0 : index
    %32 = vector.load %arg8[%c0_42, %c0_43, %c0_44] : memref<1x1x129xf32, #tpu.memory_space<vmem>>, vector<1x1x129xf32>
    %33 = vector.shape_cast %32 : vector<1x1x129xf32> to vector<1x129xf32>
    %c0_i32 = arith.constant 0 : i32
    %c8_i32 = arith.constant 8 : i32
    %34 = arith.addi %c0_i32, %c8_i32 : i32
    %c1_i32 = arith.constant 1 : i32
    scf.for %arg17 = %c0_i32 to %34 step %c1_i32  : i32 {
      %c1_i32_46 = arith.constant 1 : i32
      %35 = arith.muli %arg17, %c1_i32_46 : i32
      %c0_i32_47 = arith.constant 0 : i32
      %36 = arith.addi %c0_i32_47, %35 : i32
      %c0_48 = arith.constant 0 : index
      %c0_49 = arith.constant 0 : index
      %37 = vector.load %arg11[%c0_48, %c0_49] : memref<2x32xf32, #tpu.memory_space<vmem>>, vector<2x32xf32>
      %c0_50 = arith.constant 0 : index
      %c0_51 = arith.constant 0 : index
      %38 = vector.load %arg12[%c0_50, %c0_51] : memref<2x32xf32, #tpu.memory_space<vmem>>, vector<2x32xf32>
      %c0_52 = arith.constant 0 : index
      %c0_53 = arith.constant 0 : index
      %39 = vector.load %arg13[%c0_52, %c0_53] : memref<2x1xf32, #tpu.memory_space<vmem>>, vector<2x1xf32>
      %c0_54 = arith.constant 0 : index
      %c0_55 = arith.constant 0 : index
      %40 = vector.load %arg14[%c0_54, %c0_55] : memref<2x32xf32, #tpu.memory_space<vmem>>, vector<2x32xf32>
      %c0_56 = arith.constant 0 : index
      %c0_57 = arith.constant 0 : index
      %41 = vector.load %arg15[%c0_56, %c0_57] : memref<2x32xf32, #tpu.memory_space<vmem>>, vector<2x32xf32>
      %c0_58 = arith.constant 0 : index
      %c0_59 = arith.constant 0 : index
      %42 = vector.load %arg16[%c0_58, %c0_59] : memref<2x1xf32, #tpu.memory_space<vmem>>, vector<2x1xf32>
      %cst_60 = arith.constant 1.000000e+00 : f32
      %43 = vector.broadcast %cst_60 : f32 to vector<2x1xf32>
      %44 = arith.subf %43, %39 : vector<2x1xf32>
      %cst_61 = arith.constant dense<0.000000e+00> : vector<2x129xf32>
      %45 = tpu.matmul %37, %25, %cst_61 {dimension_numbers = #tpu.dot_dimension_numbers<[1], [0], [0], [1], [0, 0, 1, 1], [], []>} : vector<2x32xf32>, vector<32x129xf32>, vector<2x129xf32> -> vector<2x129xf32>
      %46 = vector.broadcast %44 : vector<2x1xf32> to vector<2x129xf32>
      %47 = arith.mulf %46, %45 : vector<2x129xf32>
      %cst_62 = arith.constant dense<0.000000e+00> : vector<2x129xf32>
      %48 = tpu.matmul %40, %27, %cst_62 {dimension_numbers = #tpu.dot_dimension_numbers<[1], [0], [0], [1], [0, 0, 1, 1], [], []>} : vector<2x32xf32>, vector<32x129xf32>, vector<2x129xf32> -> vector<2x129xf32>
      %49 = vector.broadcast %39 : vector<2x1xf32> to vector<2x129xf32>
      %50 = arith.mulf %49, %48 : vector<2x129xf32>
      %51 = arith.addf %47, %50 : vector<2x129xf32>
      %52 = arith.index_cast %36 : i32 to index
      %c0_63 = arith.constant 0 : index
      %c0_64 = arith.constant 0 : index
      %53 = vector.load %arg10[%52, %c0_63, %c0_64] : memref<8x2x129xf32, #tpu.memory_space<vmem>>, vector<1x2x129xf32>
      %54 = vector.shape_cast %53 : vector<1x2x129xf32> to vector<2x129xf32>
      %55 = arith.addf %51, %54 : vector<2x129xf32>
      %56 = vector.extract_strided_slice %55 {offsets = [0, 0], sizes = [2, 96], strides = [1, 1]} : vector<2x129xf32> to vector<2x96xf32>
      %57 = arith.negf %56 : vector<2x96xf32>
      %58 = math.exp %57 : vector<2x96xf32>
      %cst_65 = arith.constant 1.000000e+00 : f32
      %59 = vector.broadcast %cst_65 : f32 to vector<2x96xf32>
      %60 = arith.addf %59, %58 : vector<2x96xf32>
      %61 = arith.divf %59, %60 : vector<2x96xf32>
      %62 = vector.extract_strided_slice %61 {offsets = [0, 0], sizes = [2, 32], strides = [1, 1]} : vector<2x96xf32> to vector<2x32xf32>
      %63 = vector.extract_strided_slice %61 {offsets = [0, 32], sizes = [2, 32], strides = [1, 1]} : vector<2x96xf32> to vector<2x32xf32>
      %64 = vector.extract_strided_slice %61 {offsets = [0, 64], sizes = [2, 32], strides = [1, 1]} : vector<2x96xf32> to vector<2x32xf32>
      %65 = vector.extract_strided_slice %55 {offsets = [0, 96], sizes = [2, 32], strides = [1, 1]} : vector<2x129xf32> to vector<2x32xf32>
      %66 = math.tanh %65 : vector<2x32xf32>
      %67 = vector.extract_strided_slice %55 {offsets = [0, 128], sizes = [2, 1], strides = [1, 1]} : vector<2x129xf32> to vector<2x1xf32>
      %cst_66 = arith.constant 1.000000e+00 : f32
      %68 = vector.broadcast %cst_66 : f32 to vector<2x1xf32>
      %69 = arith.mulf %68, %67 : vector<2x1xf32>
      %cst_67 = arith.constant 1.000000e+00 : f32
      %70 = vector.broadcast %cst_67 : f32 to vector<2x1xf32>
      %71 = arith.addf %69, %70 : vector<2x1xf32>
      %cst_68 = arith.constant 5.000000e-01 : f32
      %72 = vector.broadcast %cst_68 : f32 to vector<2x1xf32>
      %73 = arith.mulf %71, %72 : vector<2x1xf32>
      %cst_69 = arith.constant 0.000000e+00 : f32
      %cst_70 = arith.constant 1.000000e+00 : f32
      %74 = vector.broadcast %cst_69 : f32 to vector<2x1xf32>
      %75 = arith.maximumf %74, %73 : vector<2x1xf32>
      %76 = vector.broadcast %cst_70 : f32 to vector<2x1xf32>
      %77 = arith.minimumf %76, %75 : vector<2x1xf32>
      %78 = arith.mulf %63, %66 : vector<2x32xf32>
      %79 = vector.broadcast %39 : vector<2x1xf32> to vector<2x32xf32>
      %80 = arith.mulf %79, %78 : vector<2x32xf32>
      %cst_71 = arith.constant 1.000000e+00 : f32
      %81 = vector.broadcast %cst_71 : f32 to vector<2x1xf32>
      %82 = arith.subf %81, %39 : vector<2x1xf32>
      %83 = arith.mulf %62, %38 : vector<2x32xf32>
      %84 = arith.addf %83, %78 : vector<2x32xf32>
      %85 = vector.broadcast %82 : vector<2x1xf32> to vector<2x32xf32>
      %86 = arith.mulf %85, %84 : vector<2x32xf32>
      %87 = arith.addf %80, %86 : vector<2x32xf32>
      %88 = math.tanh %87 : vector<2x32xf32>
      %89 = arith.mulf %64, %88 : vector<2x32xf32>
      %cst_72 = arith.constant 1.000000e+00 : f32
      %90 = vector.broadcast %cst_72 : f32 to vector<2x1xf32>
      %91 = arith.subf %90, %42 : vector<2x1xf32>
      %cst_73 = arith.constant dense<0.000000e+00> : vector<2x129xf32>
      %92 = tpu.matmul %40, %29, %cst_73 {dimension_numbers = #tpu.dot_dimension_numbers<[1], [0], [0], [1], [0, 0, 1, 1], [], []>} : vector<2x32xf32>, vector<32x129xf32>, vector<2x129xf32> -> vector<2x129xf32>
      %93 = vector.broadcast %91 : vector<2x1xf32> to vector<2x129xf32>
      %94 = arith.mulf %93, %92 : vector<2x129xf32>
      %cst_74 = arith.constant dense<0.000000e+00> : vector<2x129xf32>
      %95 = tpu.matmul %89, %31, %cst_74 {dimension_numbers = #tpu.dot_dimension_numbers<[1], [0], [0], [1], [0, 0, 1, 1], [], []>} : vector<2x32xf32>, vector<32x129xf32>, vector<2x129xf32> -> vector<2x129xf32>
      %96 = vector.broadcast %77 : vector<2x1xf32> to vector<2x129xf32>
      %97 = arith.mulf %96, %95 : vector<2x129xf32>
      %98 = arith.addf %94, %97 : vector<2x129xf32>
      %99 = vector.broadcast %33 : vector<1x129xf32> to vector<2x129xf32>
      %100 = arith.addf %98, %99 : vector<2x129xf32>
      %101 = vector.extract_strided_slice %100 {offsets = [0, 0], sizes = [2, 96], strides = [1, 1]} : vector<2x129xf32> to vector<2x96xf32>
      %102 = arith.negf %101 : vector<2x96xf32>
      %103 = math.exp %102 : vector<2x96xf32>
      %cst_75 = arith.constant 1.000000e+00 : f32
      %104 = vector.broadcast %cst_75 : f32 to vector<2x96xf32>
      %105 = arith.addf %104, %103 : vector<2x96xf32>
      %106 = arith.divf %104, %105 : vector<2x96xf32>
      %107 = vector.extract_strided_slice %106 {offsets = [0, 0], sizes = [2, 32], strides = [1, 1]} : vector<2x96xf32> to vector<2x32xf32>
      %108 = vector.extract_strided_slice %106 {offsets = [0, 32], sizes = [2, 32], strides = [1, 1]} : vector<2x96xf32> to vector<2x32xf32>
      %109 = vector.extract_strided_slice %106 {offsets = [0, 64], sizes = [2, 32], strides = [1, 1]} : vector<2x96xf32> to vector<2x32xf32>
      %110 = vector.extract_strided_slice %100 {offsets = [0, 96], sizes = [2, 32], strides = [1, 1]} : vector<2x129xf32> to vector<2x32xf32>
      %111 = math.tanh %110 : vector<2x32xf32>
      %112 = vector.extract_strided_slice %100 {offsets = [0, 128], sizes = [2, 1], strides = [1, 1]} : vector<2x129xf32> to vector<2x1xf32>
      %cst_76 = arith.constant 1.000000e+00 : f32
      %113 = vector.broadcast %cst_76 : f32 to vector<2x1xf32>
      %114 = arith.mulf %113, %112 : vector<2x1xf32>
      %cst_77 = arith.constant 1.000000e+00 : f32
      %115 = vector.broadcast %cst_77 : f32 to vector<2x1xf32>
      %116 = arith.addf %114, %115 : vector<2x1xf32>
      %cst_78 = arith.constant 5.000000e-01 : f32
      %117 = vector.broadcast %cst_78 : f32 to vector<2x1xf32>
      %118 = arith.mulf %116, %117 : vector<2x1xf32>
      %cst_79 = arith.constant 0.000000e+00 : f32
      %cst_80 = arith.constant 1.000000e+00 : f32
      %119 = vector.broadcast %cst_79 : f32 to vector<2x1xf32>
      %120 = arith.maximumf %119, %118 : vector<2x1xf32>
      %121 = vector.broadcast %cst_80 : f32 to vector<2x1xf32>
      %122 = arith.minimumf %121, %120 : vector<2x1xf32>
      %123 = arith.mulf %108, %111 : vector<2x32xf32>
      %124 = vector.broadcast %42 : vector<2x1xf32> to vector<2x32xf32>
      %125 = arith.mulf %124, %123 : vector<2x32xf32>
      %cst_81 = arith.constant 1.000000e+00 : f32
      %126 = vector.broadcast %cst_81 : f32 to vector<2x1xf32>
      %127 = arith.subf %126, %42 : vector<2x1xf32>
      %cst_82 = arith.constant 1.000000e+00 : f32
      %128 = vector.broadcast %cst_82 : f32 to vector<2x1xf32>
      %129 = arith.subf %128, %77 : vector<2x1xf32>
      %130 = vector.broadcast %129 : vector<2x1xf32> to vector<2x32xf32>
      %131 = arith.mulf %130, %41 : vector<2x32xf32>
      %132 = arith.mulf %107, %41 : vector<2x32xf32>
      %133 = arith.addf %132, %123 : vector<2x32xf32>
      %134 = vector.broadcast %77 : vector<2x1xf32> to vector<2x32xf32>
      %135 = arith.mulf %134, %133 : vector<2x32xf32>
      %136 = arith.addf %131, %135 : vector<2x32xf32>
      %137 = vector.broadcast %127 : vector<2x1xf32> to vector<2x32xf32>
      %138 = arith.mulf %137, %136 : vector<2x32xf32>
      %139 = arith.addf %125, %138 : vector<2x32xf32>
      %140 = math.tanh %139 : vector<2x32xf32>
      %141 = arith.mulf %109, %140 : vector<2x32xf32>
      %cst_83 = arith.constant 1.000000e+00 : f32
      %142 = vector.broadcast %cst_83 : f32 to vector<2x1xf32>
      %143 = arith.subf %142, %42 : vector<2x1xf32>
      %144 = arith.mulf %143, %77 : vector<2x1xf32>
      %145 = arith.addf %42, %144 : vector<2x1xf32>
      %146 = vector.broadcast %145 : vector<2x1xf32> to vector<2x32xf32>
      %147 = arith.mulf %141, %146 : vector<2x32xf32>
      %cst_84 = arith.constant 1.000000e+00 : f32
      %148 = vector.broadcast %cst_84 : f32 to vector<2x1xf32>
      %149 = arith.subf %148, %42 : vector<2x1xf32>
      %cst_85 = arith.constant 1.000000e+00 : f32
      %150 = vector.broadcast %cst_85 : f32 to vector<2x1xf32>
      %151 = arith.subf %150, %77 : vector<2x1xf32>
      %152 = arith.mulf %149, %151 : vector<2x1xf32>
      %153 = vector.broadcast %152 : vector<2x1xf32> to vector<2x32xf32>
      %154 = arith.mulf %153, %40 : vector<2x32xf32>
      %155 = arith.addf %147, %154 : vector<2x32xf32>
      %c0_86 = arith.constant 0 : index
      %c0_87 = arith.constant 0 : index
      %156 = vector.load %arg11[%c0_86, %c0_87] : memref<2x32xf32, #tpu.memory_space<vmem>>, vector<2x32xf32>
      tpu.vector_store %arg11[%c0_86, %c0_87], %89 {strides = array<i32>} : memref<2x32xf32, #tpu.memory_space<vmem>>, vector<2x32xf32>,
      %c0_88 = arith.constant 0 : index
      %c0_89 = arith.constant 0 : index
      %157 = vector.load %arg12[%c0_88, %c0_89] : memref<2x32xf32, #tpu.memory_space<vmem>>, vector<2x32xf32>
      tpu.vector_store %arg12[%c0_88, %c0_89], %87 {strides = array<i32>} : memref<2x32xf32, #tpu.memory_space<vmem>>, vector<2x32xf32>,
      %c0_90 = arith.constant 0 : index
      %c0_91 = arith.constant 0 : index
      %158 = vector.load %arg13[%c0_90, %c0_91] : memref<2x1xf32, #tpu.memory_space<vmem>>, vector<2x1xf32>
      tpu.vector_store %arg13[%c0_90, %c0_91], %77 {strides = array<i32>} : memref<2x1xf32, #tpu.memory_space<vmem>>, vector<2x1xf32>,
      %c0_92 = arith.constant 0 : index
      %c0_93 = arith.constant 0 : index
      %159 = vector.load %arg14[%c0_92, %c0_93] : memref<2x32xf32, #tpu.memory_space<vmem>>, vector<2x32xf32>
      tpu.vector_store %arg14[%c0_92, %c0_93], %155 {strides = array<i32>} : memref<2x32xf32, #tpu.memory_space<vmem>>, vector<2x32xf32>,
      %c0_94 = arith.constant 0 : index
      %c0_95 = arith.constant 0 : index
      %160 = vector.load %arg15[%c0_94, %c0_95] : memref<2x32xf32, #tpu.memory_space<vmem>>, vector<2x32xf32>
      tpu.vector_store %arg15[%c0_94, %c0_95], %139 {strides = array<i32>} : memref<2x32xf32, #tpu.memory_space<vmem>>, vector<2x32xf32>,
      %c0_96 = arith.constant 0 : index
      %c0_97 = arith.constant 0 : index
      %161 = vector.load %arg16[%c0_96, %c0_97] : memref<2x1xf32, #tpu.memory_space<vmem>>, vector<2x1xf32>
      tpu.vector_store %arg16[%c0_96, %c0_97], %122 {strides = array<i32>} : memref<2x1xf32, #tpu.memory_space<vmem>>, vector<2x1xf32>,
      %162 = vector.broadcast %122 : vector<2x1xf32> to vector<2x32xf32>
      %163 = arith.mulf %155, %162 : vector<2x32xf32>
      %c0_98 = arith.constant 0 : index
      %164 = arith.index_cast %36 : i32 to index
      %c0_99 = arith.constant 0 : index
      %c0_100 = arith.constant 0 : index
      %165 = vector.load %arg9[%c0_98, %164, %c0_99, %c0_100] : memref<1x8x2x32xf32, #tpu.memory_space<vmem>>, vector<1x1x2x32xf32>
      %166 = vector.shape_cast %165 : vector<1x1x2x32xf32> to vector<2x32xf32>
      %167 = vector.shape_cast %163 : vector<2x32xf32> to vector<1x1x2x32xf32>
      tpu.vector_store %arg9[%c0_98, %164, %c0_99, %c0_100], %167 {strides = array<i32>} : memref<1x8x2x32xf32, #tpu.memory_space<vmem>>, vector<1x1x2x32xf32>,
    }
    %c8_i32_45 = arith.constant 8 : i32
    return
  }
  func.func @transform_0(%arg0: i32) -> (i32, i32, i32, i32) {
    %c0_i32 = arith.constant 0 : i32
    %c0_i32_0 = arith.constant 0 : i32
    %c0_i32_1 = arith.constant 0 : i32
    %c0_i32_2 = arith.constant 0 : i32
    return %arg0, %c0_i32, %c0_i32_0, %c0_i32_1 : i32, i32, i32, i32
  }
  func.func @transform_1(%arg0: i32) -> (i32, i32, i32) {
    %c0_i32 = arith.constant 0 : i32
    %c0_i32_0 = arith.constant 0 : i32
    %c0_i32_1 = arith.constant 0 : i32
    return %arg0, %c0_i32, %c0_i32_0 : i32, i32, i32
  }
  func.func @transform_2(%arg0: i32) -> (i32, i32, i32) {
    %c0_i32 = arith.constant 0 : i32
    %c0_i32_0 = arith.constant 0 : i32
    %c0_i32_1 = arith.constant 0 : i32
    return %arg0, %c0_i32, %c0_i32_0 : i32, i32, i32
  }
  func.func @transform_3(%arg0: i32) -> (i32, i32, i32) {
    %c0_i32 = arith.constant 0 : i32
    %c0_i32_0 = arith.constant 0 : i32
    %c0_i32_1 = arith.constant 0 : i32
    return %arg0, %c0_i32, %c0_i32_0 : i32, i32, i32
  }
  func.func @transform_4(%arg0: i32) -> (i32, i32, i32) {
    %c0_i32 = arith.constant 0 : i32
    %c0_i32_0 = arith.constant 0 : i32
    %c0_i32_1 = arith.constant 0 : i32
    return %arg0, %c0_i32, %c0_i32_0 : i32, i32, i32
  }
  func.func @transform_5(%arg0: i32) -> (i32, i32, i32) {
    %c0_i32 = arith.constant 0 : i32
    %c0_i32_0 = arith.constant 0 : i32
    %c0_i32_1 = arith.constant 0 : i32
    return %arg0, %c0_i32, %c0_i32_0 : i32, i32, i32
  }
  func.func @transform_6(%arg0: i32) -> (i32, i32, i32) {
    %c0_i32 = arith.constant 0 : i32
    %c0_i32_0 = arith.constant 0 : i32
    %c0_i32_1 = arith.constant 0 : i32
    return %arg0, %c0_i32, %c0_i32_0 : i32, i32, i32
  }
  func.func @transform_7(%arg0: i32) -> (i32, i32, i32) {
    %c0_i32 = arith.constant 0 : i32
    %c0_i32_0 = arith.constant 0 : i32
    %c0_i32_1 = arith.constant 0 : i32
    return %arg0, %c0_i32, %c0_i32_0 : i32, i32, i32
  }
  func.func @transform_8(%arg0: i32) -> (i32, i32, i32, i32) {
    %c0_i32 = arith.constant 0 : i32
    %c0_i32_0 = arith.constant 0 : i32
    %c0_i32_1 = arith.constant 0 : i32
    %c0_i32_2 = arith.constant 0 : i32
    return %arg0, %c0_i32, %c0_i32_0, %c0_i32_1 : i32, i32, i32, i32
  }
}

module attributes {stable_mosaic.version = 11 : i64} {
  func.func @_rotary_layer_kernel(%arg0: i32, %arg1: memref<1x2x8x32xf32, #tpu.memory_space<vmem>>, %arg2: memref<8x4xf32, #tpu.memory_space<vmem>>, %arg3: memref<8x4xf32, #tpu.memory_space<vmem>>, %arg4: memref<1x1x32xf32, #tpu.memory_space<vmem>>, %arg5: memref<1x32x96xf32, #tpu.memory_space<vmem>>, %arg6: memref<1x1x96xf32, #tpu.memory_space<vmem>>, %arg7: memref<1x32x32xf32, #tpu.memory_space<vmem>>, %arg8: memref<1x1x32xf32, #tpu.memory_space<vmem>>, %arg9: memref<1x1x32xf32, #tpu.memory_space<vmem>>, %arg10: memref<1x32x128xf32, #tpu.memory_space<vmem>>, %arg11: memref<1x1x128xf32, #tpu.memory_space<vmem>>, %arg12: memref<1x128x32xf32, #tpu.memory_space<vmem>>, %arg13: memref<1x1x32xf32, #tpu.memory_space<vmem>>, %arg14: memref<1x2x8x32xf32, #tpu.memory_space<vmem>>) attributes {dimension_semantics = [#tpu.dimension_semantics<parallel>], iteration_bounds = array<i64: 2>, scalar_prefetch = 0 : i64, scratch_operands = 0 : i64, tpu.core_type = #tpu.core_type<tc>, window_params = [{transform_indices = @transform_0, window_bounds = array<i64: 1, 2, 8, 32>}, {pipeline_mode = #tpu.pipeline_mode<synchronous>, transform_indices = @transform_1, window_bounds = array<i64: 8, 4>}, {pipeline_mode = #tpu.pipeline_mode<synchronous>, transform_indices = @transform_2, window_bounds = array<i64: 8, 4>}, {transform_indices = @transform_3, window_bounds = array<i64: 1, 1, 32>}, {transform_indices = @transform_4, window_bounds = array<i64: 1, 32, 96>}, {transform_indices = @transform_5, window_bounds = array<i64: 1, 1, 96>}, {transform_indices = @transform_6, window_bounds = array<i64: 1, 32, 32>}, {transform_indices = @transform_7, window_bounds = array<i64: 1, 1, 32>}, {transform_indices = @transform_8, window_bounds = array<i64: 1, 1, 32>}, {transform_indices = @transform_9, window_bounds = array<i64: 1, 32, 128>}, {transform_indices = @transform_10, window_bounds = array<i64: 1, 1, 128>}, {transform_indices = @transform_11, window_bounds = array<i64: 1, 128, 32>}, {transform_indices = @transform_12, window_bounds = array<i64: 1, 1, 32>}, {transform_indices = @transform_13, window_bounds = array<i64: 1, 2, 8, 32>}]} {
    %c0 = arith.constant 0 : index
    %c0_0 = arith.constant 0 : index
    %c0_1 = arith.constant 0 : index
    %c0_2 = arith.constant 0 : index
    %0 = vector.load %arg1[%c0, %c0_0, %c0_1, %c0_2] : memref<1x2x8x32xf32, #tpu.memory_space<vmem>>, vector<1x2x8x32xf32>
    %1 = vector.shape_cast %0 : vector<1x2x8x32xf32> to vector<2x8x32xf32>
    %2 = vector.shape_cast %1 : vector<2x8x32xf32> to vector<16x32xf32>
    %3 = arith.mulf %2, %2 : vector<16x32xf32>
    %cst = arith.constant dense<0.000000e+00> : vector<16xf32>
    %4 = vector.multi_reduction <add>, %3, %cst [1] : vector<16x32xf32> to vector<16xf32>
    %5 = vector.shape_cast %4 : vector<16xf32> to vector<16x1xf32>
    %cst_3 = arith.constant 3.200000e+01 : f32
    %6 = vector.broadcast %cst_3 : f32 to vector<16x1xf32>
    %7 = arith.divf %5, %6 : vector<16x1xf32>
    %cst_4 = arith.constant 9.99999974E-5 : f32
    %8 = vector.broadcast %cst_4 : f32 to vector<16x1xf32>
    %9 = arith.addf %7, %8 : vector<16x1xf32>
    %10 = math.rsqrt %9 : vector<16x1xf32>
    %11 = vector.broadcast %10 : vector<16x1xf32> to vector<16x32xf32>
    %12 = arith.mulf %2, %11 : vector<16x32xf32>
    %c0_5 = arith.constant 0 : index
    %c0_6 = arith.constant 0 : index
    %c0_7 = arith.constant 0 : index
    %13 = vector.load %arg4[%c0_5, %c0_6, %c0_7] : memref<1x1x32xf32, #tpu.memory_space<vmem>>, vector<1x1x32xf32>
    %14 = vector.shape_cast %13 : vector<1x1x32xf32> to vector<1x32xf32>
    %15 = vector.broadcast %14 : vector<1x32xf32> to vector<16x32xf32>
    %16 = arith.mulf %12, %15 : vector<16x32xf32>
    %c0_8 = arith.constant 0 : index
    %c0_9 = arith.constant 0 : index
    %c0_10 = arith.constant 0 : index
    %17 = vector.load %arg5[%c0_8, %c0_9, %c0_10] : memref<1x32x96xf32, #tpu.memory_space<vmem>>, vector<1x32x96xf32>
    %18 = vector.shape_cast %17 : vector<1x32x96xf32> to vector<32x96xf32>
    %cst_11 = arith.constant dense<0.000000e+00> : vector<16x96xf32>
    %19 = tpu.matmul %16, %18, %cst_11 {dimension_numbers = #tpu.dot_dimension_numbers<[1], [0], [0], [1], [0, 0, 1, 1], [], []>} : vector<16x32xf32>, vector<32x96xf32>, vector<16x96xf32> -> vector<16x96xf32>
    %c0_12 = arith.constant 0 : index
    %c0_13 = arith.constant 0 : index
    %c0_14 = arith.constant 0 : index
    %20 = vector.load %arg6[%c0_12, %c0_13, %c0_14] : memref<1x1x96xf32, #tpu.memory_space<vmem>>, vector<1x1x96xf32>
    %21 = vector.shape_cast %20 : vector<1x1x96xf32> to vector<1x96xf32>
    %22 = vector.broadcast %21 : vector<1x96xf32> to vector<16x96xf32>
    %23 = arith.addf %19, %22 : vector<16x96xf32>
    %24 = vector.extract_strided_slice %23 {offsets = [0, 0], sizes = [16, 32], strides = [1, 1]} : vector<16x96xf32> to vector<16x32xf32>
    %25 = vector.shape_cast %24 : vector<16x32xf32> to vector<2x8x32xf32>
    %26 = vector.extract_strided_slice %23 {offsets = [0, 32], sizes = [16, 32], strides = [1, 1]} : vector<16x96xf32> to vector<16x32xf32>
    %27 = vector.shape_cast %26 : vector<16x32xf32> to vector<2x8x32xf32>
    %28 = vector.extract_strided_slice %23 {offsets = [0, 64], sizes = [16, 32], strides = [1, 1]} : vector<16x96xf32> to vector<16x32xf32>
    %29 = vector.shape_cast %28 : vector<16x32xf32> to vector<2x8x32xf32>
    %c0_15 = arith.constant 0 : index
    %c0_16 = arith.constant 0 : index
    %30 = vector.load %arg2[%c0_15, %c0_16] : memref<8x4xf32, #tpu.memory_space<vmem>>, vector<8x4xf32>
    %31 = vector.shape_cast %30 : vector<8x4xf32> to vector<1x8x4xf32>
    %c0_17 = arith.constant 0 : index
    %c0_18 = arith.constant 0 : index
    %32 = vector.load %arg3[%c0_17, %c0_18] : memref<8x4xf32, #tpu.memory_space<vmem>>, vector<8x4xf32>
    %33 = vector.shape_cast %32 : vector<8x4xf32> to vector<1x8x4xf32>
    %34 = vector.extract_strided_slice %25 {offsets = [0, 0, 0], sizes = [2, 8, 8], strides = [1, 1, 1]} : vector<2x8x32xf32> to vector<2x8x8xf32>
    %35 = vector.extract_strided_slice %34 {offsets = [0, 0, 0], sizes = [2, 8, 4], strides = [1, 1, 1]} : vector<2x8x8xf32> to vector<2x8x4xf32>
    %36 = vector.extract_strided_slice %34 {offsets = [0, 0, 4], sizes = [2, 8, 4], strides = [1, 1, 1]} : vector<2x8x8xf32> to vector<2x8x4xf32>
    %37 = vector.broadcast %33 : vector<1x8x4xf32> to vector<2x8x4xf32>
    %38 = arith.mulf %35, %37 : vector<2x8x4xf32>
    %39 = vector.broadcast %31 : vector<1x8x4xf32> to vector<2x8x4xf32>
    %40 = arith.mulf %36, %39 : vector<2x8x4xf32>
    %41 = arith.subf %38, %40 : vector<2x8x4xf32>
    %42 = vector.broadcast %31 : vector<1x8x4xf32> to vector<2x8x4xf32>
    %43 = arith.mulf %35, %42 : vector<2x8x4xf32>
    %44 = vector.broadcast %33 : vector<1x8x4xf32> to vector<2x8x4xf32>
    %45 = arith.mulf %36, %44 : vector<2x8x4xf32>
    %46 = arith.addf %43, %45 : vector<2x8x4xf32>
    %47 = tpu.concatenate %41, %46 in 2 : vector<2x8x4xf32>, vector<2x8x4xf32> -> vector<2x8x8xf32>
    %48 = vector.extract_strided_slice %27 {offsets = [0, 0, 0], sizes = [2, 8, 8], strides = [1, 1, 1]} : vector<2x8x32xf32> to vector<2x8x8xf32>
    %49 = vector.extract_strided_slice %48 {offsets = [0, 0, 0], sizes = [2, 8, 4], strides = [1, 1, 1]} : vector<2x8x8xf32> to vector<2x8x4xf32>
    %50 = vector.extract_strided_slice %48 {offsets = [0, 0, 4], sizes = [2, 8, 4], strides = [1, 1, 1]} : vector<2x8x8xf32> to vector<2x8x4xf32>
    %51 = vector.broadcast %33 : vector<1x8x4xf32> to vector<2x8x4xf32>
    %52 = arith.mulf %49, %51 : vector<2x8x4xf32>
    %53 = vector.broadcast %31 : vector<1x8x4xf32> to vector<2x8x4xf32>
    %54 = arith.mulf %50, %53 : vector<2x8x4xf32>
    %55 = arith.subf %52, %54 : vector<2x8x4xf32>
    %56 = vector.broadcast %31 : vector<1x8x4xf32> to vector<2x8x4xf32>
    %57 = arith.mulf %49, %56 : vector<2x8x4xf32>
    %58 = vector.broadcast %33 : vector<1x8x4xf32> to vector<2x8x4xf32>
    %59 = arith.mulf %50, %58 : vector<2x8x4xf32>
    %60 = arith.addf %57, %59 : vector<2x8x4xf32>
    %61 = tpu.concatenate %55, %60 in 2 : vector<2x8x4xf32>, vector<2x8x4xf32> -> vector<2x8x8xf32>
    %62 = vector.extract_strided_slice %29 {offsets = [0, 0, 0], sizes = [2, 8, 8], strides = [1, 1, 1]} : vector<2x8x32xf32> to vector<2x8x8xf32>
    "tpu.trace_start"() <{level = 10 : i32, message = "bqd,bkd->bqk"}> : () -> ()
    %cst_19 = arith.constant dense<0.000000e+00> : vector<2x8x8xf32>
    %63 = tpu.matmul %47, %61, %cst_19 {dimension_numbers = #tpu.dot_dimension_numbers<[2], [2], [1], [1], [0, 0, 0, 1, 1, 1], [0], [0]>} : vector<2x8x8xf32>, vector<2x8x8xf32>, vector<2x8x8xf32> -> vector<2x8x8xf32>
    "tpu.trace_stop"() : () -> ()
    %cst_20 = arith.constant 0.353553385 : f32
    %64 = vector.broadcast %cst_20 : f32 to vector<2x8x8xf32>
    %65 = arith.mulf %63, %64 : vector<2x8x8xf32>
    %cst_21 = arith.constant dense<0xFF800000> : vector<2x8xf32>
    %66 = vector.multi_reduction <maximumf>, %65, %cst_21 [2] : vector<2x8x8xf32> to vector<2x8xf32>
    %67 = vector.shape_cast %66 : vector<2x8xf32> to vector<2x8x1xf32>
    %68 = vector.broadcast %67 : vector<2x8x1xf32> to vector<2x8x8xf32>
    %69 = arith.subf %65, %68 : vector<2x8x8xf32>
    %70 = math.exp %69 : vector<2x8x8xf32>
    %cst_22 = arith.constant dense<0.000000e+00> : vector<2x8xf32>
    %71 = vector.multi_reduction <add>, %70, %cst_22 [2] : vector<2x8x8xf32> to vector<2x8xf32>
    %72 = vector.shape_cast %71 : vector<2x8xf32> to vector<2x8x1xf32>
    %73 = tpu.reciprocal %72 {approx = true} : vector<2x8x1xf32> -> vector<2x8x1xf32>
    %74 = vector.broadcast %73 : vector<2x8x1xf32> to vector<2x8x8xf32>
    %75 = arith.mulf %70, %74 : vector<2x8x8xf32>
    "tpu.trace_start"() <{level = 10 : i32, message = "bqk,bkd->bqd"}> : () -> ()
    %cst_23 = arith.constant dense<0.000000e+00> : vector<2x8x8xf32>
    %76 = tpu.matmul %75, %62, %cst_23 {dimension_numbers = #tpu.dot_dimension_numbers<[2], [1], [1], [2], [0, 0, 0, 1, 1, 2], [0], [0]>} : vector<2x8x8xf32>, vector<2x8x8xf32>, vector<2x8x8xf32> -> vector<2x8x8xf32>
    "tpu.trace_stop"() : () -> ()
    %77 = vector.extract_strided_slice %25 {offsets = [0, 0, 8], sizes = [2, 8, 8], strides = [1, 1, 1]} : vector<2x8x32xf32> to vector<2x8x8xf32>
    %78 = vector.extract_strided_slice %77 {offsets = [0, 0, 0], sizes = [2, 8, 4], strides = [1, 1, 1]} : vector<2x8x8xf32> to vector<2x8x4xf32>
    %79 = vector.extract_strided_slice %77 {offsets = [0, 0, 4], sizes = [2, 8, 4], strides = [1, 1, 1]} : vector<2x8x8xf32> to vector<2x8x4xf32>
    %80 = vector.broadcast %33 : vector<1x8x4xf32> to vector<2x8x4xf32>
    %81 = arith.mulf %78, %80 : vector<2x8x4xf32>
    %82 = vector.broadcast %31 : vector<1x8x4xf32> to vector<2x8x4xf32>
    %83 = arith.mulf %79, %82 : vector<2x8x4xf32>
    %84 = arith.subf %81, %83 : vector<2x8x4xf32>
    %85 = vector.broadcast %31 : vector<1x8x4xf32> to vector<2x8x4xf32>
    %86 = arith.mulf %78, %85 : vector<2x8x4xf32>
    %87 = vector.broadcast %33 : vector<1x8x4xf32> to vector<2x8x4xf32>
    %88 = arith.mulf %79, %87 : vector<2x8x4xf32>
    %89 = arith.addf %86, %88 : vector<2x8x4xf32>
    %90 = tpu.concatenate %84, %89 in 2 : vector<2x8x4xf32>, vector<2x8x4xf32> -> vector<2x8x8xf32>
    %91 = vector.extract_strided_slice %27 {offsets = [0, 0, 8], sizes = [2, 8, 8], strides = [1, 1, 1]} : vector<2x8x32xf32> to vector<2x8x8xf32>
    %92 = vector.extract_strided_slice %91 {offsets = [0, 0, 0], sizes = [2, 8, 4], strides = [1, 1, 1]} : vector<2x8x8xf32> to vector<2x8x4xf32>
    %93 = vector.extract_strided_slice %91 {offsets = [0, 0, 4], sizes = [2, 8, 4], strides = [1, 1, 1]} : vector<2x8x8xf32> to vector<2x8x4xf32>
    %94 = vector.broadcast %33 : vector<1x8x4xf32> to vector<2x8x4xf32>
    %95 = arith.mulf %92, %94 : vector<2x8x4xf32>
    %96 = vector.broadcast %31 : vector<1x8x4xf32> to vector<2x8x4xf32>
    %97 = arith.mulf %93, %96 : vector<2x8x4xf32>
    %98 = arith.subf %95, %97 : vector<2x8x4xf32>
    %99 = vector.broadcast %31 : vector<1x8x4xf32> to vector<2x8x4xf32>
    %100 = arith.mulf %92, %99 : vector<2x8x4xf32>
    %101 = vector.broadcast %33 : vector<1x8x4xf32> to vector<2x8x4xf32>
    %102 = arith.mulf %93, %101 : vector<2x8x4xf32>
    %103 = arith.addf %100, %102 : vector<2x8x4xf32>
    %104 = tpu.concatenate %98, %103 in 2 : vector<2x8x4xf32>, vector<2x8x4xf32> -> vector<2x8x8xf32>
    %105 = vector.extract_strided_slice %29 {offsets = [0, 0, 8], sizes = [2, 8, 8], strides = [1, 1, 1]} : vector<2x8x32xf32> to vector<2x8x8xf32>
    "tpu.trace_start"() <{level = 10 : i32, message = "bqd,bkd->bqk"}> : () -> ()
    %cst_24 = arith.constant dense<0.000000e+00> : vector<2x8x8xf32>
    %106 = tpu.matmul %90, %104, %cst_24 {dimension_numbers = #tpu.dot_dimension_numbers<[2], [2], [1], [1], [0, 0, 0, 1, 1, 1], [0], [0]>} : vector<2x8x8xf32>, vector<2x8x8xf32>, vector<2x8x8xf32> -> vector<2x8x8xf32>
    "tpu.trace_stop"() : () -> ()
    %cst_25 = arith.constant 0.353553385 : f32
    %107 = vector.broadcast %cst_25 : f32 to vector<2x8x8xf32>
    %108 = arith.mulf %106, %107 : vector<2x8x8xf32>
    %cst_26 = arith.constant dense<0xFF800000> : vector<2x8xf32>
    %109 = vector.multi_reduction <maximumf>, %108, %cst_26 [2] : vector<2x8x8xf32> to vector<2x8xf32>
    %110 = vector.shape_cast %109 : vector<2x8xf32> to vector<2x8x1xf32>
    %111 = vector.broadcast %110 : vector<2x8x1xf32> to vector<2x8x8xf32>
    %112 = arith.subf %108, %111 : vector<2x8x8xf32>
    %113 = math.exp %112 : vector<2x8x8xf32>
    %cst_27 = arith.constant dense<0.000000e+00> : vector<2x8xf32>
    %114 = vector.multi_reduction <add>, %113, %cst_27 [2] : vector<2x8x8xf32> to vector<2x8xf32>
    %115 = vector.shape_cast %114 : vector<2x8xf32> to vector<2x8x1xf32>
    %116 = tpu.reciprocal %115 {approx = true} : vector<2x8x1xf32> -> vector<2x8x1xf32>
    %117 = vector.broadcast %116 : vector<2x8x1xf32> to vector<2x8x8xf32>
    %118 = arith.mulf %113, %117 : vector<2x8x8xf32>
    "tpu.trace_start"() <{level = 10 : i32, message = "bqk,bkd->bqd"}> : () -> ()
    %cst_28 = arith.constant dense<0.000000e+00> : vector<2x8x8xf32>
    %119 = tpu.matmul %118, %105, %cst_28 {dimension_numbers = #tpu.dot_dimension_numbers<[2], [1], [1], [2], [0, 0, 0, 1, 1, 2], [0], [0]>} : vector<2x8x8xf32>, vector<2x8x8xf32>, vector<2x8x8xf32> -> vector<2x8x8xf32>
    "tpu.trace_stop"() : () -> ()
    %120 = vector.extract_strided_slice %25 {offsets = [0, 0, 16], sizes = [2, 8, 8], strides = [1, 1, 1]} : vector<2x8x32xf32> to vector<2x8x8xf32>
    %121 = vector.extract_strided_slice %120 {offsets = [0, 0, 0], sizes = [2, 8, 4], strides = [1, 1, 1]} : vector<2x8x8xf32> to vector<2x8x4xf32>
    %122 = vector.extract_strided_slice %120 {offsets = [0, 0, 4], sizes = [2, 8, 4], strides = [1, 1, 1]} : vector<2x8x8xf32> to vector<2x8x4xf32>
    %123 = vector.broadcast %33 : vector<1x8x4xf32> to vector<2x8x4xf32>
    %124 = arith.mulf %121, %123 : vector<2x8x4xf32>
    %125 = vector.broadcast %31 : vector<1x8x4xf32> to vector<2x8x4xf32>
    %126 = arith.mulf %122, %125 : vector<2x8x4xf32>
    %127 = arith.subf %124, %126 : vector<2x8x4xf32>
    %128 = vector.broadcast %31 : vector<1x8x4xf32> to vector<2x8x4xf32>
    %129 = arith.mulf %121, %128 : vector<2x8x4xf32>
    %130 = vector.broadcast %33 : vector<1x8x4xf32> to vector<2x8x4xf32>
    %131 = arith.mulf %122, %130 : vector<2x8x4xf32>
    %132 = arith.addf %129, %131 : vector<2x8x4xf32>
    %133 = tpu.concatenate %127, %132 in 2 : vector<2x8x4xf32>, vector<2x8x4xf32> -> vector<2x8x8xf32>
    %134 = vector.extract_strided_slice %27 {offsets = [0, 0, 16], sizes = [2, 8, 8], strides = [1, 1, 1]} : vector<2x8x32xf32> to vector<2x8x8xf32>
    %135 = vector.extract_strided_slice %134 {offsets = [0, 0, 0], sizes = [2, 8, 4], strides = [1, 1, 1]} : vector<2x8x8xf32> to vector<2x8x4xf32>
    %136 = vector.extract_strided_slice %134 {offsets = [0, 0, 4], sizes = [2, 8, 4], strides = [1, 1, 1]} : vector<2x8x8xf32> to vector<2x8x4xf32>
    %137 = vector.broadcast %33 : vector<1x8x4xf32> to vector<2x8x4xf32>
    %138 = arith.mulf %135, %137 : vector<2x8x4xf32>
    %139 = vector.broadcast %31 : vector<1x8x4xf32> to vector<2x8x4xf32>
    %140 = arith.mulf %136, %139 : vector<2x8x4xf32>
    %141 = arith.subf %138, %140 : vector<2x8x4xf32>
    %142 = vector.broadcast %31 : vector<1x8x4xf32> to vector<2x8x4xf32>
    %143 = arith.mulf %135, %142 : vector<2x8x4xf32>
    %144 = vector.broadcast %33 : vector<1x8x4xf32> to vector<2x8x4xf32>
    %145 = arith.mulf %136, %144 : vector<2x8x4xf32>
    %146 = arith.addf %143, %145 : vector<2x8x4xf32>
    %147 = tpu.concatenate %141, %146 in 2 : vector<2x8x4xf32>, vector<2x8x4xf32> -> vector<2x8x8xf32>
    %148 = vector.extract_strided_slice %29 {offsets = [0, 0, 16], sizes = [2, 8, 8], strides = [1, 1, 1]} : vector<2x8x32xf32> to vector<2x8x8xf32>
    "tpu.trace_start"() <{level = 10 : i32, message = "bqd,bkd->bqk"}> : () -> ()
    %cst_29 = arith.constant dense<0.000000e+00> : vector<2x8x8xf32>
    %149 = tpu.matmul %133, %147, %cst_29 {dimension_numbers = #tpu.dot_dimension_numbers<[2], [2], [1], [1], [0, 0, 0, 1, 1, 1], [0], [0]>} : vector<2x8x8xf32>, vector<2x8x8xf32>, vector<2x8x8xf32> -> vector<2x8x8xf32>
    "tpu.trace_stop"() : () -> ()
    %cst_30 = arith.constant 0.353553385 : f32
    %150 = vector.broadcast %cst_30 : f32 to vector<2x8x8xf32>
    %151 = arith.mulf %149, %150 : vector<2x8x8xf32>
    %cst_31 = arith.constant dense<0xFF800000> : vector<2x8xf32>
    %152 = vector.multi_reduction <maximumf>, %151, %cst_31 [2] : vector<2x8x8xf32> to vector<2x8xf32>
    %153 = vector.shape_cast %152 : vector<2x8xf32> to vector<2x8x1xf32>
    %154 = vector.broadcast %153 : vector<2x8x1xf32> to vector<2x8x8xf32>
    %155 = arith.subf %151, %154 : vector<2x8x8xf32>
    %156 = math.exp %155 : vector<2x8x8xf32>
    %cst_32 = arith.constant dense<0.000000e+00> : vector<2x8xf32>
    %157 = vector.multi_reduction <add>, %156, %cst_32 [2] : vector<2x8x8xf32> to vector<2x8xf32>
    %158 = vector.shape_cast %157 : vector<2x8xf32> to vector<2x8x1xf32>
    %159 = tpu.reciprocal %158 {approx = true} : vector<2x8x1xf32> -> vector<2x8x1xf32>
    %160 = vector.broadcast %159 : vector<2x8x1xf32> to vector<2x8x8xf32>
    %161 = arith.mulf %156, %160 : vector<2x8x8xf32>
    "tpu.trace_start"() <{level = 10 : i32, message = "bqk,bkd->bqd"}> : () -> ()
    %cst_33 = arith.constant dense<0.000000e+00> : vector<2x8x8xf32>
    %162 = tpu.matmul %161, %148, %cst_33 {dimension_numbers = #tpu.dot_dimension_numbers<[2], [1], [1], [2], [0, 0, 0, 1, 1, 2], [0], [0]>} : vector<2x8x8xf32>, vector<2x8x8xf32>, vector<2x8x8xf32> -> vector<2x8x8xf32>
    "tpu.trace_stop"() : () -> ()
    %163 = vector.extract_strided_slice %25 {offsets = [0, 0, 24], sizes = [2, 8, 8], strides = [1, 1, 1]} : vector<2x8x32xf32> to vector<2x8x8xf32>
    %164 = vector.extract_strided_slice %163 {offsets = [0, 0, 0], sizes = [2, 8, 4], strides = [1, 1, 1]} : vector<2x8x8xf32> to vector<2x8x4xf32>
    %165 = vector.extract_strided_slice %163 {offsets = [0, 0, 4], sizes = [2, 8, 4], strides = [1, 1, 1]} : vector<2x8x8xf32> to vector<2x8x4xf32>
    %166 = vector.broadcast %33 : vector<1x8x4xf32> to vector<2x8x4xf32>
    %167 = arith.mulf %164, %166 : vector<2x8x4xf32>
    %168 = vector.broadcast %31 : vector<1x8x4xf32> to vector<2x8x4xf32>
    %169 = arith.mulf %165, %168 : vector<2x8x4xf32>
    %170 = arith.subf %167, %169 : vector<2x8x4xf32>
    %171 = vector.broadcast %31 : vector<1x8x4xf32> to vector<2x8x4xf32>
    %172 = arith.mulf %164, %171 : vector<2x8x4xf32>
    %173 = vector.broadcast %33 : vector<1x8x4xf32> to vector<2x8x4xf32>
    %174 = arith.mulf %165, %173 : vector<2x8x4xf32>
    %175 = arith.addf %172, %174 : vector<2x8x4xf32>
    %176 = tpu.concatenate %170, %175 in 2 : vector<2x8x4xf32>, vector<2x8x4xf32> -> vector<2x8x8xf32>
    %177 = vector.extract_strided_slice %27 {offsets = [0, 0, 24], sizes = [2, 8, 8], strides = [1, 1, 1]} : vector<2x8x32xf32> to vector<2x8x8xf32>
    %178 = vector.extract_strided_slice %177 {offsets = [0, 0, 0], sizes = [2, 8, 4], strides = [1, 1, 1]} : vector<2x8x8xf32> to vector<2x8x4xf32>
    %179 = vector.extract_strided_slice %177 {offsets = [0, 0, 4], sizes = [2, 8, 4], strides = [1, 1, 1]} : vector<2x8x8xf32> to vector<2x8x4xf32>
    %180 = vector.broadcast %33 : vector<1x8x4xf32> to vector<2x8x4xf32>
    %181 = arith.mulf %178, %180 : vector<2x8x4xf32>
    %182 = vector.broadcast %31 : vector<1x8x4xf32> to vector<2x8x4xf32>
    %183 = arith.mulf %179, %182 : vector<2x8x4xf32>
    %184 = arith.subf %181, %183 : vector<2x8x4xf32>
    %185 = vector.broadcast %31 : vector<1x8x4xf32> to vector<2x8x4xf32>
    %186 = arith.mulf %178, %185 : vector<2x8x4xf32>
    %187 = vector.broadcast %33 : vector<1x8x4xf32> to vector<2x8x4xf32>
    %188 = arith.mulf %179, %187 : vector<2x8x4xf32>
    %189 = arith.addf %186, %188 : vector<2x8x4xf32>
    %190 = tpu.concatenate %184, %189 in 2 : vector<2x8x4xf32>, vector<2x8x4xf32> -> vector<2x8x8xf32>
    %191 = vector.extract_strided_slice %29 {offsets = [0, 0, 24], sizes = [2, 8, 8], strides = [1, 1, 1]} : vector<2x8x32xf32> to vector<2x8x8xf32>
    "tpu.trace_start"() <{level = 10 : i32, message = "bqd,bkd->bqk"}> : () -> ()
    %cst_34 = arith.constant dense<0.000000e+00> : vector<2x8x8xf32>
    %192 = tpu.matmul %176, %190, %cst_34 {dimension_numbers = #tpu.dot_dimension_numbers<[2], [2], [1], [1], [0, 0, 0, 1, 1, 1], [0], [0]>} : vector<2x8x8xf32>, vector<2x8x8xf32>, vector<2x8x8xf32> -> vector<2x8x8xf32>
    "tpu.trace_stop"() : () -> ()
    %cst_35 = arith.constant 0.353553385 : f32
    %193 = vector.broadcast %cst_35 : f32 to vector<2x8x8xf32>
    %194 = arith.mulf %192, %193 : vector<2x8x8xf32>
    %cst_36 = arith.constant dense<0xFF800000> : vector<2x8xf32>
    %195 = vector.multi_reduction <maximumf>, %194, %cst_36 [2] : vector<2x8x8xf32> to vector<2x8xf32>
    %196 = vector.shape_cast %195 : vector<2x8xf32> to vector<2x8x1xf32>
    %197 = vector.broadcast %196 : vector<2x8x1xf32> to vector<2x8x8xf32>
    %198 = arith.subf %194, %197 : vector<2x8x8xf32>
    %199 = math.exp %198 : vector<2x8x8xf32>
    %cst_37 = arith.constant dense<0.000000e+00> : vector<2x8xf32>
    %200 = vector.multi_reduction <add>, %199, %cst_37 [2] : vector<2x8x8xf32> to vector<2x8xf32>
    %201 = vector.shape_cast %200 : vector<2x8xf32> to vector<2x8x1xf32>
    %202 = tpu.reciprocal %201 {approx = true} : vector<2x8x1xf32> -> vector<2x8x1xf32>
    %203 = vector.broadcast %202 : vector<2x8x1xf32> to vector<2x8x8xf32>
    %204 = arith.mulf %199, %203 : vector<2x8x8xf32>
    "tpu.trace_start"() <{level = 10 : i32, message = "bqk,bkd->bqd"}> : () -> ()
    %cst_38 = arith.constant dense<0.000000e+00> : vector<2x8x8xf32>
    %205 = tpu.matmul %204, %191, %cst_38 {dimension_numbers = #tpu.dot_dimension_numbers<[2], [1], [1], [2], [0, 0, 0, 1, 1, 2], [0], [0]>} : vector<2x8x8xf32>, vector<2x8x8xf32>, vector<2x8x8xf32> -> vector<2x8x8xf32>
    "tpu.trace_stop"() : () -> ()
    %206 = tpu.concatenate %76, %119, %162, %205 in 2 : vector<2x8x8xf32>, vector<2x8x8xf32>, vector<2x8x8xf32>, vector<2x8x8xf32> -> vector<2x8x32xf32>
    %207 = vector.shape_cast %206 : vector<2x8x32xf32> to vector<16x32xf32>
    %c0_39 = arith.constant 0 : index
    %c0_40 = arith.constant 0 : index
    %c0_41 = arith.constant 0 : index
    %208 = vector.load %arg7[%c0_39, %c0_40, %c0_41] : memref<1x32x32xf32, #tpu.memory_space<vmem>>, vector<1x32x32xf32>
    %209 = vector.shape_cast %208 : vector<1x32x32xf32> to vector<32x32xf32>
    %cst_42 = arith.constant dense<0.000000e+00> : vector<16x32xf32>
    %210 = tpu.matmul %207, %209, %cst_42 {dimension_numbers = #tpu.dot_dimension_numbers<[1], [0], [0], [1], [0, 0, 1, 1], [], []>} : vector<16x32xf32>, vector<32x32xf32>, vector<16x32xf32> -> vector<16x32xf32>
    %211 = arith.addf %2, %210 : vector<16x32xf32>
    %c0_43 = arith.constant 0 : index
    %c0_44 = arith.constant 0 : index
    %c0_45 = arith.constant 0 : index
    %212 = vector.load %arg8[%c0_43, %c0_44, %c0_45] : memref<1x1x32xf32, #tpu.memory_space<vmem>>, vector<1x1x32xf32>
    %213 = vector.shape_cast %212 : vector<1x1x32xf32> to vector<1x32xf32>
    %214 = vector.broadcast %213 : vector<1x32xf32> to vector<16x32xf32>
    %215 = arith.addf %211, %214 : vector<16x32xf32>
    %216 = arith.mulf %215, %215 : vector<16x32xf32>
    %cst_46 = arith.constant dense<0.000000e+00> : vector<16xf32>
    %217 = vector.multi_reduction <add>, %216, %cst_46 [1] : vector<16x32xf32> to vector<16xf32>
    %218 = vector.shape_cast %217 : vector<16xf32> to vector<16x1xf32>
    %cst_47 = arith.constant 3.200000e+01 : f32
    %219 = vector.broadcast %cst_47 : f32 to vector<16x1xf32>
    %220 = arith.divf %218, %219 : vector<16x1xf32>
    %cst_48 = arith.constant 9.99999974E-5 : f32
    %221 = vector.broadcast %cst_48 : f32 to vector<16x1xf32>
    %222 = arith.addf %220, %221 : vector<16x1xf32>
    %223 = math.rsqrt %222 : vector<16x1xf32>
    %224 = vector.broadcast %223 : vector<16x1xf32> to vector<16x32xf32>
    %225 = arith.mulf %215, %224 : vector<16x32xf32>
    %c0_49 = arith.constant 0 : index
    %c0_50 = arith.constant 0 : index
    %c0_51 = arith.constant 0 : index
    %226 = vector.load %arg9[%c0_49, %c0_50, %c0_51] : memref<1x1x32xf32, #tpu.memory_space<vmem>>, vector<1x1x32xf32>
    %227 = vector.shape_cast %226 : vector<1x1x32xf32> to vector<1x32xf32>
    %228 = vector.broadcast %227 : vector<1x32xf32> to vector<16x32xf32>
    %229 = arith.mulf %225, %228 : vector<16x32xf32>
    %c0_52 = arith.constant 0 : index
    %c0_53 = arith.constant 0 : index
    %c0_54 = arith.constant 0 : index
    %230 = vector.load %arg10[%c0_52, %c0_53, %c0_54] : memref<1x32x128xf32, #tpu.memory_space<vmem>>, vector<1x32x128xf32>
    %231 = vector.shape_cast %230 : vector<1x32x128xf32> to vector<32x128xf32>
    %cst_55 = arith.constant dense<0.000000e+00> : vector<16x128xf32>
    %232 = tpu.matmul %229, %231, %cst_55 {dimension_numbers = #tpu.dot_dimension_numbers<[1], [0], [0], [1], [0, 0, 1, 1], [], []>} : vector<16x32xf32>, vector<32x128xf32>, vector<16x128xf32> -> vector<16x128xf32>
    %c0_56 = arith.constant 0 : index
    %c0_57 = arith.constant 0 : index
    %c0_58 = arith.constant 0 : index
    %233 = vector.load %arg11[%c0_56, %c0_57, %c0_58] : memref<1x1x128xf32, #tpu.memory_space<vmem>>, vector<1x1x128xf32>
    %234 = vector.shape_cast %233 : vector<1x1x128xf32> to vector<1x128xf32>
    %235 = vector.broadcast %234 : vector<1x128xf32> to vector<16x128xf32>
    %236 = arith.addf %232, %235 : vector<16x128xf32>
    %237 = arith.mulf %236, %236 : vector<16x128xf32>
    %238 = arith.mulf %236, %237 : vector<16x128xf32>
    %cst_59 = arith.constant 4.471500e-02 : f32
    %239 = vector.broadcast %cst_59 : f32 to vector<16x128xf32>
    %240 = arith.mulf %239, %238 : vector<16x128xf32>
    %241 = arith.addf %236, %240 : vector<16x128xf32>
    %cst_60 = arith.constant 0.797884583 : f32
    %242 = vector.broadcast %cst_60 : f32 to vector<16x128xf32>
    %243 = arith.mulf %242, %241 : vector<16x128xf32>
    %244 = math.tanh %243 : vector<16x128xf32>
    %cst_61 = arith.constant 1.000000e+00 : f32
    %245 = vector.broadcast %cst_61 : f32 to vector<16x128xf32>
    %246 = arith.addf %245, %244 : vector<16x128xf32>
    %cst_62 = arith.constant 5.000000e-01 : f32
    %247 = vector.broadcast %cst_62 : f32 to vector<16x128xf32>
    %248 = arith.mulf %247, %246 : vector<16x128xf32>
    %249 = arith.mulf %236, %248 : vector<16x128xf32>
    %c0_63 = arith.constant 0 : index
    %c0_64 = arith.constant 0 : index
    %c0_65 = arith.constant 0 : index
    %250 = vector.load %arg12[%c0_63, %c0_64, %c0_65] : memref<1x128x32xf32, #tpu.memory_space<vmem>>, vector<1x128x32xf32>
    %251 = vector.shape_cast %250 : vector<1x128x32xf32> to vector<128x32xf32>
    %cst_66 = arith.constant dense<0.000000e+00> : vector<16x32xf32>
    %252 = tpu.matmul %249, %251, %cst_66 {dimension_numbers = #tpu.dot_dimension_numbers<[1], [0], [0], [1], [0, 0, 1, 1], [], []>} : vector<16x128xf32>, vector<128x32xf32>, vector<16x32xf32> -> vector<16x32xf32>
    %253 = arith.addf %215, %252 : vector<16x32xf32>
    %c0_67 = arith.constant 0 : index
    %c0_68 = arith.constant 0 : index
    %c0_69 = arith.constant 0 : index
    %254 = vector.load %arg13[%c0_67, %c0_68, %c0_69] : memref<1x1x32xf32, #tpu.memory_space<vmem>>, vector<1x1x32xf32>
    %255 = vector.shape_cast %254 : vector<1x1x32xf32> to vector<1x32xf32>
    %256 = vector.broadcast %255 : vector<1x32xf32> to vector<16x32xf32>
    %257 = arith.addf %253, %256 : vector<16x32xf32>
    %258 = vector.shape_cast %257 : vector<16x32xf32> to vector<2x8x32xf32>
    %c0_70 = arith.constant 0 : index
    %c0_71 = arith.constant 0 : index
    %c0_72 = arith.constant 0 : index
    %c0_73 = arith.constant 0 : index
    %259 = vector.load %arg14[%c0_70, %c0_71, %c0_72, %c0_73] : memref<1x2x8x32xf32, #tpu.memory_space<vmem>>, vector<1x2x8x32xf32>
    %260 = vector.shape_cast %259 : vector<1x2x8x32xf32> to vector<2x8x32xf32>
    %261 = vector.shape_cast %258 : vector<2x8x32xf32> to vector<1x2x8x32xf32>
    tpu.vector_store %arg14[%c0_70, %c0_71, %c0_72, %c0_73], %261 {strides = array<i32>} : memref<1x2x8x32xf32, #tpu.memory_space<vmem>>, vector<1x2x8x32xf32>,
    return
  }
  func.func @transform_0(%arg0: i32) -> (i32, i32, i32, i32) {
    %c0_i32 = arith.constant 0 : i32
    %c0_i32_0 = arith.constant 0 : i32
    %c0_i32_1 = arith.constant 0 : i32
    %c0_i32_2 = arith.constant 0 : i32
    return %arg0, %c0_i32, %c0_i32_0, %c0_i32_1 : i32, i32, i32, i32
  }
  func.func @transform_1(%arg0: i32) -> (i32, i32) {
    %c0_i32 = arith.constant 0 : i32
    %c0_i32_0 = arith.constant 0 : i32
    %c0_i32_1 = arith.constant 0 : i32
    return %c0_i32, %c0_i32_0 : i32, i32
  }
  func.func @transform_2(%arg0: i32) -> (i32, i32) {
    %c0_i32 = arith.constant 0 : i32
    %c0_i32_0 = arith.constant 0 : i32
    %c0_i32_1 = arith.constant 0 : i32
    return %c0_i32, %c0_i32_0 : i32, i32
  }
  func.func @transform_3(%arg0: i32) -> (i32, i32, i32) {
    %c0_i32 = arith.constant 0 : i32
    %c0_i32_0 = arith.constant 0 : i32
    %c0_i32_1 = arith.constant 0 : i32
    return %arg0, %c0_i32, %c0_i32_0 : i32, i32, i32
  }
  func.func @transform_4(%arg0: i32) -> (i32, i32, i32) {
    %c0_i32 = arith.constant 0 : i32
    %c0_i32_0 = arith.constant 0 : i32
    %c0_i32_1 = arith.constant 0 : i32
    return %arg0, %c0_i32, %c0_i32_0 : i32, i32, i32
  }
  func.func @transform_5(%arg0: i32) -> (i32, i32, i32) {
    %c0_i32 = arith.constant 0 : i32
    %c0_i32_0 = arith.constant 0 : i32
    %c0_i32_1 = arith.constant 0 : i32
    return %arg0, %c0_i32, %c0_i32_0 : i32, i32, i32
  }
  func.func @transform_6(%arg0: i32) -> (i32, i32, i32) {
    %c0_i32 = arith.constant 0 : i32
    %c0_i32_0 = arith.constant 0 : i32
    %c0_i32_1 = arith.constant 0 : i32
    return %arg0, %c0_i32, %c0_i32_0 : i32, i32, i32
  }
  func.func @transform_7(%arg0: i32) -> (i32, i32, i32) {
    %c0_i32 = arith.constant 0 : i32
    %c0_i32_0 = arith.constant 0 : i32
    %c0_i32_1 = arith.constant 0 : i32
    return %arg0, %c0_i32, %c0_i32_0 : i32, i32, i32
  }
  func.func @transform_8(%arg0: i32) -> (i32, i32, i32) {
    %c0_i32 = arith.constant 0 : i32
    %c0_i32_0 = arith.constant 0 : i32
    %c0_i32_1 = arith.constant 0 : i32
    return %arg0, %c0_i32, %c0_i32_0 : i32, i32, i32
  }
  func.func @transform_9(%arg0: i32) -> (i32, i32, i32) {
    %c0_i32 = arith.constant 0 : i32
    %c0_i32_0 = arith.constant 0 : i32
    %c0_i32_1 = arith.constant 0 : i32
    return %arg0, %c0_i32, %c0_i32_0 : i32, i32, i32
  }
  func.func @transform_10(%arg0: i32) -> (i32, i32, i32) {
    %c0_i32 = arith.constant 0 : i32
    %c0_i32_0 = arith.constant 0 : i32
    %c0_i32_1 = arith.constant 0 : i32
    return %arg0, %c0_i32, %c0_i32_0 : i32, i32, i32
  }
  func.func @transform_11(%arg0: i32) -> (i32, i32, i32) {
    %c0_i32 = arith.constant 0 : i32
    %c0_i32_0 = arith.constant 0 : i32
    %c0_i32_1 = arith.constant 0 : i32
    return %arg0, %c0_i32, %c0_i32_0 : i32, i32, i32
  }
  func.func @transform_12(%arg0: i32) -> (i32, i32, i32) {
    %c0_i32 = arith.constant 0 : i32
    %c0_i32_0 = arith.constant 0 : i32
    %c0_i32_1 = arith.constant 0 : i32
    return %arg0, %c0_i32, %c0_i32_0 : i32, i32, i32
  }
  func.func @transform_13(%arg0: i32) -> (i32, i32, i32, i32) {
    %c0_i32 = arith.constant 0 : i32
    %c0_i32_0 = arith.constant 0 : i32
    %c0_i32_1 = arith.constant 0 : i32
    %c0_i32_2 = arith.constant 0 : i32
    return %arg0, %c0_i32, %c0_i32_0, %c0_i32_1 : i32, i32, i32, i32
  }
}

</mosaic_0001>

<bundles_post_ra>
// kernel: sequential_module_forward.9
= control target key start
LH: loop header
LB: loop body
LE: loop exit
PB: predicated region body
PF: predicated region fallthrough
CT: control target
= control target key end

     0   :  { %9 = vsyncpa [#allocation9], 0  ;;  %s1070_s0 = inlined_call_operand.vmem [shape: f32[8,2,8], index: 0, kind: input, shape index: {}]   ;;  %s1071_s1 = inlined_call_operand.hbm [shape: f32[2,8,64], index: 1, kind: input, shape index: {}]   ;;  %s1072_s2 = inlined_call_operand.hbm [shape: f32[2,16,64], index: 2, kind: input, shape index: {}]   ;;  %s1073_s3 = inlined_call_operand.hbm [shape: f32[2,1,64], index: 3, kind: input, shape index: {}]   ;;  %s1074_s4 = inlined_call_operand.vmem [shape: f32[8,2,32], index: 4, kind: output, shape index: {}]  }
   0x1   :  { %10 = vsyncpa [#allocation11], 0  ;;  %s883_s15 = smov [#allocation10]   ;;  %s884_s17 = smov [#allocation8]  }
   0x2   :  { %s30_s16 = sshll.u32 %s883_s15, 4  ;;  %s18_s18 = sshll.u32 %s884_s17, 4  ;;  %s31_s16 = int_to_ptr.vmem [resolvable:$true] %s30_s16  ;;  %s19_s18 = int_to_ptr.vmem [resolvable:$true] %s18_s18 }
   0x3   :  { %s819_s19 = scalar_lea.vmem %s31_s16, 512  ;;  %p824_p1 = scmp.lt.s32.totalorder %s31_s16, %s31_s16 }
   0x4   :  { %p820_p0 = scmp.ne.s32.totalorder %s31_s16, %s819_s19  ;;  %p825_p2 = scmp.lt.s32.totalorder %s819_s19, %s819_s19 }
   0x6   :  { %p826_p3 = por %p825_p2, %p824_p1 }
   0x8   :  { %p827_p4 = pnand %p826_p3, %p820_p0 }
   0xa   :  { %830 = shalt.err (!%p827_p4)
}
   0xb   :  { %s885_s20 = smov 128   ;;  %s886_s21 = smov 8  }
   0xc   :  { %36 = dma.hbm_to_vmem [thread:$0]  %s1072_s2, 512, %s31_s16, [#allocation11], %s885_s20, %s885_s20, %s886_s21  }
   0xd   :  { %s839_s24 = scalar_lea.vmem %s19_s18, 256  ;;  %p844_p6 = scmp.lt.s32.totalorder %s19_s18, %s19_s18 }
   0xe   :  { %p840_p5 = scmp.ne.s32.totalorder %s19_s18, %s839_s24  ;;  %p845_p7 = scmp.lt.s32.totalorder %s839_s24, %s839_s24 }
  0x10   :  { %p846_p8 = por %p845_p7, %p844_p6 }
  0x12   :  { %p847_p9 = pnand %p846_p8, %p840_p5 }
  0x14   :  { %850 = shalt.err (!%p847_p9)
}
  0x15   :  { %24 = dma.hbm_to_vmem [thread:$0]  %s1071_s1, 256, %s19_s18, [#allocation9], %s885_s20, %s885_s20, %s886_s21  }
  0x16   :  { %s887_s27 = smov [#allocation12]  }
  0x17   :  { %s42_s28 = sshll.u32 %s887_s27, 4  ;;  %s43_s28 = int_to_ptr.vmem [resolvable:$true] %s42_s28 }
  0x18   :  { %s859_s29 = scalar_lea.vmem %s43_s28, 32  ;;  %p864_p11 = scmp.lt.s32.totalorder %s43_s28, %s43_s28 }
  0x19   :  { %p860_p10 = scmp.ne.s32.totalorder %s43_s28, %s859_s29  ;;  %p865_p12 = scmp.lt.s32.totalorder %s859_s29, %s859_s29 }
  0x1b   :  { %p866_p13 = por %p865_p12, %p864_p11 }
  0x1d   :  { %p867_p0 = pnand %p866_p13, %p860_p10 }
  0x1f   :  { %870 = shalt.err (!%p867_p0)
}
  0x20   :  { %s888_s2 = smov 16   ;;  %s889_s30 = smov 1  }
  0x21   :  { %48 = dma.hbm_to_vmem [thread:$0]  %s1073_s3, 32, %s43_s28, [#allocation11], %s888_s2, %s888_s2, %s889_s30  }
  0x22   :  { %875 = dma.done.wait [#allocation9], 256  }
  0x23   :  { %876 = vsyncadd [#allocation9], 4294967040 }
  0x24   :  { %877 = dma.done.wait [#allocation11], 544  }
  0x25   :  { %878 = vsyncadd [#allocation11], 4294966752  ;;  %vm384_vm0 = vcmask 123904   ;;  %v89_v0 = vlaneseq  ;;  %v890_v1 = vmov 0.0   ;;  %v891_v2 = vmov 1983009808  }
  0x26   :  { %385 = vst.msk [vmem:[#allocation6] sm:$0x3] %vm384_vm0, %v890_v1  ;;  %386 = vst.msk [vmem:[#allocation6 + $0x2] sm:$0x3] %vm384_vm0, %v890_v1  ;;  %v87_v3 = vunpack.c.l.s4 %v891_v2  ;;  %v938_v6 = vld [vmem:[#allocation10] sm:$0xff]  ;;  %v940_v7 = vld [vmem:[#allocation10 + $0x8] sm:$0xff] }
  0x27   :  { %387 = vst.msk [vmem:[#allocation7] sm:$0x3] %vm384_vm0, %v890_v1  ;;  %388 = vst.msk [vmem:[#allocation7 + $0x2] sm:$0x3] %vm384_vm0, %v890_v1  ;;  %v90_v5 = vshrl.u32 %v89_v0, 7  ;;  %v942_v8 = vld [vmem:[#allocation10 + $0x10] sm:$0xff] }
  0x28   :  { %v88_v4 = vunpack.c.0.s8 %v87_v3  ;;  %v944_v9 = vld [vmem:[#allocation10 + $0x18] sm:$0xff]  ;;  %v66_v10 = vld [vmem:[#allocation8] sm:$0xff]  ;;  %v58_v13 = vld [vmem:[%s1070_s0] sm:$0x3]  ;;  %vm118_vm1 = vcmask 64512   ;;  %vm242_vm2 = vcmask 517120  }
  0x29   :  { %v67_v11 = vld [vmem:[#allocation8 + $0x8] sm:$0xff]  ;;  %748 = vmatprep.subr.mxu0 %v66_v10  ;;  %v59_v14 = vld [vmem:[%s1070_s0 + $0x2] sm:$0x3]  ;;  %v60_v15 = vld [vmem:[%s1070_s0 + $0x4] sm:$0x3] }
  0x2a   :  { %v91_v12 = vsub.s32 %v88_v4, %v90_v5  ;;  %753 = vmatprep.subr.mxu1 %v67_v11  ;;  %749 = vmatpush3.msra.mxu0 %v66_v10  ;;  %v61_v16 = vld [vmem:[%s1070_s0 + $0x6] sm:$0x3]  ;;  %v84_v17 = vcombine.low %v58_v13, %v59_v14  ;;  %v62_v18 = vld [vmem:[%s1070_s0 + $0x8] sm:$0x3]  ;;  %v63_v19 = vld [vmem:[%s1070_s0 + $0xa] sm:$0x3] }
  0x2b   :  { %754 = vmatpush3.msra.mxu1 %v67_v11  ;;  %v85_v20 = vcombine.low %v60_v15, %v61_v16  ;;  %v64_v21 = vld [vmem:[%s1070_s0 + $0xc] sm:$0x3]  ;;  %v65_v22 = vld [vmem:[%s1070_s0 + $0xe] sm:$0x3]  ;;  %v101_v23 = vcombine.low %v62_v18, %v63_v19  ;;  %v724_v31 = vld [vmem:[#allocation12] ss:$0 sm:$0xff] }
  0x2c   :  { %v92_v24 = vrot.slane %v84_v17, %v91_v12  ;;  %v102_v25 = vcombine.low %v64_v21, %v65_v22  ;;  %v727_v32 = vld [vmem:[#allocation12 + $0x1] ss:$0 sm:$0xff]  ;;  %s986_s0 = smov 0  }
  0x2d   :  { %v99_v26 = vrot.slane %v85_v20, %v91_v12  ;;  %v109_v27 = vrot.slane %v101_v23, %v91_v12 }
  0x2e   :  { %v116_v28 = vrot.slane %v102_v25, %v91_v12 }
  0x2f   :  { %v100_v29 = vcombine.low %v92_v24, %v99_v26 }
  0x30   :  { %v117_v30 = vcombine.low %v109_v27, %v116_v28 }
  0x31   :  { %750 = vmatprep.mubr.msk.f32.mxu0 %vm118_vm1, %v100_v29  ;;  %755 = vmatprep.mubr.msk.f32.mxu1 %vm118_vm1, %v100_v29 }
  0x32   :  { %751 = vmatmul.mubr.msk.f32.vlgmr.msra.gmra.mxu0 %vm118_vm1, %v117_v30  ;;  %756 = vmatmul.mubr.msk.f32.vlgmr.msra.gmra.mxu1 %vm118_vm1, %v117_v30 }
  0xf2   :  { %v752_v33 = vpop.f32.mrf.mxu0  ;;  %v757_v34 = vpop.f32.mrf.mxu1 }
  0xf3   :  { %v195_v35 = vadd.f32 %v752_v33, %v724_v31  ;;  %v329_v36 = vadd.f32 %v757_v34, %v727_v32 }
  0xf4   :  { %v189_v37 = vpop.f32.mrf.mxu0  ;;  %v323_v38 = vpop.f32.mrf.mxu1 }
  0xf5   :  { %v217_v39 = vcombine.high %v195_v35, %v195_v35  ;;  %v224_v40 = vrot.slane %v195_v35, %v91_v12  ;;  %v351_v41 = vcombine.high %v329_v36, %v329_v36  ;;  %v358_v42 = vrot.slane %v329_v36, %v91_v12 }
  0xf6   :  { %v190_v43 = vadd.f32 %v724_v31, %v189_v37  ;;  %v324_v44 = vadd.f32 %v727_v32, %v323_v38 }
  0xf7   :  { %v231_v45 = vrot.slane %v217_v39, %v91_v12  ;;  %v232_v46 = vcombine.high %v224_v40, %v224_v40  ;;  %247 = vst.msk [vmem:[#allocation2 + $0x8] sm:$0x3] %vm242_vm2, %v224_v40  ;;  %v365_v47 = vrot.slane %v351_v41, %v91_v12  ;;  %v366_v48 = vcombine.high %v358_v42, %v358_v42 }
  0xf8   :  { %380 = vst.msk [vmem:[#allocation3 + $0x8] sm:$0x3] %vm242_vm2, %v358_v42  ;;  %v200_v49 = vcombine.high %v190_v43, %v190_v43  ;;  %v207_v50 = vrot.slane %v190_v43, %v91_v12  ;;  %v334_v51 = vcombine.high %v324_v44, %v324_v44  ;;  %v341_v52 = vrot.slane %v324_v44, %v91_v12 }
  0xf9   :  { %v233_v53 = vcombine.high %v231_v45, %v231_v45  ;;  %248 = vst.msk [vmem:[#allocation2 + $0xa] sm:$0x3] %vm242_vm2, %v232_v46  ;;  %249 = vst.msk [vmem:[#allocation2 + $0xc] sm:$0x3] %vm242_vm2, %v231_v45  ;;  %v367_v54 = vcombine.high %v365_v47, %v365_v47 }
  0xfa   :  { %381 = vst.msk [vmem:[#allocation3 + $0xa] sm:$0x3] %vm242_vm2, %v366_v48  ;;  %382 = vst.msk [vmem:[#allocation3 + $0xc] sm:$0x3] %vm242_vm2, %v365_v47  ;;  %v214_v55 = vrot.slane %v200_v49, %v91_v12  ;;  %v215_v56 = vcombine.high %v207_v50, %v207_v50  ;;  %v348_v57 = vrot.slane %v334_v51, %v91_v12 }
  0xfb   :  { %243 = vst.msk [vmem:[#allocation2] sm:$0x3] %vm242_vm2, %v207_v50  ;;  %v349_v58 = vcombine.high %v341_v52, %v341_v52  ;;  %376 = vst.msk [vmem:[#allocation3] sm:$0x3] %vm242_vm2, %v341_v52 }
  0xfc   :  { %250 = vst.msk [vmem:[#allocation2 + $0xe] sm:$0x3] %vm242_vm2, %v233_v53  ;;  %383 = vst.msk [vmem:[#allocation3 + $0xe] sm:$0x3] %vm242_vm2, %v367_v54  ;;  %v216_v59 = vcombine.high %v214_v55, %v214_v55  ;;  %v350_v60 = vcombine.high %v348_v57, %v348_v57 }
  0xfd   :  { %244 = vst.msk [vmem:[#allocation2 + $0x2] sm:$0x3] %vm242_vm2, %v215_v56  ;;  %245 = vst.msk [vmem:[#allocation2 + $0x4] sm:$0x3] %vm242_vm2, %v214_v55 }
  0xfe   :  { %377 = vst.msk [vmem:[#allocation3 + $0x2] sm:$0x3] %vm242_vm2, %v349_v58  ;;  %378 = vst.msk [vmem:[#allocation3 + $0x4] sm:$0x3] %vm242_vm2, %v348_v57 }
  0xff   :  { %246 = vst.msk [vmem:[#allocation2 + $0x6] sm:$0x3] %vm242_vm2, %v216_v59  ;;  %379 = vst.msk [vmem:[#allocation3 + $0x6] sm:$0x3] %vm242_vm2, %v350_v60 }
 0x100 LB: > { %v892_v61 = vmov 0.0   ;;  %vm893_vm3 = vmmov 0   ;;  %v400_v62 = vld [vmem:[#allocation6] sm:$0x3]  ;;  %vm410_vm4 = vcmask 130048   ;;  %s894_s21 = smov 16   ;;  %s881_s0 = sphi %s986_s0, %s398_s0  }
 0x101   : > { %758 = vmatprep.subr.mxu0 %v892_v61  ;;  %765 = vmatprep.subr.mxu1 %v892_v61  ;;  %v402_v63 = vld [vmem:[#allocation7] sm:$0x3]  ;;  %v401_v0 = vld [vmem:[#allocation6 + $0x2] sm:$0x3]  ;;  %v403_v1 = vld [vmem:[#allocation7 + $0x2] sm:$0x3] }
 0x102   : > { %759 = vmatpush3.msra.mxu0 %v940_v7  ;;  %762 = vmatprep.mubr.msk.f32.mxu0 %vm893_vm3, %v892_v61  ;;  %s399_s22 = ssub.s32 7, %s881_s0  ;;  %s730_s23 = sshll.u32 %s881_s0, 1 }
 0x103   : > { %760 = vmatprep.subr.mxu0 %v892_v61  ;;  %766 = vmatpush3.msra.mxu1 %v944_v9  ;;  %s1001_s24 = sshll.u32 %s399_s22, 1  ;;  %s405_s25 = scalar_lea.vmem [#allocation2], %s730_s23 }
 0x104   : > { %761 = vmatpush3.msra.mxu0 %v938_v6  ;;  %767 = vmatprep.subr.mxu1 %v892_v61  ;;  %s408_s26 = scalar_lea.vmem [#allocation3], %s1001_s24  ;;  %s895_s27 = smov 80  }
 0x105   : > { %763 = vmatmul.mubr.msk.f32.vlgmr.msra.gmra.mxu0 %vm410_vm4, %v400_v62  ;;  %768 = vmatpush3.msra.mxu1 %v942_v8  ;;  %s896_s28 = smov 112   ;;  %s897_s29 = smov 96  }
 0x106   : > { %769 = vmatprep.mubr.msk.f32.mxu1 %vm893_vm3, %v892_v61  ;;  %575 = vrot.lane.b32.xlu1 %v402_v63, %s894_s21  ;;  %v406_v2 = vld [vmem:[%s405_s25] sm:$0x3]  ;;  %s635_s30 = scalar_lea.vmem [#allocation4], %s730_s23  ;;  %s637_s5 = scalar_lea.vmem [#allocation5], %s1001_s24 }
 0x107   : > { %770 = vmatmul.mubr.msk.f32.vlgmr.msra.gmra.mxu1 %vm410_vm4, %v401_v0  ;;  %v409_v4 = vld [vmem:[%s408_s26] sm:$0x3]  ;;  %s398_s0 = sadd.s32 1, %s881_s0  }
 0x108   : > { %p395_p1 = scmp.ge.s32.totalorder %s398_s0, 8  }
 0x109   :  { %vm696_vm5 = vcmask (%p395_p1), 254976  }
 0x10a   : > { %577 = vrot.lane.b32.xlu1 %v403_v1, %s894_s21 }
 0x178   : > { %v576_v28 = vpop.permute.xlu1 %575 }
 0x17c   : > { %v578_v30 = vpop.permute.xlu1 %577 }
 0x1c5   : > { %v480_v3 = vpop.f32.mrf.mxu0 }
 0x1c6   : > { %v557_v5 = vadd.f32 %v480_v3, %v406_v2 }
 0x1c7   : > { %v764_v10 = vpop.f32.mrf.mxu0  ;;  %v553_v11 = vpop.f32.mrf.mxu1 }
 0x1c8   : > { %795 = vtanh.f32 %v557_v5  ;;  %v558_v12 = vadd.f32 %v553_v11, %v409_v4  ;;  %v734_v16 = vmul.f32 -1.442695, %v557_v5 }
 0x1c9   : > { %v771_v13 = vpop.f32.mrf.mxu1 }
 0x1ca   : > { %797 = vtanh.f32 %v558_v12  ;;  %v735_v17 = vmul.f32 -1.442695, %v558_v12 }
 0x1cb   : > { %799 = vpow2.f32 %v734_v16 }
 0x1cc   : > { %801 = vpow2.f32 %v735_v17 }
 0x1d5   : > { %v796_v14 = vpop.eup %795 }
 0x1d6   : > { %585 = vrot.lane.b32.xlu0 %v796_v14, %s895_s27 }
 0x1d7   : > { %v798_v15 = vpop.eup %797 }
 0x1d8   : > { %v800_v18 = vpop.eup %799 }
 0x1d9   : > { %v565_v19 = vadd.f32 1.0, %v800_v18  ;;  %v802_v20 = vpop.eup %801 }
 0x1da   : > { %587 = vrot.lane.b32.xlu0 %v798_v15, %s895_s27  ;;  %v566_v21 = vadd.f32 1.0, %v802_v20 }
 0x1db   : > { %803 = vrcp.f32 %v565_v19 }
 0x1dc   : > { %805 = vrcp.f32 %v566_v21 }
 0x1e8   : > { %v804_v22 = vpop.eup %803 }
 0x1e9   : > { %v806_v25 = vpop.eup %805  ;;  %v581_v29 = vmul.f32 %v804_v22, %v576_v28 }
 0x1ea   : > { %v582_v33 = vmul.f32 %v806_v25, %v578_v30 }
 0x248   : > { %v586_v23 = vpop.permute.xlu0 %585 }
 0x249   : > { %v591_v24 = vmul.f32 %v804_v22, %v586_v23 }
 0x24b   : > { %595 = vrot.lane.b32.xlu0 %v591_v24, %s894_s21 }
 0x24c   : > { %v588_v26 = vpop.permute.xlu0 %587 }
 0x24d   : > { %v592_v27 = vmul.f32 %v806_v25, %v588_v26 }
 0x24f   : > { %597 = vrot.lane.b32.xlu1 %v592_v27, %s894_s21 }
 0x2bd   : > { %v596_v31 = vpop.permute.xlu0 %595 }
 0x2be   : > { %v601_v32 = vadd.f32 %v596_v31, %v581_v29 }
 0x2c0   : > { %807 = vtanh.f32 %v601_v32 }
 0x2c1   : > { %v598_v34 = vpop.permute.xlu1 %597 }
 0x2c2   : > { %v602_v35 = vadd.f32 %v598_v34, %v582_v33 }
 0x2c4   : > { %809 = vtanh.f32 %v602_v35 }
 0x2cd   : > { %v808_v36 = vpop.eup %807 }
 0x2ce   : > { %607 = vrot.lane.b32.xlu0 %v808_v36, %s894_s21 }
 0x2d1   : > { %v810_v37 = vpop.eup %809 }
 0x2d2   : > { %617 = vrot.lane.b32.xlu0 %v601_v32, %s896_s28  ;;  %609 = vrot.lane.b32.xlu1 %v810_v37, %s894_s21 }
 0x2d6   : > { %619 = vrot.lane.b32.xlu1 %v602_v35, %s896_s28 }
 0x340   : > { %v608_v38 = vpop.permute.xlu0 %607 }
 0x341   : > { %v613_v39 = vmul.f32 %v804_v22, %v608_v38 }
 0x343   : > { %627 = vrot.lane.b32.xlu0 %v613_v39, %s897_s29 }
 0x344   : > { %v618_v40 = vpop.permute.xlu0 %617  ;;  %v610_v41 = vpop.permute.xlu1 %609 }
 0x345   : > { %623 = vst.msk [vmem:[#allocation7] sm:$0x3] %vm384_vm0, %v618_v40  ;;  %v614_v42 = vmul.f32 %v806_v25, %v610_v41 }
 0x347   : > { %629 = vrot.lane.b32.xlu1 %v614_v42, %s897_s29 }
 0x348   : > { %v620_v43 = vpop.permute.xlu1 %619 }
 0x349   : > { %624 = vst.msk [vmem:[#allocation7 + $0x2] sm:$0x3] %vm384_vm0, %v620_v43 }
 0x3b5   : > { %v628_v44 = vpop.permute.xlu0 %627 }
 0x3b6   : > { %633 = vst.msk [vmem:[#allocation6] sm:$0x3] %vm384_vm0, %v628_v44  ;;  %636 = vst.msk [vmem:[%s635_s30] sm:$0x3] %vm384_vm0, %v628_v44 }
 0x3b9   : > { %v630_v45 = vpop.permute.xlu1 %629 }
 0x3ba   : > { %634 = vst.msk [vmem:[#allocation6 + $0x2] sm:$0x3] %vm384_vm0, %v630_v45  ;;  %638 = vst.msk [vmem:[%s637_s5] sm:$0x3] %vm384_vm0, %v630_v45 }
 0x3bb   :  { %397 = sbr.rel (!%p395_p1) target bundleno = 256 (0x100), region = 59 }
 0x3bd   :  { %v641_v6 = vld [vmem:[#allocation4 + $0x4] sm:$0x3] (%p395_p1)  ;;  %v639_v7 = vld [vmem:[#allocation4] sm:$0x3] (%p395_p1)  ;;  %v642_v56 = vld [vmem:[#allocation4 + $0x6] sm:$0x3] (%p395_p1) }
 0x3be   :  { %v640_v57 = vld [vmem:[#allocation4 + $0x2] sm:$0x3] (%p395_p1)  ;;  %v644_v62 = vld [vmem:[#allocation4 + $0xa] sm:$0x3] (%p395_p1)  ;;  %v643_v63 = vld [vmem:[#allocation4 + $0x8] sm:$0x3] (%p395_p1) }
 0x3bf   :  { %v646_v4 = vld [vmem:[#allocation4 + $0xe] sm:$0x3] (%p395_p1)  ;;  %v645_v5 = vld [vmem:[#allocation4 + $0xc] sm:$0x3] (%p395_p1) }
 0x3c1   :  { %v649_v46 = vld [vmem:[#allocation5 + $0x4] sm:$0x3]  ;;  %v647_v47 = vld [vmem:[#allocation5] sm:$0x3]  ;;  %v650_v48 = vld [vmem:[#allocation5 + $0x6] sm:$0x3] }
 0x3c2   :  { %667 = vrot.lane.b32.xlu1 %v649_v46, %s888_s2  ;;  %663 = vrot.lane.b32.xlu0 %v647_v47, %s888_s2  ;;  %v648_v49 = vld [vmem:[#allocation5 + $0x2] sm:$0x3]  ;;  %v652_v50 = vld [vmem:[#allocation5 + $0xa] sm:$0x3]  ;;  %v651_v51 = vld [vmem:[#allocation5 + $0x8] sm:$0x3] }
 0x3c3   :  { %v654_v52 = vld [vmem:[#allocation5 + $0xe] sm:$0x3]  ;;  %v653_v53 = vld [vmem:[#allocation5 + $0xc] sm:$0x3] }
 0x3c6   :  { %669 = vrot.lane.b32.xlu1 %v650_v48, %s888_s2  ;;  %665 = vrot.lane.b32.xlu0 %v648_v49, %s888_s2 }
 0x3ca   :  { %673 = vrot.lane.b32.xlu1 %v652_v50, %s888_s2  ;;  %671 = vrot.lane.b32.xlu0 %v651_v51, %s888_s2 }
 0x3ce   :  { %677 = vrot.lane.b32.xlu1 %v654_v52, %s888_s2  ;;  %675 = vrot.lane.b32.xlu0 %v653_v53, %s888_s2 }
 0x434   :  { %v668_v8 = vpop.permute.xlu1 %667  ;;  %v664_v9 = vpop.permute.xlu0 %663 }
 0x435   :  { %v690_v54 = vsel %vm410_vm4, %v641_v6, %v668_v8  ;;  %v688_v55 = vsel %vm410_vm4, %v639_v7, %v664_v9 }
 0x436   :  { %699 = vst.msk [vmem:[%s1074_s4 + $0x4] sm:$0x3] %vm696_vm5, %v690_v54  ;;  %697 = vst.msk [vmem:[%s1074_s4] sm:$0x3] %vm696_vm5, %v688_v55 }
 0x438   :  { %v670_v58 = vpop.permute.xlu1 %669  ;;  %v666_v59 = vpop.permute.xlu0 %665 }
 0x439   :  { %v691_v60 = vsel %vm410_vm4, %v642_v56, %v670_v58  ;;  %v689_v61 = vsel %vm410_vm4, %v640_v57, %v666_v59 }
 0x43a   :  { %700 = vst.msk [vmem:[%s1074_s4 + $0x6] sm:$0x3] %vm696_vm5, %v691_v60  ;;  %698 = vst.msk [vmem:[%s1074_s4 + $0x2] sm:$0x3] %vm696_vm5, %v689_v61 }
 0x43c   :  { %v674_v0 = vpop.permute.xlu1 %673  ;;  %v672_v1 = vpop.permute.xlu0 %671 }
 0x43d   :  { %v693_v2 = vsel %vm410_vm4, %v644_v62, %v674_v0  ;;  %v692_v3 = vsel %vm410_vm4, %v643_v63, %v672_v1 }
 0x43e   :  { %702 = vst.msk [vmem:[%s1074_s4 + $0xa] sm:$0x3] %vm696_vm5, %v693_v2  ;;  %701 = vst.msk [vmem:[%s1074_s4 + $0x8] sm:$0x3] %vm696_vm5, %v692_v3 }
 0x440   :  { %v678_v10 = vpop.permute.xlu1 %677  ;;  %v676_v11 = vpop.permute.xlu0 %675 }
 0x441   :  { %v695_v12 = vsel %vm410_vm4, %v646_v4, %v678_v10  ;;  %v694_v13 = vsel %vm410_vm4, %v645_v5, %v676_v11 }
 0x442   :  { %704 = vst.msk [vmem:[%s1074_s4 + $0xe] sm:$0x3] %vm696_vm5, %v695_v12  ;;  %703 = vst.msk [vmem:[%s1074_s4 + $0xc] sm:$0x3] %vm696_vm5, %v694_v13 }
 0x443   :  { %709 = vsyncpa [#allocation9], 1 }
 0x444   :  { %710 = vsyncpa [#allocation11], 1 }

// kernel: sequential_module_forward.7
= control target key start
LH: loop header
LB: loop body
LE: loop exit
PB: predicated region body
PF: predicated region fallthrough
CT: control target
= control target key end

     0   :  { %9 = vsyncpa [#allocation9], 0  ;;  %s1087_s0 = inlined_call_operand.vmem [shape: f32[8,2,4], index: 0, kind: input, shape index: {}]   ;;  %s1088_s1 = inlined_call_operand.hbm [shape: f32[2,4,64], index: 1, kind: input, shape index: {}]   ;;  %s1089_s2 = inlined_call_operand.hbm [shape: f32[2,16,64], index: 2, kind: input, shape index: {}]   ;;  %s1090_s3 = inlined_call_operand.hbm [shape: f32[2,1,64], index: 3, kind: input, shape index: {}]   ;;  %s1091_s4 = inlined_call_operand.vmem [shape: f32[8,2,32], index: 4, kind: output, shape index: {}]  }
   0x1   :  { %10 = vsyncpa [#allocation11], 0  ;;  %s894_s15 = smov [#allocation10]  }
   0x2   :  { %s30_s16 = sshll.u32 %s894_s15, 4  ;;  %s31_s16 = int_to_ptr.vmem [resolvable:$true] %s30_s16 }
   0x3   :  { %s830_s17 = scalar_lea.vmem %s31_s16, 512  ;;  %p835_p1 = scmp.lt.s32.totalorder %s31_s16, %s31_s16 }
   0x4   :  { %p831_p0 = scmp.ne.s32.totalorder %s31_s16, %s830_s17  ;;  %p836_p2 = scmp.lt.s32.totalorder %s830_s17, %s830_s17 }
   0x6   :  { %p837_p3 = por %p836_p2, %p835_p1 }
   0x8   :  { %p838_p4 = pnand %p837_p3, %p831_p0 }
   0xa   :  { %841 = shalt.err (!%p838_p4)
}
   0xb   :  { %s895_s18 = smov 128   ;;  %s896_s19 = smov 8  }
   0xc   :  { %36 = dma.hbm_to_vmem [thread:$0]  %s1089_s2, 512, %s31_s16, [#allocation11], %s895_s18, %s895_s18, %s896_s19  }
   0xd   :  { %s897_s22 = smov [#allocation8]  }
   0xe   :  { %s18_s23 = sshll.u32 %s897_s22, 4  ;;  %s19_s23 = int_to_ptr.vmem [resolvable:$true] %s18_s23 }
   0xf   :  { %s850_s24 = scalar_lea.vmem %s19_s23, 128  ;;  %p855_p6 = scmp.lt.s32.totalorder %s19_s23, %s19_s23 }
  0x10   :  { %p851_p5 = scmp.ne.s32.totalorder %s19_s23, %s850_s24  ;;  %p856_p7 = scmp.lt.s32.totalorder %s850_s24, %s850_s24 }
  0x12   :  { %p857_p8 = por %p856_p7, %p855_p6 }
  0x14   :  { %p858_p9 = pnand %p857_p8, %p851_p5 }
  0x16   :  { %861 = shalt.err (!%p858_p9)
}
  0x17   :  { %s898_s25 = smov 64   ;;  %s899_s26 = smov 4  }
  0x18   :  { %24 = dma.hbm_to_vmem [thread:$0]  %s1088_s1, 128, %s19_s23, [#allocation9], %s898_s25, %s898_s25, %s899_s26  }
  0x19   :  { %s900_s29 = smov [#allocation12]  }
  0x1a   :  { %s42_s30 = sshll.u32 %s900_s29, 4  ;;  %s43_s30 = int_to_ptr.vmem [resolvable:$true] %s42_s30 }
  0x1b   :  { %s870_s2 = scalar_lea.vmem %s43_s30, 32  ;;  %p875_p11 = scmp.lt.s32.totalorder %s43_s30, %s43_s30 }
  0x1c   :  { %p871_p10 = scmp.ne.s32.totalorder %s43_s30, %s870_s2  ;;  %p876_p12 = scmp.lt.s32.totalorder %s870_s2, %s870_s2 }
  0x1e   :  { %p877_p13 = por %p876_p12, %p875_p11 }
  0x20   :  { %p878_p0 = pnand %p877_p13, %p871_p10 }
  0x22   :  { %881 = shalt.err (!%p878_p0)
}
  0x23   :  { %s901_s5 = smov 16   ;;  %s902_s6 = smov 1  }
  0x24   :  { %48 = dma.hbm_to_vmem [thread:$0]  %s1090_s3, 32, %s43_s30, [#allocation11], %s901_s5, %s901_s5, %s902_s6  }
  0x25   :  { %886 = dma.done.wait [#allocation9], 128  }
  0x26   :  { %887 = vsyncadd [#allocation9], 4294967168 }
  0x27   :  { %888 = dma.done.wait [#allocation11], 544  }
  0x28   :  { %889 = vsyncadd [#allocation11], 4294966752  ;;  %vm391_vm0 = vcmask 123904   ;;  %v89_v0 = vlaneseq  ;;  %v903_v1 = vmov 0.0   ;;  %v904_v2 = vmov 1983009808  }
  0x29   :  { %392 = vst.msk [vmem:[#allocation6] sm:$0x3] %vm391_vm0, %v903_v1  ;;  %393 = vst.msk [vmem:[#allocation6 + $0x2] sm:$0x3] %vm391_vm0, %v903_v1  ;;  %v87_v3 = vunpack.c.l.s4 %v904_v2  ;;  %vm123_vm1 = vcmask 1043456   ;;  %v951_v6 = vld [vmem:[#allocation10] sm:$0xff] }
  0x2a   :  { %394 = vst.msk [vmem:[#allocation7] sm:$0x3] %vm391_vm0, %v903_v1  ;;  %395 = vst.msk [vmem:[#allocation7 + $0x2] sm:$0x3] %vm391_vm0, %v903_v1  ;;  %v90_v5 = vshrl.u32 %v89_v0, 7  ;;  %v953_v7 = vld [vmem:[#allocation10 + $0x8] sm:$0xff] }
  0x2b   :  { %v88_v4 = vunpack.c.0.s8 %v87_v3  ;;  %v955_v8 = vld [vmem:[#allocation10 + $0x10] sm:$0xff]  ;;  %v957_v9 = vld [vmem:[#allocation10 + $0x18] sm:$0xff]  ;;  %vm118_vm2 = vcmask 31744   ;;  %v731_v31 = vld [vmem:[#allocation12] ss:$0 sm:$0xff]  ;;  %vm246_vm3 = vcmask 517120  }
  0x2c   :  { %v66_v10 = vld [vmem:[#allocation8] sm:$0xf]  ;;  %v67_v11 = vld [vmem:[#allocation8 + $0x4] sm:$0xf]  ;;  %v58_v13 = vld [vmem:[%s1087_s0] sm:$0x3] }
  0x2d   :  { %v91_v12 = vsub.s32 %v88_v4, %v90_v5  ;;  %757 = vmatprep.subr.msk.mxu0 %vm123_vm1, %v66_v10  ;;  %762 = vmatprep.subr.msk.mxu1 %vm123_vm1, %v67_v11  ;;  %v59_v14 = vld [vmem:[%s1087_s0 + $0x2] sm:$0x3]  ;;  %v60_v15 = vld [vmem:[%s1087_s0 + $0x4] sm:$0x3]  ;;  %v61_v16 = vld [vmem:[%s1087_s0 + $0x6] sm:$0x3] }
  0x2e   :  { %758 = vmatpush3.msk.msra.mxu0 %vm123_vm1, %v66_v10  ;;  %v84_v17 = vcombine.low %v58_v13, %v59_v14  ;;  %763 = vmatpush3.msk.msra.mxu1 %vm123_vm1, %v67_v11  ;;  %v62_v18 = vld [vmem:[%s1087_s0 + $0x8] sm:$0x3]  ;;  %v63_v19 = vld [vmem:[%s1087_s0 + $0xa] sm:$0x3]  ;;  %v85_v20 = vcombine.low %v60_v15, %v61_v16  ;;  %v64_v21 = vld [vmem:[%s1087_s0 + $0xc] sm:$0x3] }
  0x2f   :  { %v65_v22 = vld [vmem:[%s1087_s0 + $0xe] sm:$0x3]  ;;  %v101_v23 = vcombine.low %v62_v18, %v63_v19  ;;  %v735_v32 = vld [vmem:[#allocation12 + $0x1] ss:$0 sm:$0xff]  ;;  %s1003_s0 = smov 0  }
  0x30   :  { %v92_v24 = vrot.slane %v84_v17, %v91_v12  ;;  %v102_v25 = vcombine.low %v64_v21, %v65_v22  ;;  %v99_v26 = vrot.slane %v85_v20, %v91_v12 }
  0x31   :  { %v109_v27 = vrot.slane %v101_v23, %v91_v12 }
  0x32   :  { %v116_v28 = vrot.slane %v102_v25, %v91_v12  ;;  %v100_v29 = vcombine.low %v92_v24, %v99_v26 }
  0x34   :  { %v117_v30 = vcombine.low %v109_v27, %v116_v28  ;;  %759 = vmatprep.mubr.msk.f32.mxu0 %vm118_vm2, %v100_v29  ;;  %764 = vmatprep.mubr.msk.f32.mxu1 %vm118_vm2, %v100_v29 }
  0x36   :  { %760 = vmatmul.mubr.msk.f32.vlgmr.msra.gmra.mxu0 %vm118_vm2, %v117_v30  ;;  %765 = vmatmul.mubr.msk.f32.vlgmr.msra.gmra.mxu1 %vm118_vm2, %v117_v30 }
  0xf6   :  { %v761_v33 = vpop.f32.mrf.mxu0  ;;  %v766_v34 = vpop.f32.mrf.mxu1 }
  0xf7   :  { %v199_v35 = vadd.f32 %v761_v33, %v731_v31  ;;  %v336_v36 = vadd.f32 %v766_v34, %v735_v32 }
  0xf8   :  { %v193_v37 = vpop.f32.mrf.mxu0  ;;  %v330_v38 = vpop.f32.mrf.mxu1 }
  0xf9   :  { %v221_v39 = vcombine.high %v199_v35, %v199_v35  ;;  %v228_v40 = vrot.slane %v199_v35, %v91_v12  ;;  %v358_v41 = vcombine.high %v336_v36, %v336_v36  ;;  %v365_v42 = vrot.slane %v336_v36, %v91_v12 }
  0xfa   :  { %v194_v43 = vadd.f32 %v731_v31, %v193_v37  ;;  %v331_v44 = vadd.f32 %v735_v32, %v330_v38 }
  0xfb   :  { %v235_v45 = vrot.slane %v221_v39, %v91_v12  ;;  %v236_v46 = vcombine.high %v228_v40, %v228_v40  ;;  %251 = vst.msk [vmem:[#allocation2 + $0x8] sm:$0x3] %vm246_vm3, %v228_v40  ;;  %v372_v47 = vrot.slane %v358_v41, %v91_v12  ;;  %v373_v48 = vcombine.high %v365_v42, %v365_v42 }
  0xfc   :  { %387 = vst.msk [vmem:[#allocation3 + $0x8] sm:$0x3] %vm246_vm3, %v365_v42  ;;  %v204_v49 = vcombine.high %v194_v43, %v194_v43  ;;  %v211_v50 = vrot.slane %v194_v43, %v91_v12  ;;  %v341_v51 = vcombine.high %v331_v44, %v331_v44  ;;  %v348_v52 = vrot.slane %v331_v44, %v91_v12 }
  0xfd   :  { %v237_v53 = vcombine.high %v235_v45, %v235_v45  ;;  %252 = vst.msk [vmem:[#allocation2 + $0xa] sm:$0x3] %vm246_vm3, %v236_v46  ;;  %253 = vst.msk [vmem:[#allocation2 + $0xc] sm:$0x3] %vm246_vm3, %v235_v45  ;;  %v374_v54 = vcombine.high %v372_v47, %v372_v47 }
  0xfe   :  { %388 = vst.msk [vmem:[#allocation3 + $0xa] sm:$0x3] %vm246_vm3, %v373_v48  ;;  %389 = vst.msk [vmem:[#allocation3 + $0xc] sm:$0x3] %vm246_vm3, %v372_v47  ;;  %v218_v55 = vrot.slane %v204_v49, %v91_v12  ;;  %v219_v56 = vcombine.high %v211_v50, %v211_v50  ;;  %v355_v57 = vrot.slane %v341_v51, %v91_v12 }
  0xff   :  { %247 = vst.msk [vmem:[#allocation2] sm:$0x3] %vm246_vm3, %v211_v50  ;;  %v356_v58 = vcombine.high %v348_v52, %v348_v52  ;;  %383 = vst.msk [vmem:[#allocation3] sm:$0x3] %vm246_vm3, %v348_v52 }
 0x100   :  { %254 = vst.msk [vmem:[#allocation2 + $0xe] sm:$0x3] %vm246_vm3, %v237_v53  ;;  %390 = vst.msk [vmem:[#allocation3 + $0xe] sm:$0x3] %vm246_vm3, %v374_v54  ;;  %v220_v59 = vcombine.high %v218_v55, %v218_v55  ;;  %v357_v60 = vcombine.high %v355_v57, %v355_v57 }
 0x101   :  { %248 = vst.msk [vmem:[#allocation2 + $0x2] sm:$0x3] %vm246_vm3, %v219_v56  ;;  %249 = vst.msk [vmem:[#allocation2 + $0x4] sm:$0x3] %vm246_vm3, %v218_v55 }
 0x102   :  { %384 = vst.msk [vmem:[#allocation3 + $0x2] sm:$0x3] %vm246_vm3, %v356_v58  ;;  %385 = vst.msk [vmem:[#allocation3 + $0x4] sm:$0x3] %vm246_vm3, %v355_v57 }
 0x103   :  { %250 = vst.msk [vmem:[#allocation2 + $0x6] sm:$0x3] %vm246_vm3, %v220_v59  ;;  %386 = vst.msk [vmem:[#allocation3 + $0x6] sm:$0x3] %vm246_vm3, %v357_v60 }
 0x104 LB: > { %v905_v61 = vmov 0.0   ;;  %vm906_vm4 = vmmov 0   ;;  %v407_v62 = vld [vmem:[#allocation6] sm:$0x3]  ;;  %vm417_vm5 = vcmask 130048   ;;  %s907_s23 = smov 16   ;;  %s892_s0 = sphi %s1003_s0, %s405_s0  }
 0x105   : > { %767 = vmatprep.subr.mxu0 %v905_v61  ;;  %774 = vmatprep.subr.mxu1 %v905_v61  ;;  %v409_v63 = vld [vmem:[#allocation7] sm:$0x3]  ;;  %v408_v0 = vld [vmem:[#allocation6 + $0x2] sm:$0x3]  ;;  %v410_v1 = vld [vmem:[#allocation7 + $0x2] sm:$0x3] }
 0x106   : > { %768 = vmatpush3.msra.mxu0 %v953_v7  ;;  %771 = vmatprep.mubr.msk.f32.mxu0 %vm906_vm4, %v905_v61  ;;  %s406_s24 = ssub.s32 7, %s892_s0  ;;  %s739_s25 = sshll.u32 %s892_s0, 1 }
 0x107   : > { %769 = vmatprep.subr.mxu0 %v905_v61  ;;  %775 = vmatpush3.msra.mxu1 %v957_v9  ;;  %s1018_s26 = sshll.u32 %s406_s24, 1  ;;  %s412_s27 = scalar_lea.vmem [#allocation2], %s739_s25 }
 0x108   : > { %770 = vmatpush3.msra.mxu0 %v951_v6  ;;  %776 = vmatprep.subr.mxu1 %v905_v61  ;;  %s415_s28 = scalar_lea.vmem [#allocation3], %s1018_s26  ;;  %s908_s29 = smov 80  }
 0x109   : > { %772 = vmatmul.mubr.msk.f32.vlgmr.msra.gmra.mxu0 %vm417_vm5, %v407_v62  ;;  %777 = vmatpush3.msra.mxu1 %v955_v8  ;;  %s909_s30 = smov 112   ;;  %s910_s2 = smov 96  }
 0x10a   : > { %778 = vmatprep.mubr.msk.f32.mxu1 %vm906_vm4, %v905_v61  ;;  %582 = vrot.lane.b32.xlu1 %v409_v63, %s907_s23  ;;  %v413_v2 = vld [vmem:[%s412_s27] sm:$0x3]  ;;  %s642_s6 = scalar_lea.vmem [#allocation4], %s739_s25  ;;  %s644_s7 = scalar_lea.vmem [#allocation5], %s1018_s26 }
 0x10b   : > { %779 = vmatmul.mubr.msk.f32.vlgmr.msra.gmra.mxu1 %vm417_vm5, %v408_v0  ;;  %v416_v4 = vld [vmem:[%s415_s28] sm:$0x3]  ;;  %s405_s0 = sadd.s32 1, %s892_s0  }
 0x10c   : > { %p402_p1 = scmp.ge.s32.totalorder %s405_s0, 8  }
 0x10d   :  { %vm703_vm6 = vcmask (%p402_p1), 254976  }
 0x10e   : > { %584 = vrot.lane.b32.xlu1 %v410_v1, %s907_s23 }
 0x17c   : > { %v583_v28 = vpop.permute.xlu1 %582 }
 0x180   : > { %v585_v30 = vpop.permute.xlu1 %584 }
 0x1c9   : > { %v487_v3 = vpop.f32.mrf.mxu0 }
 0x1ca   : > { %v564_v5 = vadd.f32 %v487_v3, %v413_v2 }
 0x1cb   : > { %v773_v10 = vpop.f32.mrf.mxu0  ;;  %v560_v11 = vpop.f32.mrf.mxu1 }
 0x1cc   : > { %806 = vtanh.f32 %v564_v5  ;;  %v565_v12 = vadd.f32 %v560_v11, %v416_v4  ;;  %v743_v16 = vmul.f32 -1.442695, %v564_v5 }
 0x1cd   : > { %v780_v13 = vpop.f32.mrf.mxu1 }
 0x1ce   : > { %808 = vtanh.f32 %v565_v12  ;;  %v744_v17 = vmul.f32 -1.442695, %v565_v12 }
 0x1cf   : > { %810 = vpow2.f32 %v743_v16 }
 0x1d0   : > { %812 = vpow2.f32 %v744_v17 }
 0x1d9   : > { %v807_v14 = vpop.eup %806 }
 0x1da   : > { %592 = vrot.lane.b32.xlu0 %v807_v14, %s908_s29 }
 0x1db   : > { %v809_v15 = vpop.eup %808 }
 0x1dc   : > { %v811_v18 = vpop.eup %810 }
 0x1dd   : > { %v572_v19 = vadd.f32 1.0, %v811_v18  ;;  %v813_v20 = vpop.eup %812 }
 0x1de   : > { %594 = vrot.lane.b32.xlu0 %v809_v15, %s908_s29  ;;  %v573_v21 = vadd.f32 1.0, %v813_v20 }
 0x1df   : > { %814 = vrcp.f32 %v572_v19 }
 0x1e0   : > { %816 = vrcp.f32 %v573_v21 }
 0x1ec   : > { %v815_v22 = vpop.eup %814 }
 0x1ed   : > { %v817_v25 = vpop.eup %816  ;;  %v588_v29 = vmul.f32 %v815_v22, %v583_v28 }
 0x1ee   : > { %v589_v33 = vmul.f32 %v817_v25, %v585_v30 }
 0x24c   : > { %v593_v23 = vpop.permute.xlu0 %592 }
 0x24d   : > { %v598_v24 = vmul.f32 %v815_v22, %v593_v23 }
 0x24f   : > { %602 = vrot.lane.b32.xlu0 %v598_v24, %s907_s23 }
 0x250   : > { %v595_v26 = vpop.permute.xlu0 %594 }
 0x251   : > { %v599_v27 = vmul.f32 %v817_v25, %v595_v26 }
 0x253   : > { %604 = vrot.lane.b32.xlu1 %v599_v27, %s907_s23 }
 0x2c1   : > { %v603_v31 = vpop.permute.xlu0 %602 }
 0x2c2   : > { %v608_v32 = vadd.f32 %v603_v31, %v588_v29 }
 0x2c4   : > { %818 = vtanh.f32 %v608_v32 }
 0x2c5   : > { %v605_v34 = vpop.permute.xlu1 %604 }
 0x2c6   : > { %v609_v35 = vadd.f32 %v605_v34, %v589_v33 }
 0x2c8   : > { %820 = vtanh.f32 %v609_v35 }
 0x2d1   : > { %v819_v36 = vpop.eup %818 }
 0x2d2   : > { %614 = vrot.lane.b32.xlu0 %v819_v36, %s907_s23 }
 0x2d5   : > { %v821_v37 = vpop.eup %820 }
 0x2d6   : > { %624 = vrot.lane.b32.xlu0 %v608_v32, %s909_s30  ;;  %616 = vrot.lane.b32.xlu1 %v821_v37, %s907_s23 }
 0x2da   : > { %626 = vrot.lane.b32.xlu1 %v609_v35, %s909_s30 }
 0x344   : > { %v615_v38 = vpop.permute.xlu0 %614 }
 0x345   : > { %v620_v39 = vmul.f32 %v815_v22, %v615_v38 }
 0x347   : > { %634 = vrot.lane.b32.xlu0 %v620_v39, %s910_s2 }
 0x348   : > { %v625_v40 = vpop.permute.xlu0 %624  ;;  %v617_v41 = vpop.permute.xlu1 %616 }
 0x349   : > { %630 = vst.msk [vmem:[#allocation7] sm:$0x3] %vm391_vm0, %v625_v40  ;;  %v621_v42 = vmul.f32 %v817_v25, %v617_v41 }
 0x34b   : > { %636 = vrot.lane.b32.xlu1 %v621_v42, %s910_s2 }
 0x34c   : > { %v627_v43 = vpop.permute.xlu1 %626 }
 0x34d   : > { %631 = vst.msk [vmem:[#allocation7 + $0x2] sm:$0x3] %vm391_vm0, %v627_v43 }
 0x3b9   : > { %v635_v44 = vpop.permute.xlu0 %634 }
 0x3ba   : > { %640 = vst.msk [vmem:[#allocation6] sm:$0x3] %vm391_vm0, %v635_v44  ;;  %643 = vst.msk [vmem:[%s642_s6] sm:$0x3] %vm391_vm0, %v635_v44 }
 0x3bd   : > { %v637_v45 = vpop.permute.xlu1 %636 }
 0x3be   : > { %641 = vst.msk [vmem:[#allocation6 + $0x2] sm:$0x3] %vm391_vm0, %v637_v45  ;;  %645 = vst.msk [vmem:[%s644_s7] sm:$0x3] %vm391_vm0, %v637_v45 }
 0x3bf   :  { %404 = sbr.rel (!%p402_p1) target bundleno = 260 (0x104), region = 59 }
 0x3c1   :  { %v648_v6 = vld [vmem:[#allocation4 + $0x4] sm:$0x3] (%p402_p1)  ;;  %v646_v7 = vld [vmem:[#allocation4] sm:$0x3] (%p402_p1)  ;;  %v649_v56 = vld [vmem:[#allocation4 + $0x6] sm:$0x3] (%p402_p1) }
 0x3c2   :  { %v647_v57 = vld [vmem:[#allocation4 + $0x2] sm:$0x3] (%p402_p1)  ;;  %v651_v62 = vld [vmem:[#allocation4 + $0xa] sm:$0x3] (%p402_p1)  ;;  %v650_v63 = vld [vmem:[#allocation4 + $0x8] sm:$0x3] (%p402_p1) }
 0x3c3   :  { %v653_v4 = vld [vmem:[#allocation4 + $0xe] sm:$0x3] (%p402_p1)  ;;  %v652_v5 = vld [vmem:[#allocation4 + $0xc] sm:$0x3] (%p402_p1) }
 0x3c5   :  { %v656_v46 = vld [vmem:[#allocation5 + $0x4] sm:$0x3]  ;;  %v654_v47 = vld [vmem:[#allocation5] sm:$0x3]  ;;  %v657_v48 = vld [vmem:[#allocation5 + $0x6] sm:$0x3] }
 0x3c6   :  { %674 = vrot.lane.b32.xlu1 %v656_v46, %s901_s5  ;;  %670 = vrot.lane.b32.xlu0 %v654_v47, %s901_s5  ;;  %v655_v49 = vld [vmem:[#allocation5 + $0x2] sm:$0x3]  ;;  %v659_v50 = vld [vmem:[#allocation5 + $0xa] sm:$0x3]  ;;  %v658_v51 = vld [vmem:[#allocation5 + $0x8] sm:$0x3] }
 0x3c7   :  { %v661_v52 = vld [vmem:[#allocation5 + $0xe] sm:$0x3]  ;;  %v660_v53 = vld [vmem:[#allocation5 + $0xc] sm:$0x3] }
 0x3ca   :  { %676 = vrot.lane.b32.xlu1 %v657_v48, %s901_s5  ;;  %672 = vrot.lane.b32.xlu0 %v655_v49, %s901_s5 }
 0x3ce   :  { %680 = vrot.lane.b32.xlu1 %v659_v50, %s901_s5  ;;  %678 = vrot.lane.b32.xlu0 %v658_v51, %s901_s5 }
 0x3d2   :  { %684 = vrot.lane.b32.xlu1 %v661_v52, %s901_s5  ;;  %682 = vrot.lane.b32.xlu0 %v660_v53, %s901_s5 }
 0x438   :  { %v675_v8 = vpop.permute.xlu1 %674  ;;  %v671_v9 = vpop.permute.xlu0 %670 }
 0x439   :  { %v697_v54 = vsel %vm417_vm5, %v648_v6, %v675_v8  ;;  %v695_v55 = vsel %vm417_vm5, %v646_v7, %v671_v9 }
 0x43a   :  { %706 = vst.msk [vmem:[%s1091_s4 + $0x4] sm:$0x3] %vm703_vm6, %v697_v54  ;;  %704 = vst.msk [vmem:[%s1091_s4] sm:$0x3] %vm703_vm6, %v695_v55 }
 0x43c   :  { %v677_v58 = vpop.permute.xlu1 %676  ;;  %v673_v59 = vpop.permute.xlu0 %672 }
 0x43d   :  { %v698_v60 = vsel %vm417_vm5, %v649_v56, %v677_v58  ;;  %v696_v61 = vsel %vm417_vm5, %v647_v57, %v673_v59 }
 0x43e   :  { %707 = vst.msk [vmem:[%s1091_s4 + $0x6] sm:$0x3] %vm703_vm6, %v698_v60  ;;  %705 = vst.msk [vmem:[%s1091_s4 + $0x2] sm:$0x3] %vm703_vm6, %v696_v61 }
 0x440   :  { %v681_v0 = vpop.permute.xlu1 %680  ;;  %v679_v1 = vpop.permute.xlu0 %678 }
 0x441   :  { %v700_v2 = vsel %vm417_vm5, %v651_v62, %v681_v0  ;;  %v699_v3 = vsel %vm417_vm5, %v650_v63, %v679_v1 }
 0x442   :  { %709 = vst.msk [vmem:[%s1091_s4 + $0xa] sm:$0x3] %vm703_vm6, %v700_v2  ;;  %708 = vst.msk [vmem:[%s1091_s4 + $0x8] sm:$0x3] %vm703_vm6, %v699_v3 }
 0x444   :  { %v685_v10 = vpop.permute.xlu1 %684  ;;  %v683_v11 = vpop.permute.xlu0 %682 }
 0x445   :  { %v702_v12 = vsel %vm417_vm5, %v653_v4, %v685_v10  ;;  %v701_v13 = vsel %vm417_vm5, %v652_v5, %v683_v11 }
 0x446   :  { %711 = vst.msk [vmem:[%s1091_s4 + $0xe] sm:$0x3] %vm703_vm6, %v702_v12  ;;  %710 = vst.msk [vmem:[%s1091_s4 + $0xc] sm:$0x3] %vm703_vm6, %v701_v13 }
 0x447   :  { %716 = vsyncpa [#allocation9], 1 }
 0x448   :  { %717 = vsyncpa [#allocation11], 1 }

// kernel: sequential_module_forward.8
= control target key start
LH: loop header
LB: loop body
LE: loop exit
PB: predicated region body
PF: predicated region fallthrough
CT: control target
= control target key end

     0   :  { %9 = vsyncpa [#allocation9], 0  ;;  %s1108_s0 = inlined_call_operand.vmem [shape: f32[8,2,32], index: 0, kind: input, shape index: {}]   ;;  %s1109_s1 = inlined_call_operand.hbm [shape: f32[2,32,64], index: 1, kind: input, shape index: {}]   ;;  %s1110_s2 = inlined_call_operand.hbm [shape: f32[2,16,64], index: 2, kind: input, shape index: {}]   ;;  %s1111_s3 = inlined_call_operand.hbm [shape: f32[2,1,64], index: 3, kind: input, shape index: {}]   ;;  %s1112_s4 = inlined_call_operand.vmem [shape: f32[8,2,32], index: 4, kind: output, shape index: {}]  }
   0x1   :  { %10 = vsyncpa [#allocation11], 0  ;;  %s907_s15 = smov [#allocation10]   ;;  %s908_s17 = smov [#allocation8]  }
   0x2   :  { %s30_s16 = sshll.u32 %s907_s15, 4  ;;  %s18_s18 = sshll.u32 %s908_s17, 4  ;;  %s31_s16 = int_to_ptr.vmem [resolvable:$true] %s30_s16  ;;  %s19_s18 = int_to_ptr.vmem [resolvable:$true] %s18_s18 }
   0x3   :  { %s843_s19 = scalar_lea.vmem %s31_s16, 512  ;;  %p848_p1 = scmp.lt.s32.totalorder %s31_s16, %s31_s16 }
   0x4   :  { %p844_p0 = scmp.ne.s32.totalorder %s31_s16, %s843_s19  ;;  %p849_p2 = scmp.lt.s32.totalorder %s843_s19, %s843_s19 }
   0x6   :  { %p850_p3 = por %p849_p2, %p848_p1 }
   0x8   :  { %p851_p4 = pnand %p850_p3, %p844_p0 }
   0xa   :  { %854 = shalt.err (!%p851_p4)
}
   0xb   :  { %s909_s20 = smov 128   ;;  %s910_s21 = smov 8  }
   0xc   :  { %36 = dma.hbm_to_vmem [thread:$0]  %s1110_s2, 512, %s31_s16, [#allocation11], %s909_s20, %s909_s20, %s910_s21  }
   0xd   :  { %s863_s24 = scalar_lea.vmem %s19_s18, 1024  ;;  %p868_p6 = scmp.lt.s32.totalorder %s19_s18, %s19_s18 }
   0xe   :  { %p864_p5 = scmp.ne.s32.totalorder %s19_s18, %s863_s24  ;;  %p869_p7 = scmp.lt.s32.totalorder %s863_s24, %s863_s24 }
  0x10   :  { %p870_p8 = por %p869_p7, %p868_p6 }
  0x12   :  { %p871_p9 = pnand %p870_p8, %p864_p5 }
  0x14   :  { %874 = shalt.err (!%p871_p9)
}
  0x15   :  { %24 = dma.hbm_to_vmem [thread:$0]  %s1109_s1, 1024, %s19_s18, [#allocation9], %s909_s20, %s909_s20, %s910_s21  }
  0x16   :  { %s911_s27 = smov [#allocation12]  }
  0x17   :  { %s42_s28 = sshll.u32 %s911_s27, 4  ;;  %s43_s28 = int_to_ptr.vmem [resolvable:$true] %s42_s28 }
  0x18   :  { %s883_s29 = scalar_lea.vmem %s43_s28, 32  ;;  %p888_p11 = scmp.lt.s32.totalorder %s43_s28, %s43_s28 }
  0x19   :  { %p884_p10 = scmp.ne.s32.totalorder %s43_s28, %s883_s29  ;;  %p889_p12 = scmp.lt.s32.totalorder %s883_s29, %s883_s29 }
  0x1b   :  { %p890_p13 = por %p889_p12, %p888_p11 }
  0x1d   :  { %p891_p0 = pnand %p890_p13, %p884_p10 }
  0x1f   :  { %894 = shalt.err (!%p891_p0)
}
  0x20   :  { %s912_s2 = smov 16   ;;  %s913_s30 = smov 1  }
  0x21   :  { %48 = dma.hbm_to_vmem [thread:$0]  %s1111_s3, 32, %s43_s28, [#allocation11], %s912_s2, %s912_s2, %s913_s30  }
  0x22   :  { %899 = dma.done.wait [#allocation9], 1024  }
  0x23   :  { %900 = vsyncadd [#allocation9], 4294966272 }
  0x24   :  { %901 = dma.done.wait [#allocation11], 544  }
  0x25   :  { %902 = vsyncadd [#allocation11], 4294966752  ;;  %vm390_vm0 = vcmask 123904   ;;  %v914_v0 = vmov 0.0   ;;  %v915_v1 = vmov 1983009808   ;;  %v95_v3 = vlaneseq }
  0x26   :  { %391 = vst.msk [vmem:[#allocation6] sm:$0x3] %vm390_vm0, %v914_v0  ;;  %392 = vst.msk [vmem:[#allocation6 + $0x2] sm:$0x3] %vm390_vm0, %v914_v0  ;;  %v93_v2 = vunpack.c.l.s4 %v915_v1  ;;  %v962_v6 = vld [vmem:[#allocation10] sm:$0xff]  ;;  %v964_v7 = vld [vmem:[#allocation10 + $0x8] sm:$0xff] }
  0x27   :  { %393 = vst.msk [vmem:[#allocation7] sm:$0x3] %vm390_vm0, %v914_v0  ;;  %394 = vst.msk [vmem:[#allocation7 + $0x2] sm:$0x3] %vm390_vm0, %v914_v0  ;;  %v96_v5 = vshrl.u32 %v95_v3, 7  ;;  %v966_v8 = vld [vmem:[#allocation10 + $0x10] sm:$0xff] }
  0x28   :  { %v94_v4 = vunpack.c.0.s8 %v93_v2  ;;  %v968_v9 = vld [vmem:[#allocation10 + $0x18] sm:$0xff]  ;;  %v68_v12 = vld [vmem:[#allocation8 + $0x10] sm:$0xff]  ;;  %v67_v14 = vld [vmem:[#allocation8 + $0x8] sm:$0xff]  ;;  %vm124_vm1 = vcmask 261120   ;;  %vm248_vm2 = vcmask 517120  }
  0x29   :  { %v69_v10 = vld [vmem:[#allocation8 + $0x18] sm:$0xff]  ;;  %v72_v13 = vld [vmem:[#allocation8 + $0x30] sm:$0xff]  ;;  %v71_v15 = vld [vmem:[#allocation8 + $0x28] sm:$0xff] }
  0x2a   :  { %v73_v11 = vld [vmem:[#allocation8 + $0x38] sm:$0xff]  ;;  %760 = vmatprep.subr.mxu0 %v69_v10  ;;  %v66_v16 = vld [vmem:[#allocation8] sm:$0xff]  ;;  %v970_v18 = vsub.s32 %v94_v4, %v96_v5 }
  0x2b   :  { %771 = vmatprep.subr.mxu1 %v73_v11  ;;  %761 = vmatpush3.msra.mxu0 %v69_v10  ;;  %v70_v17 = vld [vmem:[#allocation8 + $0x20] sm:$0xff]  ;;  %v58_v19 = vld [vmem:[%s1108_s0] sm:$0x3]  ;;  %v59_v20 = vld [vmem:[%s1108_s0 + $0x2] sm:$0x3] }
  0x2c   :  { %772 = vmatpush3.msra.mxu1 %v73_v11  ;;  %762 = vmatprep.subr.mxu0 %v68_v12  ;;  %v60_v21 = vld [vmem:[%s1108_s0 + $0x4] sm:$0x3]  ;;  %v61_v22 = vld [vmem:[%s1108_s0 + $0x6] sm:$0x3]  ;;  %v90_v23 = vcombine.low %v58_v19, %v59_v20  ;;  %v62_v24 = vld [vmem:[%s1108_s0 + $0x8] sm:$0x3] }
  0x2d   :  { %773 = vmatprep.subr.mxu1 %v72_v13  ;;  %763 = vmatpush3.msra.mxu0 %v68_v12  ;;  %v63_v25 = vld [vmem:[%s1108_s0 + $0xa] sm:$0x3]  ;;  %v91_v26 = vcombine.low %v60_v21, %v61_v22  ;;  %v64_v27 = vld [vmem:[%s1108_s0 + $0xc] sm:$0x3]  ;;  %v65_v28 = vld [vmem:[%s1108_s0 + $0xe] sm:$0x3] }
  0x2e   :  { %774 = vmatpush3.msra.mxu1 %v72_v13  ;;  %764 = vmatprep.subr.mxu0 %v67_v14  ;;  %v107_v29 = vcombine.low %v62_v24, %v63_v25  ;;  %v98_v30 = vrot.slane %v90_v23, %v970_v18  ;;  %v108_v31 = vcombine.low %v64_v27, %v65_v28  ;;  %v730_v37 = vld [vmem:[#allocation12] ss:$0 sm:$0xff]  ;;  %v733_v38 = vld [vmem:[#allocation12 + $0x1] ss:$0 sm:$0xff]  ;;  %s1024_s0 = smov 0  }
  0x2f   :  { %775 = vmatprep.subr.mxu1 %v71_v15  ;;  %765 = vmatpush3.msra.mxu0 %v67_v14  ;;  %v105_v32 = vrot.slane %v91_v26, %v970_v18 }
  0x30   :  { %776 = vmatpush3.msra.mxu1 %v71_v15  ;;  %766 = vmatprep.subr.mxu0 %v66_v16  ;;  %v115_v33 = vrot.slane %v107_v29, %v970_v18  ;;  %v122_v34 = vrot.slane %v108_v31, %v970_v18 }
  0x31   :  { %777 = vmatprep.subr.mxu1 %v70_v17  ;;  %767 = vmatpush3.msra.mxu0 %v66_v16  ;;  %v106_v35 = vcombine.low %v98_v30, %v105_v32 }
  0x32   :  { %778 = vmatpush3.msra.mxu1 %v70_v17  ;;  %v123_v36 = vcombine.low %v115_v33, %v122_v34 }
  0x33   :  { %768 = vmatprep.mubr.msk.f32.mxu0 %vm124_vm1, %v106_v35  ;;  %779 = vmatprep.mubr.msk.f32.mxu1 %vm124_vm1, %v106_v35 }
  0x34   :  { %769 = vmatmul.mubr.msk.f32.vlgmr.msra.gmra.mxu0 %vm124_vm1, %v123_v36  ;;  %780 = vmatmul.mubr.msk.f32.vlgmr.msra.gmra.mxu1 %vm124_vm1, %v123_v36 }
  0xf4   :  { %v770_v39 = vpop.f32.mrf.mxu0  ;;  %v781_v40 = vpop.f32.mrf.mxu1 }
  0xf5   :  { %v201_v41 = vadd.f32 %v770_v39, %v730_v37  ;;  %v335_v42 = vadd.f32 %v781_v40, %v733_v38 }
  0xf6   :  { %v195_v43 = vpop.f32.mrf.mxu0  ;;  %v329_v44 = vpop.f32.mrf.mxu1 }
  0xf7   :  { %v223_v45 = vcombine.high %v201_v41, %v201_v41  ;;  %v230_v46 = vrot.slane %v201_v41, %v970_v18  ;;  %v357_v47 = vcombine.high %v335_v42, %v335_v42  ;;  %v364_v48 = vrot.slane %v335_v42, %v970_v18 }
  0xf8   :  { %v196_v49 = vadd.f32 %v730_v37, %v195_v43  ;;  %v330_v50 = vadd.f32 %v733_v38, %v329_v44 }
  0xf9   :  { %v237_v51 = vrot.slane %v223_v45, %v970_v18  ;;  %v238_v52 = vcombine.high %v230_v46, %v230_v46  ;;  %253 = vst.msk [vmem:[#allocation2 + $0x8] sm:$0x3] %vm248_vm2, %v230_v46  ;;  %v371_v53 = vrot.slane %v357_v47, %v970_v18  ;;  %v372_v54 = vcombine.high %v364_v48, %v364_v48 }
  0xfa   :  { %386 = vst.msk [vmem:[#allocation3 + $0x8] sm:$0x3] %vm248_vm2, %v364_v48  ;;  %v206_v55 = vcombine.high %v196_v49, %v196_v49  ;;  %v213_v56 = vrot.slane %v196_v49, %v970_v18  ;;  %v340_v57 = vcombine.high %v330_v50, %v330_v50  ;;  %v347_v58 = vrot.slane %v330_v50, %v970_v18 }
  0xfb   :  { %v239_v59 = vcombine.high %v237_v51, %v237_v51  ;;  %254 = vst.msk [vmem:[#allocation2 + $0xa] sm:$0x3] %vm248_vm2, %v238_v52  ;;  %255 = vst.msk [vmem:[#allocation2 + $0xc] sm:$0x3] %vm248_vm2, %v237_v51  ;;  %v373_v60 = vcombine.high %v371_v53, %v371_v53 }
  0xfc   :  { %387 = vst.msk [vmem:[#allocation3 + $0xa] sm:$0x3] %vm248_vm2, %v372_v54  ;;  %388 = vst.msk [vmem:[#allocation3 + $0xc] sm:$0x3] %vm248_vm2, %v371_v53  ;;  %v220_v61 = vrot.slane %v206_v55, %v970_v18  ;;  %v221_v62 = vcombine.high %v213_v56, %v213_v56  ;;  %v354_v63 = vrot.slane %v340_v57, %v970_v18 }
  0xfd   :  { %249 = vst.msk [vmem:[#allocation2] sm:$0x3] %vm248_vm2, %v213_v56  ;;  %v355_v0 = vcombine.high %v347_v58, %v347_v58  ;;  %382 = vst.msk [vmem:[#allocation3] sm:$0x3] %vm248_vm2, %v347_v58 }
  0xfe   :  { %256 = vst.msk [vmem:[#allocation2 + $0xe] sm:$0x3] %vm248_vm2, %v239_v59  ;;  %389 = vst.msk [vmem:[#allocation3 + $0xe] sm:$0x3] %vm248_vm2, %v373_v60  ;;  %v222_v1 = vcombine.high %v220_v61, %v220_v61  ;;  %v356_v2 = vcombine.high %v354_v63, %v354_v63 }
  0xff   :  { %250 = vst.msk [vmem:[#allocation2 + $0x2] sm:$0x3] %vm248_vm2, %v221_v62  ;;  %251 = vst.msk [vmem:[#allocation2 + $0x4] sm:$0x3] %vm248_vm2, %v220_v61 }
 0x100   :  { %383 = vst.msk [vmem:[#allocation3 + $0x2] sm:$0x3] %vm248_vm2, %v355_v0  ;;  %384 = vst.msk [vmem:[#allocation3 + $0x4] sm:$0x3] %vm248_vm2, %v354_v63 }
 0x101   :  { %252 = vst.msk [vmem:[#allocation2 + $0x6] sm:$0x3] %vm248_vm2, %v222_v1  ;;  %385 = vst.msk [vmem:[#allocation3 + $0x6] sm:$0x3] %vm248_vm2, %v356_v2 }
 0x102 LB: > { %v916_v3 = vmov 0.0   ;;  %vm917_vm3 = vmmov 0   ;;  %v406_v4 = vld [vmem:[#allocation6] sm:$0x3]  ;;  %vm416_vm4 = vcmask 130048   ;;  %s918_s21 = smov 16   ;;  %s905_s0 = sphi %s1024_s0, %s404_s0  }
 0x103   : > { %782 = vmatprep.subr.mxu0 %v916_v3  ;;  %789 = vmatprep.subr.mxu1 %v916_v3  ;;  %v408_v5 = vld [vmem:[#allocation7] sm:$0x3]  ;;  %v407_v10 = vld [vmem:[#allocation6 + $0x2] sm:$0x3]  ;;  %v409_v11 = vld [vmem:[#allocation7 + $0x2] sm:$0x3] }
 0x104   : > { %783 = vmatpush3.msra.mxu0 %v964_v7  ;;  %786 = vmatprep.mubr.msk.f32.mxu0 %vm917_vm3, %v916_v3  ;;  %s405_s22 = ssub.s32 7, %s905_s0  ;;  %s736_s23 = sshll.u32 %s905_s0, 1 }
 0x105   : > { %784 = vmatprep.subr.mxu0 %v916_v3  ;;  %790 = vmatpush3.msra.mxu1 %v968_v9  ;;  %s1039_s24 = sshll.u32 %s405_s22, 1  ;;  %s411_s25 = scalar_lea.vmem [#allocation2], %s736_s23 }
 0x106   : > { %785 = vmatpush3.msra.mxu0 %v962_v6  ;;  %791 = vmatprep.subr.mxu1 %v916_v3  ;;  %s414_s26 = scalar_lea.vmem [#allocation3], %s1039_s24  ;;  %s919_s27 = smov 80  }
 0x107   : > { %787 = vmatmul.mubr.msk.f32.vlgmr.msra.gmra.mxu0 %vm416_vm4, %v406_v4  ;;  %792 = vmatpush3.msra.mxu1 %v966_v8  ;;  %s920_s28 = smov 112   ;;  %s921_s29 = smov 96  }
 0x108   : > { %793 = vmatprep.mubr.msk.f32.mxu1 %vm917_vm3, %v916_v3  ;;  %581 = vrot.lane.b32.xlu1 %v408_v5, %s918_s21  ;;  %v412_v12 = vld [vmem:[%s411_s25] sm:$0x3]  ;;  %s641_s30 = scalar_lea.vmem [#allocation4], %s736_s23  ;;  %s643_s5 = scalar_lea.vmem [#allocation5], %s1039_s24 }
 0x109   : > { %794 = vmatmul.mubr.msk.f32.vlgmr.msra.gmra.mxu1 %vm416_vm4, %v407_v10  ;;  %v415_v14 = vld [vmem:[%s414_s26] sm:$0x3]  ;;  %s404_s0 = sadd.s32 1, %s905_s0  }
 0x10a   : > { %p401_p1 = scmp.ge.s32.totalorder %s404_s0, 8  }
 0x10b   :  { %vm702_vm5 = vcmask (%p401_p1), 254976  }
 0x10c   : > { %583 = vrot.lane.b32.xlu1 %v409_v11, %s918_s21 }
 0x17a   : > { %v582_v34 = vpop.permute.xlu1 %581 }
 0x17e   : > { %v584_v36 = vpop.permute.xlu1 %583 }
 0x1c7   : > { %v486_v13 = vpop.f32.mrf.mxu0 }
 0x1c8   : > { %v563_v15 = vadd.f32 %v486_v13, %v412_v12 }
 0x1c9   : > { %v788_v16 = vpop.f32.mrf.mxu0  ;;  %v559_v17 = vpop.f32.mrf.mxu1 }
 0x1ca   : > { %819 = vtanh.f32 %v563_v15  ;;  %v564_v18 = vadd.f32 %v559_v17, %v415_v14  ;;  %v740_v22 = vmul.f32 -1.442695, %v563_v15 }
 0x1cb   : > { %v795_v19 = vpop.f32.mrf.mxu1 }
 0x1cc   : > { %821 = vtanh.f32 %v564_v18  ;;  %v741_v23 = vmul.f32 -1.442695, %v564_v18 }
 0x1cd   : > { %823 = vpow2.f32 %v740_v22 }
 0x1ce   : > { %825 = vpow2.f32 %v741_v23 }
 0x1d7   : > { %v820_v20 = vpop.eup %819 }
 0x1d8   : > { %591 = vrot.lane.b32.xlu0 %v820_v20, %s919_s27 }
 0x1d9   : > { %v822_v21 = vpop.eup %821 }
 0x1da   : > { %v824_v24 = vpop.eup %823 }
 0x1db   : > { %v571_v25 = vadd.f32 1.0, %v824_v24  ;;  %v826_v26 = vpop.eup %825 }
 0x1dc   : > { %593 = vrot.lane.b32.xlu0 %v822_v21, %s919_s27  ;;  %v572_v27 = vadd.f32 1.0, %v826_v26 }
 0x1dd   : > { %827 = vrcp.f32 %v571_v25 }
 0x1de   : > { %829 = vrcp.f32 %v572_v27 }
 0x1ea   : > { %v828_v28 = vpop.eup %827 }
 0x1eb   : > { %v830_v31 = vpop.eup %829  ;;  %v587_v35 = vmul.f32 %v828_v28, %v582_v34 }
 0x1ec   : > { %v588_v39 = vmul.f32 %v830_v31, %v584_v36 }
 0x24a   : > { %v592_v29 = vpop.permute.xlu0 %591 }
 0x24b   : > { %v597_v30 = vmul.f32 %v828_v28, %v592_v29 }
 0x24d   : > { %601 = vrot.lane.b32.xlu0 %v597_v30, %s918_s21 }
 0x24e   : > { %v594_v32 = vpop.permute.xlu0 %593 }
 0x24f   : > { %v598_v33 = vmul.f32 %v830_v31, %v594_v32 }
 0x251   : > { %603 = vrot.lane.b32.xlu1 %v598_v33, %s918_s21 }
 0x2bf   : > { %v602_v37 = vpop.permute.xlu0 %601 }
 0x2c0   : > { %v607_v38 = vadd.f32 %v602_v37, %v587_v35 }
 0x2c2   : > { %831 = vtanh.f32 %v607_v38 }
 0x2c3   : > { %v604_v40 = vpop.permute.xlu1 %603 }
 0x2c4   : > { %v608_v41 = vadd.f32 %v604_v40, %v588_v39 }
 0x2c6   : > { %833 = vtanh.f32 %v608_v41 }
 0x2cf   : > { %v832_v42 = vpop.eup %831 }
 0x2d0   : > { %613 = vrot.lane.b32.xlu0 %v832_v42, %s918_s21 }
 0x2d3   : > { %v834_v43 = vpop.eup %833 }
 0x2d4   : > { %623 = vrot.lane.b32.xlu0 %v607_v38, %s920_s28  ;;  %615 = vrot.lane.b32.xlu1 %v834_v43, %s918_s21 }
 0x2d8   : > { %625 = vrot.lane.b32.xlu1 %v608_v41, %s920_s28 }
 0x342   : > { %v614_v44 = vpop.permute.xlu0 %613 }
 0x343   : > { %v619_v45 = vmul.f32 %v828_v28, %v614_v44 }
 0x345   : > { %633 = vrot.lane.b32.xlu0 %v619_v45, %s921_s29 }
 0x346   : > { %v624_v46 = vpop.permute.xlu0 %623  ;;  %v616_v47 = vpop.permute.xlu1 %615 }
 0x347   : > { %629 = vst.msk [vmem:[#allocation7] sm:$0x3] %vm390_vm0, %v624_v46  ;;  %v620_v48 = vmul.f32 %v830_v31, %v616_v47 }
 0x349   : > { %635 = vrot.lane.b32.xlu1 %v620_v48, %s921_s29 }
 0x34a   : > { %v626_v49 = vpop.permute.xlu1 %625 }
 0x34b   : > { %630 = vst.msk [vmem:[#allocation7 + $0x2] sm:$0x3] %vm390_vm0, %v626_v49 }
 0x3b7   : > { %v634_v50 = vpop.permute.xlu0 %633 }
 0x3b8   : > { %639 = vst.msk [vmem:[#allocation6] sm:$0x3] %vm390_vm0, %v634_v50  ;;  %642 = vst.msk [vmem:[%s641_s30] sm:$0x3] %vm390_vm0, %v634_v50 }
 0x3bb   : > { %v636_v51 = vpop.permute.xlu1 %635 }
 0x3bc   : > { %640 = vst.msk [vmem:[#allocation6 + $0x2] sm:$0x3] %vm390_vm0, %v636_v51  ;;  %644 = vst.msk [vmem:[%s643_s5] sm:$0x3] %vm390_vm0, %v636_v51 }
 0x3bd   :  { %403 = sbr.rel (!%p401_p1) target bundleno = 258 (0x102), region = 59 }
 0x3bf   :  { %v647_v6 = vld [vmem:[#allocation4 + $0x4] sm:$0x3] (%p401_p1)  ;;  %v645_v7 = vld [vmem:[#allocation4] sm:$0x3] (%p401_p1)  ;;  %v648_v62 = vld [vmem:[#allocation4 + $0x6] sm:$0x3] (%p401_p1) }
 0x3c0   :  { %v646_v63 = vld [vmem:[#allocation4 + $0x2] sm:$0x3] (%p401_p1)  ;;  %v650_v4 = vld [vmem:[#allocation4 + $0xa] sm:$0x3] (%p401_p1)  ;;  %v649_v5 = vld [vmem:[#allocation4 + $0x8] sm:$0x3] (%p401_p1) }
 0x3c1   :  { %v652_v14 = vld [vmem:[#allocation4 + $0xe] sm:$0x3] (%p401_p1)  ;;  %v651_v15 = vld [vmem:[#allocation4 + $0xc] sm:$0x3] (%p401_p1) }
 0x3c3   :  { %v655_v52 = vld [vmem:[#allocation5 + $0x4] sm:$0x3]  ;;  %v653_v53 = vld [vmem:[#allocation5] sm:$0x3]  ;;  %v656_v54 = vld [vmem:[#allocation5 + $0x6] sm:$0x3] }
 0x3c4   :  { %673 = vrot.lane.b32.xlu1 %v655_v52, %s912_s2  ;;  %669 = vrot.lane.b32.xlu0 %v653_v53, %s912_s2  ;;  %v654_v55 = vld [vmem:[#allocation5 + $0x2] sm:$0x3]  ;;  %v658_v56 = vld [vmem:[#allocation5 + $0xa] sm:$0x3]  ;;  %v657_v57 = vld [vmem:[#allocation5 + $0x8] sm:$0x3] }
 0x3c5   :  { %v660_v58 = vld [vmem:[#allocation5 + $0xe] sm:$0x3]  ;;  %v659_v59 = vld [vmem:[#allocation5 + $0xc] sm:$0x3] }
 0x3c8   :  { %675 = vrot.lane.b32.xlu1 %v656_v54, %s912_s2  ;;  %671 = vrot.lane.b32.xlu0 %v654_v55, %s912_s2 }
 0x3cc   :  { %679 = vrot.lane.b32.xlu1 %v658_v56, %s912_s2  ;;  %677 = vrot.lane.b32.xlu0 %v657_v57, %s912_s2 }
 0x3d0   :  { %683 = vrot.lane.b32.xlu1 %v660_v58, %s912_s2  ;;  %681 = vrot.lane.b32.xlu0 %v659_v59, %s912_s2 }
 0x436   :  { %v674_v8 = vpop.permute.xlu1 %673  ;;  %v670_v9 = vpop.permute.xlu0 %669 }
 0x437   :  { %v696_v60 = vsel %vm416_vm4, %v647_v6, %v674_v8  ;;  %v694_v61 = vsel %vm416_vm4, %v645_v7, %v670_v9 }
 0x438   :  { %705 = vst.msk [vmem:[%s1112_s4 + $0x4] sm:$0x3] %vm702_vm5, %v696_v60  ;;  %703 = vst.msk [vmem:[%s1112_s4] sm:$0x3] %vm702_vm5, %v694_v61 }
 0x43a   :  { %v676_v0 = vpop.permute.xlu1 %675  ;;  %v672_v1 = vpop.permute.xlu0 %671 }
 0x43b   :  { %v697_v2 = vsel %vm416_vm4, %v648_v62, %v676_v0  ;;  %v695_v3 = vsel %vm416_vm4, %v646_v63, %v672_v1 }
 0x43c   :  { %706 = vst.msk [vmem:[%s1112_s4 + $0x6] sm:$0x3] %vm702_vm5, %v697_v2  ;;  %704 = vst.msk [vmem:[%s1112_s4 + $0x2] sm:$0x3] %vm702_vm5, %v695_v3 }
 0x43e   :  { %v680_v10 = vpop.permute.xlu1 %679  ;;  %v678_v11 = vpop.permute.xlu0 %677 }
 0x43f   :  { %v699_v12 = vsel %vm416_vm4, %v650_v4, %v680_v10  ;;  %v698_v13 = vsel %vm416_vm4, %v649_v5, %v678_v11 }
 0x440   :  { %708 = vst.msk [vmem:[%s1112_s4 + $0xa] sm:$0x3] %vm702_vm5, %v699_v12  ;;  %707 = vst.msk [vmem:[%s1112_s4 + $0x8] sm:$0x3] %vm702_vm5, %v698_v13 }
 0x442   :  { %v684_v16 = vpop.permute.xlu1 %683  ;;  %v682_v17 = vpop.permute.xlu0 %681 }
 0x443   :  { %v701_v18 = vsel %vm416_vm4, %v652_v14, %v684_v16  ;;  %v700_v19 = vsel %vm416_vm4, %v651_v15, %v682_v17 }
 0x444   :  { %710 = vst.msk [vmem:[%s1112_s4 + $0xe] sm:$0x3] %vm702_vm5, %v701_v18  ;;  %709 = vst.msk [vmem:[%s1112_s4 + $0xc] sm:$0x3] %vm702_vm5, %v700_v19 }
 0x445   :  { %715 = vsyncpa [#allocation9], 1 }
 0x446   :  { %716 = vsyncpa [#allocation11], 1 }

// kernel: sequential_module_forward.10
= control target key start
LH: loop header
LB: loop body
LE: loop exit
PB: predicated region body
PF: predicated region fallthrough
CT: control target
= control target key end

     0   :  { %9 = vsyncpa [#allocation9], 0  ;;  %s1094_s0 = inlined_call_operand.vmem [shape: f32[8,2,32], index: 0, kind: input, shape index: {}]   ;;  %s1095_s1 = inlined_call_operand.vmem [shape: f32[2,32,64], index: 1, kind: input, shape index: {}]   ;;  %s1096_s2 = inlined_call_operand.hbm [shape: f32[2,16,64], index: 2, kind: input, shape index: {}]   ;;  %s1097_s3 = inlined_call_operand.hbm [shape: f32[2,1,64], index: 3, kind: input, shape index: {}]   ;;  %s1098_s4 = inlined_call_operand.vmem [shape: f32[8,2,32], index: 4, kind: output, shape index: {}]  }
   0x1   :  { %10 = vsyncpa [#allocation11], 0  ;;  %s873_s15 = smov [#allocation8]  }
   0x2   :  { %s20_s16 = sshll.u32 %s873_s15, 4  ;;  %s21_s16 = int_to_ptr.vmem [resolvable:$true] %s20_s16 }
   0x3   :  { %s829_s17 = scalar_lea.vmem %s21_s16, 512  ;;  %p834_p1 = scmp.lt.s32.totalorder %s21_s16, %s21_s16 }
   0x4   :  { %p830_p0 = scmp.ne.s32.totalorder %s21_s16, %s829_s17  ;;  %p835_p2 = scmp.lt.s32.totalorder %s829_s17, %s829_s17 }
   0x6   :  { %p836_p3 = por %p835_p2, %p834_p1 }
   0x8   :  { %p837_p4 = pnand %p836_p3, %p830_p0 }
   0xa   :  { %840 = shalt.err (!%p837_p4)
}
   0xb   :  { %s874_s18 = smov 128   ;;  %s875_s19 = smov 8  }
   0xc   :  { %26 = dma.hbm_to_vmem [thread:$0]  %s1096_s2, 512, %s21_s16, [#allocation9], %s874_s18, %s874_s18, %s875_s19  }
   0xd   :  { %s876_s22 = smov [#allocation10]  }
   0xe   :  { %s32_s23 = sshll.u32 %s876_s22, 4  ;;  %s33_s23 = int_to_ptr.vmem [resolvable:$true] %s32_s23 }
   0xf   :  { %s849_s24 = scalar_lea.vmem %s33_s23, 32  ;;  %p854_p6 = scmp.lt.s32.totalorder %s33_s23, %s33_s23 }
  0x10   :  { %p850_p5 = scmp.ne.s32.totalorder %s33_s23, %s849_s24  ;;  %p855_p7 = scmp.lt.s32.totalorder %s849_s24, %s849_s24 }
  0x12   :  { %p856_p8 = por %p855_p7, %p854_p6 }
  0x14   :  { %p857_p9 = pnand %p856_p8, %p850_p5 }
  0x16   :  { %860 = shalt.err (!%p857_p9)
}
  0x17   :  { %s877_s25 = smov 16   ;;  %s878_s26 = smov 1  }
  0x18   :  { %38 = dma.hbm_to_vmem [thread:$0]  %s1097_s3, 32, %s33_s23, [#allocation11], %s877_s25, %s877_s25, %s878_s26  }
  0x19   :  { %865 = dma.done.wait [#allocation9], 512  }
  0x1a   :  { %866 = vsyncadd [#allocation9], 4294966784 }
  0x1b   :  { %867 = dma.done.wait [#allocation11], 32  }
  0x1c   :  { %868 = vsyncadd [#allocation11], 4294967264  ;;  %vm377_vm0 = vcmask 123904   ;;  %v879_v0 = vmov 0.0   ;;  %v880_v1 = vmov 1983009808   ;;  %v82_v3 = vlaneseq }
  0x1d   :  { %378 = vst.msk [vmem:[#allocation6] sm:$0x3] %vm377_vm0, %v879_v0  ;;  %379 = vst.msk [vmem:[#allocation6 + $0x2] sm:$0x3] %vm377_vm0, %v879_v0  ;;  %v80_v2 = vunpack.c.l.s4 %v880_v1  ;;  %v924_v6 = vld [vmem:[#allocation8] sm:$0xff]  ;;  %v926_v7 = vld [vmem:[#allocation8 + $0x8] sm:$0xff] }
  0x1e   :  { %380 = vst.msk [vmem:[#allocation7] sm:$0x3] %vm377_vm0, %v879_v0  ;;  %381 = vst.msk [vmem:[#allocation7 + $0x2] sm:$0x3] %vm377_vm0, %v879_v0  ;;  %v83_v5 = vshrl.u32 %v82_v3, 7  ;;  %v928_v8 = vld [vmem:[#allocation8 + $0x10] sm:$0xff] }
  0x1f   :  { %v81_v4 = vunpack.c.0.s8 %v80_v2  ;;  %v930_v9 = vld [vmem:[#allocation8 + $0x18] sm:$0xff]  ;;  %v56_v10 = vld [vmem:[%s1095_s1 + $0x18] sm:$0xff]  ;;  %v55_v12 = vld [vmem:[%s1095_s1 + $0x10] sm:$0xff]  ;;  %vm111_vm1 = vcmask 261120   ;;  %vm235_vm2 = vcmask 517120  }
  0x20   :  { %v60_v11 = vld [vmem:[%s1095_s1 + $0x38] sm:$0xff]  ;;  %747 = vmatprep.subr.mxu0 %v56_v10  ;;  %v59_v13 = vld [vmem:[%s1095_s1 + $0x30] sm:$0xff]  ;;  %v54_v14 = vld [vmem:[%s1095_s1 + $0x8] sm:$0xff] }
  0x21   :  { %758 = vmatprep.subr.mxu1 %v60_v11  ;;  %748 = vmatpush3.msra.mxu0 %v56_v10  ;;  %v58_v15 = vld [vmem:[%s1095_s1 + $0x28] sm:$0xff]  ;;  %v53_v16 = vld [vmem:[%s1095_s1] sm:$0xff]  ;;  %v956_v18 = vsub.s32 %v81_v4, %v83_v5 }
  0x22   :  { %759 = vmatpush3.msra.mxu1 %v60_v11  ;;  %v57_v17 = vld [vmem:[%s1095_s1 + $0x20] sm:$0xff]  ;;  %749 = vmatprep.subr.mxu0 %v55_v12  ;;  %v49_v24 = vld [vmem:[%s1094_s0 + $0x8] sm:$0x3]  ;;  %v50_v25 = vld [vmem:[%s1094_s0 + $0xa] sm:$0x3] }
  0x23   :  { %760 = vmatprep.subr.mxu1 %v59_v13  ;;  %v45_v19 = vld [vmem:[%s1094_s0] sm:$0x3]  ;;  %v46_v20 = vld [vmem:[%s1094_s0 + $0x2] sm:$0x3]  ;;  %v47_v21 = vld [vmem:[%s1094_s0 + $0x4] sm:$0x3]  ;;  %750 = vmatpush3.msra.mxu0 %v55_v12  ;;  %v94_v29 = vcombine.low %v49_v24, %v50_v25 }
  0x24   :  { %761 = vmatpush3.msra.mxu1 %v59_v13  ;;  %v48_v22 = vld [vmem:[%s1094_s0 + $0x6] sm:$0x3]  ;;  %v77_v23 = vcombine.low %v45_v19, %v46_v20  ;;  %751 = vmatprep.subr.mxu0 %v54_v14  ;;  %v51_v27 = vld [vmem:[%s1094_s0 + $0xc] sm:$0x3]  ;;  %v52_v28 = vld [vmem:[%s1094_s0 + $0xe] sm:$0x3] }
  0x25   :  { %762 = vmatprep.subr.mxu1 %v58_v15  ;;  %v78_v26 = vcombine.low %v47_v21, %v48_v22  ;;  %752 = vmatpush3.msra.mxu0 %v54_v14  ;;  %v95_v31 = vcombine.low %v51_v27, %v52_v28  ;;  %v102_v33 = vrot.slane %v94_v29, %v956_v18  ;;  %v717_v37 = vld [vmem:[#allocation10] ss:$0 sm:$0xff]  ;;  %v720_v38 = vld [vmem:[#allocation10 + $0x1] ss:$0 sm:$0xff]  ;;  %s1010_s0 = smov 0  }
  0x26   :  { %763 = vmatpush3.msra.mxu1 %v58_v15  ;;  %v85_v30 = vrot.slane %v77_v23, %v956_v18  ;;  %753 = vmatprep.subr.mxu0 %v53_v16 }
  0x27   :  { %764 = vmatprep.subr.mxu1 %v57_v17  ;;  %v92_v32 = vrot.slane %v78_v26, %v956_v18  ;;  %754 = vmatpush3.msra.mxu0 %v53_v16  ;;  %v109_v34 = vrot.slane %v95_v31, %v956_v18 }
  0x28   :  { %765 = vmatpush3.msra.mxu1 %v57_v17 }
  0x29   :  { %v93_v35 = vcombine.low %v85_v30, %v92_v32  ;;  %v110_v36 = vcombine.low %v102_v33, %v109_v34 }
  0x2b   :  { %755 = vmatprep.mubr.msk.f32.mxu0 %vm111_vm1, %v93_v35  ;;  %766 = vmatprep.mubr.msk.f32.mxu1 %vm111_vm1, %v93_v35 }
  0x2c   :  { %756 = vmatmul.mubr.msk.f32.vlgmr.msra.gmra.mxu0 %vm111_vm1, %v110_v36  ;;  %767 = vmatmul.mubr.msk.f32.vlgmr.msra.gmra.mxu1 %vm111_vm1, %v110_v36 }
  0xec   :  { %v757_v39 = vpop.f32.mrf.mxu0  ;;  %v768_v40 = vpop.f32.mrf.mxu1 }
  0xed   :  { %v188_v41 = vadd.f32 %v757_v39, %v717_v37  ;;  %v322_v42 = vadd.f32 %v768_v40, %v720_v38 }
  0xee   :  { %v182_v43 = vpop.f32.mrf.mxu0  ;;  %v316_v44 = vpop.f32.mrf.mxu1 }
  0xef   :  { %v210_v45 = vcombine.high %v188_v41, %v188_v41  ;;  %v217_v46 = vrot.slane %v188_v41, %v956_v18  ;;  %v344_v47 = vcombine.high %v322_v42, %v322_v42  ;;  %v351_v48 = vrot.slane %v322_v42, %v956_v18 }
  0xf0   :  { %v183_v49 = vadd.f32 %v717_v37, %v182_v43  ;;  %v317_v50 = vadd.f32 %v720_v38, %v316_v44 }
  0xf1   :  { %v224_v51 = vrot.slane %v210_v45, %v956_v18  ;;  %v225_v52 = vcombine.high %v217_v46, %v217_v46  ;;  %240 = vst.msk [vmem:[#allocation2 + $0x8] sm:$0x3] %vm235_vm2, %v217_v46  ;;  %v358_v53 = vrot.slane %v344_v47, %v956_v18  ;;  %v359_v54 = vcombine.high %v351_v48, %v351_v48 }
  0xf2   :  { %373 = vst.msk [vmem:[#allocation3 + $0x8] sm:$0x3] %vm235_vm2, %v351_v48  ;;  %v193_v55 = vcombine.high %v183_v49, %v183_v49  ;;  %v200_v56 = vrot.slane %v183_v49, %v956_v18  ;;  %v327_v57 = vcombine.high %v317_v50, %v317_v50  ;;  %v334_v58 = vrot.slane %v317_v50, %v956_v18 }
  0xf3   :  { %v226_v59 = vcombine.high %v224_v51, %v224_v51  ;;  %241 = vst.msk [vmem:[#allocation2 + $0xa] sm:$0x3] %vm235_vm2, %v225_v52  ;;  %242 = vst.msk [vmem:[#allocation2 + $0xc] sm:$0x3] %vm235_vm2, %v224_v51  ;;  %v360_v60 = vcombine.high %v358_v53, %v358_v53 }
  0xf4   :  { %374 = vst.msk [vmem:[#allocation3 + $0xa] sm:$0x3] %vm235_vm2, %v359_v54  ;;  %375 = vst.msk [vmem:[#allocation3 + $0xc] sm:$0x3] %vm235_vm2, %v358_v53  ;;  %v207_v61 = vrot.slane %v193_v55, %v956_v18  ;;  %v208_v62 = vcombine.high %v200_v56, %v200_v56  ;;  %v341_v63 = vrot.slane %v327_v57, %v956_v18 }
  0xf5   :  { %236 = vst.msk [vmem:[#allocation2] sm:$0x3] %vm235_vm2, %v200_v56  ;;  %v342_v0 = vcombine.high %v334_v58, %v334_v58  ;;  %369 = vst.msk [vmem:[#allocation3] sm:$0x3] %vm235_vm2, %v334_v58 }
  0xf6   :  { %243 = vst.msk [vmem:[#allocation2 + $0xe] sm:$0x3] %vm235_vm2, %v226_v59  ;;  %376 = vst.msk [vmem:[#allocation3 + $0xe] sm:$0x3] %vm235_vm2, %v360_v60  ;;  %v209_v1 = vcombine.high %v207_v61, %v207_v61  ;;  %v343_v2 = vcombine.high %v341_v63, %v341_v63 }
  0xf7   :  { %237 = vst.msk [vmem:[#allocation2 + $0x2] sm:$0x3] %vm235_vm2, %v208_v62  ;;  %238 = vst.msk [vmem:[#allocation2 + $0x4] sm:$0x3] %vm235_vm2, %v207_v61 }
  0xf8   :  { %370 = vst.msk [vmem:[#allocation3 + $0x2] sm:$0x3] %vm235_vm2, %v342_v0  ;;  %371 = vst.msk [vmem:[#allocation3 + $0x4] sm:$0x3] %vm235_vm2, %v341_v63 }
  0xf9   :  { %239 = vst.msk [vmem:[#allocation2 + $0x6] sm:$0x3] %vm235_vm2, %v209_v1  ;;  %372 = vst.msk [vmem:[#allocation3 + $0x6] sm:$0x3] %vm235_vm2, %v343_v2 }
  0xfa LB: > { %v881_v3 = vmov 0.0   ;;  %vm882_vm3 = vmmov 0   ;;  %v393_v4 = vld [vmem:[#allocation6] sm:$0x3]  ;;  %vm403_vm4 = vcmask 130048   ;;  %s883_s5 = smov 16   ;;  %s871_s0 = sphi %s1010_s0, %s391_s0  }
  0xfb   : > { %769 = vmatprep.subr.mxu0 %v881_v3  ;;  %776 = vmatprep.subr.mxu1 %v881_v3  ;;  %v395_v5 = vld [vmem:[#allocation7] sm:$0x3]  ;;  %v394_v10 = vld [vmem:[#allocation6 + $0x2] sm:$0x3]  ;;  %v396_v11 = vld [vmem:[#allocation7 + $0x2] sm:$0x3] }
  0xfc   : > { %770 = vmatpush3.msra.mxu0 %v926_v7  ;;  %773 = vmatprep.mubr.msk.f32.mxu0 %vm882_vm3, %v881_v3  ;;  %s392_s6 = ssub.s32 7, %s871_s0  ;;  %s723_s7 = sshll.u32 %s871_s0, 1 }
  0xfd   : > { %771 = vmatprep.subr.mxu0 %v881_v3  ;;  %777 = vmatpush3.msra.mxu1 %v930_v9  ;;  %s1025_s8 = sshll.u32 %s392_s6, 1  ;;  %s398_s9 = scalar_lea.vmem [#allocation2], %s723_s7 }
  0xfe   : > { %772 = vmatpush3.msra.mxu0 %v924_v6  ;;  %778 = vmatprep.subr.mxu1 %v881_v3  ;;  %s401_s10 = scalar_lea.vmem [#allocation3], %s1025_s8  ;;  %s884_s11 = smov 80  }
  0xff   : > { %774 = vmatmul.mubr.msk.f32.vlgmr.msra.gmra.mxu0 %vm403_vm4, %v393_v4  ;;  %779 = vmatpush3.msra.mxu1 %v928_v8  ;;  %s885_s12 = smov 112   ;;  %s886_s13 = smov 96  }
 0x100   : > { %780 = vmatprep.mubr.msk.f32.mxu1 %vm882_vm3, %v881_v3  ;;  %568 = vrot.lane.b32.xlu1 %v395_v5, %s883_s5  ;;  %v399_v12 = vld [vmem:[%s398_s9] sm:$0x3]  ;;  %s628_s14 = scalar_lea.vmem [#allocation4], %s723_s7  ;;  %s630_s15 = scalar_lea.vmem [#allocation5], %s1025_s8 }
 0x101   : > { %781 = vmatmul.mubr.msk.f32.vlgmr.msra.gmra.mxu1 %vm403_vm4, %v394_v10  ;;  %v402_v14 = vld [vmem:[%s401_s10] sm:$0x3]  ;;  %s391_s0 = sadd.s32 1, %s871_s0  }
 0x102   : > { %p388_p10 = scmp.ge.s32.totalorder %s391_s0, 8  }
 0x103   :  { %vm689_vm5 = vcmask (%p388_p10), 254976  }
 0x104   : > { %570 = vrot.lane.b32.xlu1 %v396_v11, %s883_s5 }
 0x172   : > { %v569_v34 = vpop.permute.xlu1 %568 }
 0x176   : > { %v571_v36 = vpop.permute.xlu1 %570 }
 0x1bf   : > { %v473_v13 = vpop.f32.mrf.mxu0 }
 0x1c0   : > { %v550_v15 = vadd.f32 %v473_v13, %v399_v12 }
 0x1c1   : > { %v775_v16 = vpop.f32.mrf.mxu0  ;;  %v546_v17 = vpop.f32.mrf.mxu1 }
 0x1c2   : > { %805 = vtanh.f32 %v550_v15  ;;  %v551_v18 = vadd.f32 %v546_v17, %v402_v14  ;;  %v727_v22 = vmul.f32 -1.442695, %v550_v15 }
 0x1c3   : > { %v782_v19 = vpop.f32.mrf.mxu1 }
 0x1c4   : > { %807 = vtanh.f32 %v551_v18  ;;  %v728_v23 = vmul.f32 -1.442695, %v551_v18 }
 0x1c5   : > { %809 = vpow2.f32 %v727_v22 }
 0x1c6   : > { %811 = vpow2.f32 %v728_v23 }
 0x1cf   : > { %v806_v20 = vpop.eup %805 }
 0x1d0   : > { %578 = vrot.lane.b32.xlu0 %v806_v20, %s884_s11 }
 0x1d1   : > { %v808_v21 = vpop.eup %807 }
 0x1d2   : > { %v810_v24 = vpop.eup %809 }
 0x1d3   : > { %v558_v25 = vadd.f32 1.0, %v810_v24  ;;  %v812_v26 = vpop.eup %811 }
 0x1d4   : > { %580 = vrot.lane.b32.xlu0 %v808_v21, %s884_s11  ;;  %v559_v27 = vadd.f32 1.0, %v812_v26 }
 0x1d5   : > { %813 = vrcp.f32 %v558_v25 }
 0x1d6   : > { %815 = vrcp.f32 %v559_v27 }
 0x1e2   : > { %v814_v28 = vpop.eup %813 }
 0x1e3   : > { %v816_v31 = vpop.eup %815  ;;  %v574_v35 = vmul.f32 %v814_v28, %v569_v34 }
 0x1e4   : > { %v575_v39 = vmul.f32 %v816_v31, %v571_v36 }
 0x242   : > { %v579_v29 = vpop.permute.xlu0 %578 }
 0x243   : > { %v584_v30 = vmul.f32 %v814_v28, %v579_v29 }
 0x245   : > { %588 = vrot.lane.b32.xlu0 %v584_v30, %s883_s5 }
 0x246   : > { %v581_v32 = vpop.permute.xlu0 %580 }
 0x247   : > { %v585_v33 = vmul.f32 %v816_v31, %v581_v32 }
 0x249   : > { %590 = vrot.lane.b32.xlu1 %v585_v33, %s883_s5 }
 0x2b7   : > { %v589_v37 = vpop.permute.xlu0 %588 }
 0x2b8   : > { %v594_v38 = vadd.f32 %v589_v37, %v574_v35 }
 0x2ba   : > { %817 = vtanh.f32 %v594_v38 }
 0x2bb   : > { %v591_v40 = vpop.permute.xlu1 %590 }
 0x2bc   : > { %v595_v41 = vadd.f32 %v591_v40, %v575_v39 }
 0x2be   : > { %819 = vtanh.f32 %v595_v41 }
 0x2c7   : > { %v818_v42 = vpop.eup %817 }
 0x2c8   : > { %600 = vrot.lane.b32.xlu0 %v818_v42, %s883_s5 }
 0x2cb   : > { %v820_v43 = vpop.eup %819 }
 0x2cc   : > { %610 = vrot.lane.b32.xlu0 %v594_v38, %s885_s12  ;;  %602 = vrot.lane.b32.xlu1 %v820_v43, %s883_s5 }
 0x2d0   : > { %612 = vrot.lane.b32.xlu1 %v595_v41, %s885_s12 }
 0x33a   : > { %v601_v44 = vpop.permute.xlu0 %600 }
 0x33b   : > { %v606_v45 = vmul.f32 %v814_v28, %v601_v44 }
 0x33d   : > { %620 = vrot.lane.b32.xlu0 %v606_v45, %s886_s13 }
 0x33e   : > { %v611_v46 = vpop.permute.xlu0 %610  ;;  %v603_v47 = vpop.permute.xlu1 %602 }
 0x33f   : > { %616 = vst.msk [vmem:[#allocation7] sm:$0x3] %vm377_vm0, %v611_v46  ;;  %v607_v48 = vmul.f32 %v816_v31, %v603_v47 }
 0x341   : > { %622 = vrot.lane.b32.xlu1 %v607_v48, %s886_s13 }
 0x342   : > { %v613_v49 = vpop.permute.xlu1 %612 }
 0x343   : > { %617 = vst.msk [vmem:[#allocation7 + $0x2] sm:$0x3] %vm377_vm0, %v613_v49 }
 0x3af   : > { %v621_v50 = vpop.permute.xlu0 %620 }
 0x3b0   : > { %626 = vst.msk [vmem:[#allocation6] sm:$0x3] %vm377_vm0, %v621_v50  ;;  %629 = vst.msk [vmem:[%s628_s14] sm:$0x3] %vm377_vm0, %v621_v50 }
 0x3b3   : > { %v623_v51 = vpop.permute.xlu1 %622 }
 0x3b4   : > { %627 = vst.msk [vmem:[#allocation6 + $0x2] sm:$0x3] %vm377_vm0, %v623_v51  ;;  %631 = vst.msk [vmem:[%s630_s15] sm:$0x3] %vm377_vm0, %v623_v51 }
 0x3b5   :  { %390 = sbr.rel (!%p388_p10) target bundleno = 250 (0xfa), region = 55 }
 0x3b7   :  { %v634_v6 = vld [vmem:[#allocation4 + $0x4] sm:$0x3] (%p388_p10)  ;;  %v632_v7 = vld [vmem:[#allocation4] sm:$0x3] (%p388_p10)  ;;  %v635_v62 = vld [vmem:[#allocation4 + $0x6] sm:$0x3] (%p388_p10) }
 0x3b8   :  { %v633_v63 = vld [vmem:[#allocation4 + $0x2] sm:$0x3] (%p388_p10)  ;;  %v637_v4 = vld [vmem:[#allocation4 + $0xa] sm:$0x3] (%p388_p10)  ;;  %v636_v5 = vld [vmem:[#allocation4 + $0x8] sm:$0x3] (%p388_p10) }
 0x3b9   :  { %v639_v14 = vld [vmem:[#allocation4 + $0xe] sm:$0x3] (%p388_p10)  ;;  %v638_v15 = vld [vmem:[#allocation4 + $0xc] sm:$0x3] (%p388_p10) }
 0x3bb   :  { %v642_v52 = vld [vmem:[#allocation5 + $0x4] sm:$0x3]  ;;  %v640_v53 = vld [vmem:[#allocation5] sm:$0x3]  ;;  %v643_v54 = vld [vmem:[#allocation5 + $0x6] sm:$0x3] }
 0x3bc   :  { %660 = vrot.lane.b32.xlu1 %v642_v52, %s877_s25  ;;  %656 = vrot.lane.b32.xlu0 %v640_v53, %s877_s25  ;;  %v641_v55 = vld [vmem:[#allocation5 + $0x2] sm:$0x3]  ;;  %v645_v56 = vld [vmem:[#allocation5 + $0xa] sm:$0x3]  ;;  %v644_v57 = vld [vmem:[#allocation5 + $0x8] sm:$0x3] }
 0x3bd   :  { %v647_v58 = vld [vmem:[#allocation5 + $0xe] sm:$0x3]  ;;  %v646_v59 = vld [vmem:[#allocation5 + $0xc] sm:$0x3] }
 0x3c0   :  { %662 = vrot.lane.b32.xlu1 %v643_v54, %s877_s25  ;;  %658 = vrot.lane.b32.xlu0 %v641_v55, %s877_s25 }
 0x3c4   :  { %666 = vrot.lane.b32.xlu1 %v645_v56, %s877_s25  ;;  %664 = vrot.lane.b32.xlu0 %v644_v57, %s877_s25 }
 0x3c8   :  { %670 = vrot.lane.b32.xlu1 %v647_v58, %s877_s25  ;;  %668 = vrot.lane.b32.xlu0 %v646_v59, %s877_s25 }
 0x42e   :  { %v661_v8 = vpop.permute.xlu1 %660  ;;  %v657_v9 = vpop.permute.xlu0 %656 }
 0x42f   :  { %v683_v60 = vsel %vm403_vm4, %v634_v6, %v661_v8  ;;  %v681_v61 = vsel %vm403_vm4, %v632_v7, %v657_v9 }
 0x430   :  { %692 = vst.msk [vmem:[%s1098_s4 + $0x4] sm:$0x3] %vm689_vm5, %v683_v60  ;;  %690 = vst.msk [vmem:[%s1098_s4] sm:$0x3] %vm689_vm5, %v681_v61 }
 0x432   :  { %v663_v0 = vpop.permute.xlu1 %662  ;;  %v659_v1 = vpop.permute.xlu0 %658 }
 0x433   :  { %v684_v2 = vsel %vm403_vm4, %v635_v62, %v663_v0  ;;  %v682_v3 = vsel %vm403_vm4, %v633_v63, %v659_v1 }
 0x434   :  { %693 = vst.msk [vmem:[%s1098_s4 + $0x6] sm:$0x3] %vm689_vm5, %v684_v2  ;;  %691 = vst.msk [vmem:[%s1098_s4 + $0x2] sm:$0x3] %vm689_vm5, %v682_v3 }
 0x436   :  { %v667_v10 = vpop.permute.xlu1 %666  ;;  %v665_v11 = vpop.permute.xlu0 %664 }
 0x437   :  { %v686_v12 = vsel %vm403_vm4, %v637_v4, %v667_v10  ;;  %v685_v13 = vsel %vm403_vm4, %v636_v5, %v665_v11 }
 0x438   :  { %695 = vst.msk [vmem:[%s1098_s4 + $0xa] sm:$0x3] %vm689_vm5, %v686_v12  ;;  %694 = vst.msk [vmem:[%s1098_s4 + $0x8] sm:$0x3] %vm689_vm5, %v685_v13 }
 0x43a   :  { %v671_v16 = vpop.permute.xlu1 %670  ;;  %v669_v17 = vpop.permute.xlu0 %668 }
 0x43b   :  { %v688_v18 = vsel %vm403_vm4, %v639_v14, %v671_v16  ;;  %v687_v19 = vsel %vm403_vm4, %v638_v15, %v669_v17 }
 0x43c   :  { %697 = vst.msk [vmem:[%s1098_s4 + $0xe] sm:$0x3] %vm689_vm5, %v688_v18  ;;  %696 = vst.msk [vmem:[%s1098_s4 + $0xc] sm:$0x3] %vm689_vm5, %v687_v19 }
 0x43d   :  { %702 = vsyncpa [#allocation9], 1 }
 0x43e   :  { %703 = vsyncpa [#allocation11], 1 }

// kernel: sequential_module_forward.11
= control target key start
LH: loop header
LB: loop body
LE: loop exit
PB: predicated region body
PF: predicated region fallthrough
CT: control target
= control target key end

     0   :  { %13 = vsyncpa [#allocation10], 0  ;;  %s2098_s0 = inlined_call_operand.vmem [shape: f32[2,8,2,32], index: 0, kind: input, shape index: {}]   ;;  %s2099_s1 = inlined_call_operand.vmem [shape: f32[2,32,129], index: 1, kind: input, shape index: {}]   ;;  %s2100_s2 = inlined_call_operand.vmem [shape: f32[2,32,129], index: 2, kind: input, shape index: {}]   ;;  %s2101_s3 = inlined_call_operand.vmem [shape: f32[2,32,129], index: 3, kind: input, shape index: {}]   ;;  %s2102_s4 = inlined_call_operand.hbm [shape: f32[2,1,129], index: 4, kind: input, shape index: {}]   ;;  %s2103_s5 = inlined_call_operand.vmem [shape: f32[2,32,129], index: 5, kind: input, shape index: {}]   ;;  %s2104_s6 = inlined_call_operand.vmem [shape: f32[2,32,129], index: 6, kind: input, shape index: {}]   ;;  %s2105_s7 = inlined_call_operand.hbm [shape: f32[2,1,129], index: 7, kind: input, shape index: {}]   ;;  %s2106_s8 = inlined_call_operand.vmem [shape: f32[2,8,2,32], index: 8, kind: output, shape index: {}]  }
   0x1   :  { %15 = vsyncpa [#allocation10 + $0x1], 0 }
   0x2   :  { %16 = vsyncpa [#allocation12], 0 }
   0x3   :  { %18 = vsyncpa [#allocation12 + $0x1], 0  ;;  %s1703_s27 = smov 0   ;;  %s1705_s28 = smov 0  }
   0x4   :  { %s1707_s29 = smov 0   ;;  %s1709_s30 = smov 0  }
   0x5 LB: > { %s1722_s9 = sadd.s32 4294967295, %s1643_s30   ;;  %s1725_s10 = sadd.s32 1, %s1643_s30   ;;  %s1643_s30 = sphi %s1709_s30, %s2120_s30   ;;  %s1639_s29 = sphi %s1707_s29, %s2119_s29   ;;  %s1635_s28 = sphi %s1705_s28, %s2118_s28   ;;  %s1631_s27 = sphi %s1703_s27, %s2117_s27  }
   0x6   : > { %s132_s11 = ssub.s32 %s1643_s30, %s1725_s10  ;;  %s135_s12 = sadd.s32 1, %s1639_s29 }
   0x7   : > { %p133_p0 = scmp.eq.s32.totalorder %s132_s11, 0  ;;  %p142_p1 = scmp.ne.s32.totalorder %s1639_s29, %s1635_s28 }
   0x8   : > { %p143_p2 = scmp.eq.s32.totalorder %s1643_s30, 0  ;;  %p148_p3 = scmp.ne.s32.totalorder %s1635_s28, %s1631_s27 }
   0x9   : > { %s1735_s13 = scalar_select %p133_p0, %s1639_s29, %s135_s12  }
   0xa   : > { %p144_p4 = por %p143_p2, %p142_p1  ;;  %p149_p5 = scmp.eq.s32.totalorder %s1722_s9, 0 }
   0xb   : > { %p1479_p6 = scmp.lt.s32.totalorder %s1643_s30, 2  ;;  %s1744_s15 = sand.u32 1, %s1639_s29  }
   0xc   : > { %p1739_p7 = por %p149_p5, %p148_p3  ;;  %s1414_s16 = sshll.u32 %s1744_s15, 1 }
   0xd   : > { %s1450_s17 = sshll.u32 %s1643_s30, 5  ;;  %s312_s21 = scalar_lea.vmem [#allocation9], %s1414_s16 }
   0xe   : > { %s2108_s14 = scalar_select %p1739_p7, 1, 0 }
   0xf   : > { %s1753_s20 = scalar_lea.hbm %s2102_s4, %s1450_s17  ;;  %s320_s22 = sshll.u32 %s312_s21, 4  ;;  %s1757_s22 = int_to_ptr.vmem [resolvable:$true] %s320_s22 }
  0x10   : > { %p1759_p8 = pnand %p1479_p6, %p144_p4  ;;  %s309_s24 = scalar_lea.sflag [#allocation10], %s1744_s15 }
  0x11   : > { %s1545_s25 = scalar_lea.hbm %s1753_s20, 32  ;;  %s1550_s11 = scalar_lea.hbm %s2102_s4, 64 }
  0x12   : > { %p1546_p11 = scmp.ne.s32.totalorder %s1753_s20, %s1545_s25  ;;  %p1547_p12 = pneg %p1759_p8 }
  0x13   : > { %p1551_p1 = scmp.lt.s32.totalorder %s1753_s20, %s2102_s4  ;;  %p1552_p2 = scmp.lt.s32.totalorder %s1550_s11, %s1545_s25 }
  0x14   : > { %p1548_p13 = pnand %p1547_p12, %p1546_p11 }
  0x15   : > { %p1553_p3 = por %p1552_p2, %p1551_p1 }
  0x16   : > { %p1549_p0 = pneg %p1548_p13 }
  0x18   : > { %p1554_p4 = pnand %p1553_p3, %p1549_p0 }
  0x1a   : > { %1557 = shalt.err (!%p1554_p4)
}
  0x1b   : > { %s1558_s19 = scalar_lea.vmem %s1757_s22, 32  ;;  %s1649_s21 = smov [#allocation9]  }
  0x1c   : > { %p1559_p5 = scmp.ne.s32.totalorder %s1757_s22, %s1558_s19  ;;  %s1563_s26 = sshll.u32 %s1649_s21, 4  ;;  %s1564_s26 = int_to_ptr.vmem [resolvable:$false] %s1563_s26 }
  0x1d   : > { %s1565_s27 = scalar_lea.vmem %s1564_s26, 64  ;;  %p1566_p13 = scmp.lt.s32.totalorder %s1757_s22, %s1564_s26 }
  0x1e   : > { %p1561_p6 = pnand %p1559_p5, %p1547_p12  ;;  %p1567_p9 = scmp.lt.s32.totalorder %s1565_s27, %s1558_s19 }
  0x20   : > { %p1562_p11 = pneg %p1561_p6  ;;  %p1568_p10 = por %p1567_p9, %p1566_p13 }
  0x22   : > { %p1569_p1 = pnand %p1568_p10, %p1562_p11 }
  0x24   : > { %1572 = shalt.err (!%p1569_p1)
}
  0x25   : > { %1475 = dma.hbm_to_vmem [thread:$0]  (!%p1759_p8), %s1753_s20, 32, %s1757_s22, %s309_s24  }
  0x26   : > { %p2110_p0 = scmp.lt.s32.totalorder %s1643_s30, 3  ;;  %p2111_p2 = scmp.ge.s32.totalorder %s1643_s30, 1 }
  0x27   : > { %s1803_s18 = scalar_lea.hbm %s2105_s7, %s1450_s17  ;;  %s347_s19 = scalar_lea.vmem [#allocation11], %s1414_s16 }
  0x28   : > { %p1794_p3 = pnand %p2111_p2, %p2110_p0  ;;  %s355_s21 = sshll.u32 %s347_s19, 4  ;;  %s356_s21 = int_to_ptr.vmem [resolvable:$true] %s355_s21 }
  0x29   : > { %s344_s20 = scalar_lea.sflag [#allocation12], %s1744_s15  ;;  %s1573_s22 = scalar_lea.hbm %s1803_s18, 32 }
  0x2a   : > { %s2112_s25 = scalar_select %p1794_p3, 1, 0 }
  0x2b   : > { %p1574_p9 = scmp.ne.s32.totalorder %s1803_s18, %s1573_s22  ;;  %s1578_s26 = scalar_lea.hbm %s2105_s7, 64 }
  0x2c   : > { %p1579_p5 = scmp.lt.s32.totalorder %s1803_s18, %s2105_s7  ;;  %p1580_p6 = scmp.lt.s32.totalorder %s1578_s26, %s1573_s22 }
  0x2d   : > { %p1576_p10 = pnand %p1574_p9, %p1547_p12 }
  0x2e   : > { %p1581_p11 = por %p1580_p6, %p1579_p5 }
  0x2f   : > { %p1577_p4 = pneg %p1576_p10 }
  0x31   : > { %p1582_p13 = pnand %p1581_p11, %p1577_p4 }
  0x33   : > { %1585 = shalt.err (!%p1582_p13)
}
  0x34   : > { %s1586_s16 = scalar_lea.vmem %s356_s21, 32  ;;  %s1650_s15 = smov [#allocation11]  }
  0x35   : > { %p1587_p1 = scmp.ne.s32.totalorder %s356_s21, %s1586_s16  ;;  %s1591_s11 = sshll.u32 %s1650_s15, 4  ;;  %s1592_s11 = int_to_ptr.vmem [resolvable:$false] %s1591_s11 }
  0x36   : > { %s1593_s12 = scalar_lea.vmem %s1592_s11, 64  ;;  %p1594_p9 = scmp.lt.s32.totalorder %s356_s21, %s1592_s11 }
  0x37   : > { %p1589_p0 = pnand %p1587_p1, %p1547_p12  ;;  %p1595_p10 = scmp.lt.s32.totalorder %s1593_s12, %s1586_s16 }
  0x39   : > { %p1590_p2 = pneg %p1589_p0  ;;  %p1596_p7 = por %p1595_p10, %p1594_p9 }
  0x3b   : > { %p1597_p3 = pnand %p1596_p7, %p1590_p2 }
  0x3d   : > { %1600 = shalt.err (!%p1597_p3)
}
  0x3e   : > { %1478 = dma.hbm_to_vmem [thread:$0]  (!%p1759_p8), %s1803_s18, 32, %s356_s21, %s344_s20  }
  0x3f   : > { %p2113_p4 = scmp.ne.s32.totalorder %s2112_s25, 0 }
  0x40   : > { %s366_s19 = sand.u32 (!%p2113_p4), 1, %s1635_s28   ;;  %p2114_p12 = scmp.ne.s32.totalorder (!%p2113_p4), %s2108_s14, 0 }
  0x41   : > { %364 = sbr.rel (%p2113_p4) target bundleno = 1956 (0x7a4), region = 52  ;;  %s1421_s22 = sshll.u32 (!%p2113_p4), %s366_s19, 1 }
  0x42   : > { %s367_s30 = scalar_lea.sflag (!%p2113_p4), [#allocation10], %s366_s19  ;;  %s1829_s24 = scalar_lea.vmem (!%p2113_p4), [#allocation9], %s1421_s22 }
  0x46   : > { %1622 = dma.done.wait (%p2114_p12), %s367_s30, 32  }
  0x47   : > { %1624 = vsyncadd (%p2114_p12), %s367_s30, 4294967264  ;;  %s376_s26 = scalar_lea.sflag [#allocation12], %s366_s19  ;;  %s379_s23 = scalar_lea.vmem [#allocation11], %s1421_s22 }
  0x48   : > { %1626 = dma.done.wait (%p2114_p12), %s376_s26, 32  }
  0x49   : > { %1628 = vsyncadd (%p2114_p12), %s376_s26, 4294967264  ;;  %p447_p7 = scmp.lt.s32.totalorder %s1722_s9, 1  ;;  %vm482_vm0 = vcmask 254976   ;;  %vm485_vm1 = vcmask 1024   ;;  %v1651_v0 = vmov 0.0   ;;  %v508_v19 = vlaneseq }
  0x4a   : > { %483 = vst.msk [vmem:[#allocation3] sm:$0x3] %vm482_vm0, %v1651_v0  ;;  %484 = vst.msk [vmem:[#allocation4] sm:$0x3] %vm482_vm0, %v1651_v0  ;;  %629 = vmatprep.mubr.f32.mxu0 %v1651_v0  ;;  %635 = vmatprep.mubr.f32.mxu1 %v1651_v0  ;;  %v1858_v1 = vld [vmem:[%s379_s23] sm:$0x3] }
  0x4b   : > { %486 = vst.msk [vmem:[#allocation5] sm:$0x3] %vm485_vm1, %v1651_v0  ;;  %489 = vst.msk [vmem:[#allocation8] sm:$0x3] %vm485_vm1, %v1651_v0  ;;  %s2122_s9 = smov (!%p447_p7, %s1722_s9), 1  ;;  %v1934_v34 = vshrl.u32 %v508_v19, 7 }
  0x4c   : > { %487 = vst.msk [vmem:[#allocation6] sm:$0x3] %vm482_vm0, %v1651_v0  ;;  %488 = vst.msk [vmem:[#allocation7] sm:$0x3] %vm482_vm0, %v1651_v0  ;;  %s1453_s14 = sshll.u32 %s2122_s9, 6  ;;  %s1452_s16 = sshll.u32 %s2122_s9, 4 }
  0x4d   : > { %s456_s21 = scalar_lea.vmem %s2099_s1, %s1453_s14  ;;  %s1856_s27 = scalar_lea.vmem %s2101_s3, %s1453_s14  ;;  %v1652_v20 = vmov 1983009808   ;;  %vm560_vm2 = vcmask 261120   ;;  %v510_v19 = vsub.s32 0, %v1934_v34  ;;  %vm690_vm3 = vcmask 1041408  }
  0x4e   : > { %s461_s12 = scalar_lea.vmem %s2100_s2, %s1453_s14  ;;  %v505_v2 = vld [vmem:[%s1856_s27 + $0x38] sm:$0xff]  ;;  %v1865_v3 = vld [vmem:[%s456_s21] sm:$0xff]  ;;  %s1872_s30 = scalar_lea.vmem %s2106_s8, %s1452_s16  ;;  %v1874_v4 = vld [vmem:[%s456_s21 + $0x8] sm:$0xff]  ;;  %v529_v21 = vunpack.c.l.s4 %v1652_v20  ;;  %v514_v20 = vsub.s32 1, %v1934_v34  ;;  %vm691_vm4 = vcmask 3074  }
  0x4f   : > { %589 = vmatprep.subr.mxu0 %v505_v2  ;;  %v1876_v5 = vld [vmem:[%s456_s21 + $0x10] sm:$0xff]  ;;  %v1878_v6 = vld [vmem:[%s456_s21 + $0x18] sm:$0xff]  ;;  %1460 = vmatprep.subr.mxu1 %v505_v2  ;;  %v1880_v7 = vld [vmem:[%s456_s21 + $0x20] sm:$0xff]  ;;  %s471_s25 = scalar_lea.vmem %s2103_s5, %s1453_s14  ;;  %s476_s17 = scalar_lea.vmem %s2104_s6, %s1453_s14 }
  0x50   : > { %v1882_v8 = vld [vmem:[%s456_s21 + $0x28] sm:$0xff]  ;;  %v1884_v9 = vld [vmem:[%s456_s21 + $0x30] sm:$0xff]  ;;  %v1889_v10 = vld [vmem:[%s456_s21 + $0x38] sm:$0xff]  ;;  %v530_v35 = vunpack.c.0.s8 %v529_v21  ;;  %s1941_s15 = scalar_lea.vmem %s2098_s0, %s1452_s16  ;;  %s1996_s9 = smov 0  }
  0x51   : > { %v1891_v11 = vld [vmem:[%s461_s12] sm:$0xff]  ;;  %v1893_v12 = vld [vmem:[%s461_s12 + $0x8] sm:$0xff]  ;;  %v1895_v13 = vld [vmem:[%s461_s12 + $0x10] sm:$0xff] }
  0x52   : > { %v1897_v14 = vld [vmem:[%s461_s12 + $0x18] sm:$0xff]  ;;  %v1899_v15 = vld [vmem:[%s461_s12 + $0x20] sm:$0xff]  ;;  %v1904_v16 = vld [vmem:[%s461_s12 + $0x28] sm:$0xff]  ;;  %v533_v48 = vsub.s32 %v530_v35, %v1934_v34 }
  0x53   : > { %v1906_v17 = vld [vmem:[%s461_s12 + $0x30] sm:$0xff]  ;;  %v1908_v18 = vld [vmem:[%s461_s12 + $0x38] sm:$0xff]  ;;  %v1910_v22 = vld [vmem:[%s471_s25] sm:$0xff] }
  0x54   : > { %v1912_v23 = vld [vmem:[%s471_s25 + $0x8] sm:$0xff]  ;;  %v1914_v24 = vld [vmem:[%s471_s25 + $0x10] sm:$0xff]  ;;  %v1916_v25 = vld [vmem:[%s471_s25 + $0x18] sm:$0xff] }
  0x55   : > { %v1918_v26 = vld [vmem:[%s471_s25 + $0x20] sm:$0xff]  ;;  %v1920_v27 = vld [vmem:[%s471_s25 + $0x28] sm:$0xff]  ;;  %v1922_v28 = vld [vmem:[%s471_s25 + $0x30] sm:$0xff] }
  0x56   : > { %v1924_v29 = vld [vmem:[%s471_s25 + $0x38] sm:$0xff]  ;;  %v1926_v30 = vld [vmem:[%s476_s17] sm:$0xff]  ;;  %v1928_v31 = vld [vmem:[%s476_s17 + $0x8] sm:$0xff] }
  0x57   : > { %v1930_v32 = vld [vmem:[%s476_s17 + $0x10] sm:$0xff]  ;;  %v1932_v33 = vld [vmem:[%s476_s17 + $0x18] sm:$0xff]  ;;  %v1943_v36 = vld [vmem:[%s476_s17 + $0x20] sm:$0xff] }
  0x58   : > { %v1945_v37 = vld [vmem:[%s476_s17 + $0x28] sm:$0xff]  ;;  %v1947_v38 = vld [vmem:[%s476_s17 + $0x30] sm:$0xff]  ;;  %v1949_v39 = vld [vmem:[%s476_s17 + $0x38] sm:$0xff] }
  0x59   : > { %v504_v40 = vld [vmem:[%s1856_s27 + $0x30] sm:$0xff]  ;;  %v503_v41 = vld [vmem:[%s1856_s27 + $0x28] sm:$0xff]  ;;  %v502_v42 = vld [vmem:[%s1856_s27 + $0x20] sm:$0xff] }
  0x5a   : > { %590 = vmatpush1.msra.mxu0 %v504_v40  ;;  %1464 = vmatpush1.msra.mxu1 %v504_v40  ;;  %v501_v43 = vld [vmem:[%s1856_s27 + $0x18] sm:$0xff]  ;;  %v500_v44 = vld [vmem:[%s1856_s27 + $0x10] sm:$0xff]  ;;  %v499_v45 = vld [vmem:[%s1856_s27 + $0x8] sm:$0xff] }
  0x5b   : > { %591 = vmatprep.subr.mxu0 %v503_v41  ;;  %1461 = vmatprep.subr.mxu1 %v503_v41  ;;  %v498_v46 = vld [vmem:[%s1856_s27] sm:$0xff]  ;;  %v494_v54 = vld [vmem:[%s1941_s15 + $0x8] sm:$0x3]  ;;  %v495_v55 = vld [vmem:[%s1941_s15 + $0xa] sm:$0x3] }
  0x5c   : > { %v490_v47 = vld [vmem:[%s1941_s15] sm:$0x3]  ;;  %592 = vmatpush1.msra.mxu0 %v502_v42  ;;  %1465 = vmatpush1.msra.mxu1 %v502_v42  ;;  %v491_v49 = vld [vmem:[%s1941_s15 + $0x2] sm:$0x3]  ;;  %v492_v50 = vld [vmem:[%s1941_s15 + $0x4] sm:$0x3]  ;;  %v543_v58 = vcombine.low %v494_v54, %v495_v55 }
  0x5d   : > { %v493_v51 = vld [vmem:[%s1941_s15 + $0x6] sm:$0x3]  ;;  %593 = vmatprep.subr.mxu0 %v501_v43  ;;  %1462 = vmatprep.subr.mxu1 %v501_v43  ;;  %v526_v52 = vcombine.low %v490_v47, %v491_v49  ;;  %v496_v56 = vld [vmem:[%s1941_s15 + $0xc] sm:$0x3]  ;;  %v497_v57 = vld [vmem:[%s1941_s15 + $0xe] sm:$0x3] }
  0x5e   : > { %v527_v53 = vcombine.low %v492_v50, %v493_v51  ;;  %594 = vmatpush1.msra.mxu0 %v500_v44  ;;  %1466 = vmatpush1.msra.mxu1 %v500_v44  ;;  %v544_v61 = vcombine.low %v496_v56, %v497_v57  ;;  %v551_v62 = vrot.slane %v543_v58, %v533_v48  ;;  %v506_v21 = vld [vmem:[%s1829_s24] sm:$0x3]  ;;  %vm1976_vm5 = vmor %vm691_vm4, %vm690_vm3 }
  0x5f   : > { %595 = vmatprep.subr.mxu0 %v499_v45  ;;  %1463 = vmatprep.subr.mxu1 %v499_v45  ;;  %v534_v59 = vrot.slane %v526_v52, %v533_v48  ;;  %v511_v35 = vrot.slane %v506_v21, %v510_v19  ;;  %v515_v40 = vrot.slane %v506_v21, %v514_v20 }
  0x60   : > { %v541_v60 = vrot.slane %v527_v53, %v533_v48  ;;  %596 = vmatpush1.msra.mxu0 %v498_v46  ;;  %1467 = vmatpush1.msra.mxu1 %v498_v46  ;;  %v558_v0 = vrot.slane %v544_v61, %v533_v48 }
  0x62   : > { %v542_v63 = vcombine.low %v534_v59, %v541_v60  ;;  %v559_v2 = vcombine.low %v551_v62, %v558_v0 }
  0x64   : > { %1437 = vmatmul.mubr.msk.f32.vlgmr.msra.gmra.mxu0 %vm560_vm2, %v542_v63  ;;  %1438 = vmatmul.mubr.msk.f32.vlgmr.msra.gmra.mxu1 %vm560_vm2, %v559_v2 }
 0x124   : > { %v631_v41 = vpop.f32.mrf.mxu0  ;;  %v637_v42 = vpop.f32.mrf.mxu1 }
 0x125   : > { %v632_v44 = vadd.f32 %v631_v41, %v511_v35  ;;  %v638_v47 = vadd.f32 %v637_v42, %v511_v35 }
 0x126   : > { %v633_v43 = vpop.f32.mrf.mxu0  ;;  %v639_v46 = vpop.f32.mrf.mxu1 }
 0x127   : > { %v634_v45 = vadd.f32 %v633_v43, %v515_v40  ;;  %v640_v51 = vadd.f32 %v639_v46, %v515_v40 }
 0x129   : > { %v646_v49 = vcombine.low %v632_v44, %v634_v45  ;;  %v647_v50 = vcombine.high %v632_v44, %v634_v45  ;;  %v664_v55 = vcombine.low %v638_v47, %v640_v51  ;;  %v665_v56 = vcombine.high %v638_v47, %v640_v51 }
 0x12b   : > { %v654_v53 = vrot.slane %v646_v49, %v533_v48  ;;  %v661_v54 = vrot.slane %v647_v50, %v533_v48  ;;  %v672_v59 = vrot.slane %v664_v55, %v533_v48  ;;  %v679_v60 = vrot.slane %v665_v56, %v533_v48 }
 0x12d   : > { %v662_v57 = vcombine.high %v654_v53, %v654_v53  ;;  %v663_v58 = vcombine.high %v661_v54, %v661_v54  ;;  %693 = vst.msk [vmem:[#allocation2] sm:$0xf] %vm1976_vm5, %v654_v53  ;;  %695 = vst.msk [vmem:[#allocation2 + $0x8] sm:$0xf] %vm1976_vm5, %v661_v54  ;;  %v680_v61 = vcombine.high %v672_v59, %v672_v59 }
 0x12e   : > { %v681_v62 = vcombine.high %v679_v60, %v679_v60  ;;  %697 = vst.msk [vmem:[#allocation2 + $0x10] sm:$0xf] %vm1976_vm5, %v672_v59  ;;  %699 = vst.msk [vmem:[#allocation2 + $0x18] sm:$0xf] %vm1976_vm5, %v679_v60 }
 0x12f   : > { %694 = vst.msk [vmem:[#allocation2 + $0x4] sm:$0xf] %vm1976_vm5, %v662_v57  ;;  %696 = vst.msk [vmem:[#allocation2 + $0xc] sm:$0xf] %vm1976_vm5, %v663_v58 }
 0x130   : > { %698 = vst.msk [vmem:[#allocation2 + $0x14] sm:$0xf] %vm1976_vm5, %v680_v61  ;;  %700 = vst.msk [vmem:[#allocation2 + $0x1c] sm:$0xf] %vm1976_vm5, %v681_v62 }
 0x131 LB: >> { %774 = vmatprep.subr.mxu0 %v1889_v10  ;;  %855 = vmatprep.subr.mxu1 %v1908_v18  ;;  %v742_v48 = vld [vmem:[#allocation5] sm:$0x3]  ;;  %v740_v63 = vld [vmem:[#allocation3] sm:$0x3]  ;;  %v2015_v0 = vld [vmem:[#allocation6] sm:$0x3]  ;;  %s1647_s9 = sphi %s1996_s9, %s739_s9  }
 0x132   : >> { %775 = vmatpush1.msra.mxu0 %v1884_v9  ;;  %856 = vmatpush1.msra.mxu1 %v1906_v17  ;;  %v1653_v2 = vmov 0.0   ;;  %v746_v21 = vsub.f32 1.0, %v742_v48  ;;  %v1654_v35 = vmov 0   ;;  %s1459_s24 = sshll.u32 %s1647_s9, 2  ;;  %s1655_s16 = smov 64  }
 0x133   : >> { %776 = vmatprep.subr.mxu0 %v1882_v8  ;;  %857 = vmatprep.subr.mxu1 %v1904_v16  ;;  %s913_s27 = scalar_lea.vmem [#allocation2], %s1459_s24  ;;  %s1656_s11 = smov 96  }
 0x134   : >> { %777 = vmatpush1.msra.mxu0 %v1880_v7  ;;  %858 = vmatpush1.msra.mxu1 %v1899_v15  ;;  %s1657_s12 = smov 32   ;;  %s1441_s19 = sshll.u32 %s1647_s9, 1 }
 0x135   : >> { %778 = vmatprep.subr.mxu0 %v1878_v6  ;;  %859 = vmatprep.subr.mxu1 %v1897_v14  ;;  %s1238_s22 = scalar_lea.vmem %s1872_s30, %s1441_s19  ;;  %s739_s9 = sadd.s32 1, %s1647_s9  }
 0x136   : >> { %779 = vmatpush1.msra.mxu0 %v1876_v5  ;;  %860 = vmatpush1.msra.mxu1 %v1895_v13  ;;  %p736_p8 = scmp.ge.s32.totalorder %s739_s9, 8  }
 0x137   : >> { %780 = vmatprep.subr.mxu0 %v1874_v4  ;;  %861 = vmatprep.subr.mxu1 %v1893_v12  ;;  %v1443_v44 = vld.sshfl [vmem:[%s913_s27] sm:$0x33 pattern:$0x76325410] }
 0x138   : >> { %781 = vmatpush1.msra.mxu0 %v1865_v3  ;;  %814 = vmatprep.mubr.f32.mxu0 %v1653_v2  ;;  %v923_v53 = vcombine.high %v1443_v44, %v1443_v44 }
 0x139   : >> { %862 = vmatpush1.msra.mxu1 %v1891_v11  ;;  %895 = vmatprep.mubr.f32.mxu1 %v1653_v2 }
 0x13a   : >> { %1439 = vmatmul.mubr.msk.f32.vlgmr.msra.gmra.mxu0 %vm560_vm2, %v740_v63  ;;  %1440 = vmatmul.mubr.msk.f32.vlgmr.msra.gmra.mxu1 %vm560_vm2, %v2015_v0 }
 0x13b   : >> { %1527 = vset.pattern.permute.xlu0 %v1654_v35  ;;  %988 = vmatprep.subr.mxu0 %v1924_v29 }
 0x13c   : >> { %823 = vperm.xlu0 %1527, %v746_v21   ;;  %989 = vmatpush1.msra.mxu0 %v1922_v28 }
 0x13d   : >> { %990 = vmatprep.subr.mxu0 %v1920_v27  ;;  %1071 = vmatprep.subr.mxu1 %v1949_v39 }
 0x13e   : >> { %991 = vmatpush1.msra.mxu0 %v1918_v26  ;;  %1072 = vmatpush1.msra.mxu1 %v1947_v38 }
 0x13f   : >> { %992 = vmatprep.subr.mxu0 %v1916_v25  ;;  %1073 = vmatprep.subr.mxu1 %v1945_v37 }
 0x140   : >> { %904 = vperm.xlu0 %1527, %v742_v48   ;;  %993 = vmatpush1.msra.mxu0 %v1914_v24 }
 0x141   : >> { %1074 = vmatpush1.msra.mxu1 %v1943_v36  ;;  %994 = vmatprep.subr.mxu0 %v1912_v23 }
 0x142   : >> { %1075 = vmatprep.subr.mxu1 %v1932_v33  ;;  %995 = vmatpush1.msra.mxu0 %v1910_v22 }
 0x143   : >> { %1028 = vmatprep.mubr.f32.mxu0 %v1653_v2  ;;  %1076 = vmatpush1.msra.mxu1 %v1930_v32 }
 0x144   : >> { %1445 = vmatmul.mubr.msk.f32.vlgmr.msra.gmra.mxu0 %vm560_vm2, %v2015_v0  ;;  %1077 = vmatprep.subr.mxu1 %v1928_v31 }
 0x145   : >> { %1078 = vmatpush1.msra.mxu1 %v1926_v30  ;;  %1111 = vmatprep.mubr.f32.mxu1 %v1653_v2 }
 0x146   : >> { %1528 = vset.pattern.permute.xlu1 %v1654_v35 }
 0x1b7   : >> { %v824_v40 = vpop.permute.xlu0 %823 }
 0x1bb   : >> { %v905_v41 = vpop.permute.xlu0 %904 }
 0x1fa   : >> { %v816_v42 = vpop.f32.mrf.mxu0  ;;  %v897_v43 = vpop.f32.mrf.mxu1 }
 0x1fb   : >> { %v826_v45 = vmul.f32 %v824_v40, %v816_v42  ;;  %v907_v46 = vmul.f32 %v905_v41, %v897_v43  ;;  %v741_v42 = vld [vmem:[#allocation4] sm:$0x3] }
 0x1fc   : >> { %v818_v47 = vpop.f32.mrf.mxu0  ;;  %v899_v49 = vpop.f32.mrf.mxu1 }
 0x1fd   : >> { %v909_v50 = vadd.f32 %v907_v46, %v826_v45  ;;  %v827_v51 = vmul.f32 %v824_v40, %v818_v47  ;;  %v908_v52 = vmul.f32 %v905_v41, %v899_v49 }
 0x1ff   : >> { %v926_v54 = vadd.f32 %v1443_v44, %v909_v50  ;;  %v910_v55 = vadd.f32 %v908_v52, %v827_v51  ;;  %v745_v52 = vld [vmem:[#allocation8] sm:$0x3] }
 0x201   : >> { %1529 = vtanh.f32 %v926_v54  ;;  %v927_v56 = vadd.f32 %v923_v53, %v910_v55  ;;  %v1444_v62 = vmul.f32 -1.442695, %v926_v54  ;;  %v963_v53 = vsub.f32 1.0, %v745_v52 }
 0x203   : >> { %v935_v57 = vadd.f32 1.0, %v927_v56  ;;  %1531 = vpow2.f32 %v1444_v62 }
 0x205   : >> { %v936_v58 = vmul.f32 0.5, %v935_v57  ;;  %v1030_v57 = vpop.f32.mrf.mxu0 }
 0x207   : >> { %v937_v59 = vmax.f32 %v936_v58, 0.0 }
 0x209   : >> { %v2041_v60 = vmin.f32 %v937_v59, 1.0  ;;  %v1032_v59 = vpop.f32.mrf.mxu0 }
 0x20b   : >> { %1216 = vst.msk [vmem:[#allocation5] sm:$0x3] %vm485_vm1, %v2041_v60 }
 0x20e   : >> { %v1530_v61 = vpop.eup %1529 }
 0x20f   : >> { %940 = vrot.lane.b32.xlu1 %v1530_v61, %s1655_s16 }
 0x210   : >> { %v1532_v48 = vpop.eup %1531 }
 0x211   : >> { %v931_v63 = vadd.f32 1.0, %v1532_v48 }
 0x213   : >> { %1533 = vrcp.f32 %v931_v63 }
 0x220   : >> { %v1534_v2 = vpop.eup %1533 }
 0x221   : >> { %v945_v43 = vmul.f32 %v1534_v2, %v741_v42 }
 0x281   : >> { %v941_v21 = vpop.permute.xlu1 %940 }
 0x282   : >> { %v943_v35 = vmul.f32 %v1534_v2, %v941_v21 }
 0x284   : >> { %947 = vrot.lane.b32.xlu1 %v943_v35, %s1656_s11  ;;  %v944_v47 = vmul.f32 %v943_v35, %v905_v41 }
 0x2f6   : >> { %v948_v44 = vpop.permute.xlu1 %947 }
 0x2f7   : >> { %v950_v45 = vadd.f32 %v948_v44, %v945_v43  ;;  %v1135_v44 = vrot.slane %v1858_v1, %v514_v20 }
 0x2f9   : >> { %v951_v46 = vmul.f32 %v950_v45, %v824_v40  ;;  %v1162_v40 = vsub.f32 1.0, %v2041_v60 }
 0x2fb   : >> { %953 = vrot.lane.b32.xlu0 %v951_v46, %s1657_s12  ;;  %v1197_v41 = vmul.f32 %v1162_v40, %v963_v53 }
 0x36d   : >> { %v954_v49 = vpop.permute.xlu0 %953 }
 0x36e   : >> { %v2048_v50 = vadd.f32 %v954_v49, %v944_v47 }
 0x370   : >> { %1535 = vtanh.f32 %v2048_v50 }
 0x37d   : >> { %v1536_v51 = vpop.eup %1535 }
 0x37e   : >> { %959 = vrot.lane.b32.xlu1 %v1536_v51, %s1657_s12 }
 0x382   : >> { %1037 = vperm.xlu1 %1528, %v963_v53  }
 0x3f0   : >> { %v960_v54 = vpop.permute.xlu1 %959 }
 0x3f1   : >> { %v962_v55 = vmul.f32 %v1534_v2, %v960_v54  ;;  %v1131_v2 = vrot.slane %v1858_v1, %v510_v19 }
 0x3f3   : >> { %1043 = vrot.lane.b32.xlu0 %v962_v55, %s1655_s16 }
 0x3f7   : >> { %1120 = vperm.xlu0 %1527, %v2041_v60  }
 0x3fb   : >> { %1165 = vperm.xlu0 %1527, %v1162_v40  }
 0x3fd   : >> { %v1038_v58 = vpop.permute.xlu1 %1037 }
 0x3fe   : >> { %v1040_v61 = vmul.f32 %v1038_v58, %v1030_v57  ;;  %v1041_v35 = vmul.f32 %v1038_v58, %v1032_v59 }
 0x3ff   : >> { %1158 = vperm.xlu0 %1527, %v745_v52  }
 0x403   : >> { %1200 = vperm.xlu0 %1527, %v1197_v41  }
 0x465   : >> { %v1044_v56 = vpop.permute.xlu0 %1043 }
 0x466   : >> { %1210 = vst.msk [vmem:[#allocation3] sm:$0x3] %vm482_vm0, %v1044_v56  ;;  %1446 = vmatmul.mubr.msk.f32.vlgmr.msra.gmra.mxu1 %vm560_vm2, %v1044_v56 }
 0x472   : >> { %v1121_v62 = vpop.permute.xlu0 %1120 }
 0x526   : >> { %v1113_v48 = vpop.f32.mrf.mxu1 }
 0x527   : >> { %v1123_v63 = vmul.f32 %v1121_v62, %v1113_v48 }
 0x528   : >> { %v1115_v21 = vpop.f32.mrf.mxu1 }
 0x529   : >> { %v1125_v42 = vadd.f32 %v1123_v63, %v1040_v61  ;;  %v1124_v43 = vmul.f32 %v1121_v62, %v1115_v21  ;;  %v744_v63 = vld [vmem:[#allocation7] sm:$0x3]  ;;  %v1166_v21 = vpop.permute.xlu0 %1165 }
 0x52b   : >> { %v1138_v45 = vadd.f32 %v1131_v2, %v1125_v42  ;;  %v1126_v46 = vadd.f32 %v1124_v43, %v1041_v35  ;;  %v1168_v43 = vmul.f32 %v1166_v21, %v744_v63 }
 0x52d   : >> { %1537 = vtanh.f32 %v1138_v45  ;;  %v1139_v47 = vadd.f32 %v1135_v44, %v1126_v46  ;;  %v1447_v41 = vmul.f32 -1.442695, %v1138_v45  ;;  %v1189_v45 = vmul.f32 %v963_v53, %v2041_v60 }
 0x52f   : >> { %v1147_v49 = vadd.f32 1.0, %v1139_v47  ;;  %1539 = vpow2.f32 %v1447_v41 }
 0x531   : >> { %v1148_v51 = vmul.f32 0.5, %v1147_v49  ;;  %v1190_v49 = vadd.f32 %v1189_v45, %v745_v52 }
 0x533   : >> { %v1149_v54 = vmax.f32 %v1148_v51, 0.0  ;;  %v1159_v51 = vpop.permute.xlu0 %1158 }
 0x535   : >> { %v1150_v55 = vmin.f32 %v1149_v54, 1.0 }
 0x537   : >> { %1227 = vst.msk [vmem:[#allocation8] sm:$0x3] %vm485_vm1, %v1150_v55 }
 0x53a   : >> { %v1538_v40 = vpop.eup %1537 }
 0x53b   : >> { %1152 = vrot.lane.b32.xlu1 %v1538_v40, %s1655_s16 }
 0x53c   : >> { %v1540_v56 = vpop.eup %1539 }
 0x53d   : >> { %v1143_v57 = vadd.f32 1.0, %v1540_v56 }
 0x53f   : >> { %1541 = vrcp.f32 %v1143_v57 }
 0x54c   : >> { %v1542_v59 = vpop.eup %1541 }
 0x54d   : >> { %v1169_v2 = vmul.f32 %v1542_v59, %v744_v63 }
 0x5ad   : >> { %v1153_v61 = vpop.permute.xlu1 %1152 }
 0x5ae   : >> { %v1155_v48 = vmul.f32 %v1542_v59, %v1153_v61 }
 0x5b0   : >> { %1171 = vrot.lane.b32.xlu1 %v1155_v48, %s1656_s11  ;;  %v1161_v54 = vmul.f32 %v1159_v51, %v1155_v48 }
 0x622   : >> { %v1172_v35 = vpop.permute.xlu1 %1171 }
 0x623   : >> { %v1174_v42 = vadd.f32 %v1172_v35, %v1169_v2 }
 0x625   : >> { %v1175_v44 = vmul.f32 %v1174_v42, %v1121_v62 }
 0x627   : >> { %v1176_v46 = vadd.f32 %v1175_v44, %v1168_v43 }
 0x629   : >> { %v1177_v47 = vmul.f32 %v1176_v46, %v1038_v58  ;;  %v1201_v58 = vpop.permute.xlu0 %1200 }
 0x62a   : >> { %v1203_v60 = vmul.f32 %v1201_v58, %v2015_v0 }
 0x62b   : >> { %1179 = vrot.lane.b32.xlu1 %v1177_v47, %s1657_s12 }
 0x62f   : >> { %1193 = vperm.xlu1 %1528, %v1190_v49  }
 0x633   : >> { %1230 = vperm.xlu1 %1528, %v1150_v55  }
 0x637   : >> { %1212 = vrot.lane.b32.xlu1 %v2048_v50, %s1656_s11 }
 0x69d   : >> { %v1180_v40 = vpop.permute.xlu1 %1179 }
 0x69e   : >> { %v1182_v41 = vadd.f32 %v1180_v40, %v1161_v54 }
 0x6a0   : >> { %1543 = vtanh.f32 %v1182_v41  ;;  %1223 = vrot.lane.b32.xlu1 %v1182_v41, %s1656_s11 }
 0x6aa   : >> { %v1194_v62 = vpop.permute.xlu1 %1193 }
 0x6ad   : >> { %v1544_v56 = vpop.eup %1543 }
 0x6ae   : >> { %v1231_v57 = vpop.permute.xlu1 %1230  ;;  %1185 = vrot.lane.b32.xlu0 %v1544_v56, %s1657_s12 }
 0x6b2   : >> { %v1213_v52 = vpop.permute.xlu1 %1212  ;;  %1205 = vrot.lane.b32.xlu0 %v1203_v60, %s1655_s16 }
 0x6b3   : >> { %1215 = vst.msk [vmem:[#allocation4] sm:$0x3] %vm482_vm0, %v1213_v52 }
 0x712   : >> { %v1224_v50 = vpop.permute.xlu1 %1223 }
 0x713   : >> { %1226 = vst.msk [vmem:[#allocation7] sm:$0x3] %vm482_vm0, %v1224_v50 }
 0x720   : >> { %v1186_v53 = vpop.permute.xlu0 %1185 }
 0x721   : >> { %v1188_v55 = vmul.f32 %v1542_v59, %v1186_v53 }
 0x723   : >> { %v1196_v61 = vmul.f32 %v1194_v62, %v1188_v55 }
 0x724   : >> { %v1206_v48 = vpop.permute.xlu0 %1205 }
 0x725   : >> { %v1208_v63 = vadd.f32 %v1206_v48, %v1196_v61 }
 0x727   : >> { %1218 = vrot.lane.b32.xlu0 %v1208_v63, %s1655_s16  ;;  %v1233_v2 = vmul.f32 %v1231_v57, %v1208_v63 }
 0x72b   : >> { %1235 = vrot.lane.b32.xlu0 %v1233_v2, %s1655_s16 }
 0x799   : >> { %v1219_v0 = vpop.permute.xlu0 %1218 }
 0x79a   : >> { %1221 = vst.msk [vmem:[#allocation6] sm:$0x3] %vm482_vm0, %v1219_v0 }
 0x79d   : >> { %v1236_v21 = vpop.permute.xlu0 %1235 }
 0x79e   : >> { %1239 = vst.msk [vmem:[%s1238_s22] sm:$0x3] %vm482_vm0, %v1236_v21 }
 0x79f   : > { %738 = sbr.rel (!%p736_p8) target bundleno = 305 (0x131), region = 132 }
 0x7a4 PF: > { %p21_p3 = scmp.ge.s32.totalorder %s1725_s10, 4   ;;  %s2117_s27 = smov %s1635_s28 }
 0x7a5   : > { %s2118_s28 = smov %s1639_s29  ;;  %s2119_s29 = smov %s1735_s13 }
 0x7a6   : > { %s2120_s30 = smov %s1725_s10  ;;  %23 = sbr.rel (!%p21_p3) target bundleno = 5 (0x5), region = 143 }
 0x7ab   :  { %1261 = vsyncpa [#allocation10], 1 }
 0x7ac   :  { %1263 = vsyncpa [#allocation10 + $0x1], 1 }
 0x7ad   :  { %1264 = vsyncpa [#allocation12], 1 }
 0x7ae   :  { %1266 = vsyncpa [#allocation12 + $0x1], 1 }

// kernel: sequential_module_forward.12
= control target key start
LH: loop header
LB: loop body
LE: loop exit
PB: predicated region body
PF: predicated region fallthrough
CT: control target
= control target key end

     0   :  { %s3493_s25 = smov 0   ;;  %s3932_s0 = inlined_call_operand.vmem [shape: f32[2,2,8,32], index: 0, kind: input, shape index: {}]   ;;  %s3933_s1 = inlined_call_operand.vmem [shape: f32[8,4], index: 1, kind: input, shape index: {}]   ;;  %s3934_s2 = inlined_call_operand.vmem [shape: f32[8,4], index: 2, kind: input, shape index: {}]   ;;  %s3935_s3 = inlined_call_operand.vmem [shape: f32[2,1,32], index: 3, kind: input, shape index: {}]   ;;  %s3936_s4 = inlined_call_operand.vmem [shape: f32[2,32,96], index: 4, kind: input, shape index: {}]   ;;  %s3937_s5 = inlined_call_operand.vmem [shape: f32[2,1,96], index: 5, kind: input, shape index: {}]   ;;  %s3938_s6 = inlined_call_operand.vmem [shape: f32[2,32,32], index: 6, kind: input, shape index: {}]   ;;  %s3939_s7 = inlined_call_operand.vmem [shape: f32[2,1,32], index: 7, kind: input, shape index: {}]   ;;  %s3940_s8 = inlined_call_operand.vmem [shape: f32[2,1,32], index: 8, kind: input, shape index: {}]   ;;  %s3941_s9 = inlined_call_operand.vmem [shape: f32[2,32,128], index: 9, kind: input, shape index: {}]   ;;  %s3942_s10 = inlined_call_operand.vmem [shape: f32[2,1,128], index: 10, kind: input, shape index: {}]   ;;  %s3943_s11 = inlined_call_operand.vmem [shape: f32[2,128,32], index: 11, kind: input, shape index: {}]   ;;  %s3944_s12 = inlined_call_operand.vmem [shape: f32[2,1,32], index: 12, kind: input, shape index: {}]   ;;  %s3945_s13 = inlined_call_operand.vmem [shape: f32[2,2,8,32], index: 13, kind: output, shape index: {}]  }
   0x1 LB: > { %s3020_s26 = sadd.s32 4294967295, %s3389_s25   ;;  %p3024_p0 = scmp.ge.s32.totalorder %s3389_s25, 1  ;;  %s3389_s25 = sphi %s3493_s25, %s23_s25  }
   0x2   : > { %p475_p1 = scmp.lt.s32.totalorder %s3389_s25, 3 }
   0x4   : > { %p476_p2 = pnand %p3024_p0, %p475_p1 }
   0x5   : > { %p557_p3 = scmp.lt.s32.totalorder (!%p476_p2), %s3020_s26, 1  ;;  %s3391_s20 = smov (!%p476_p2), 36  }
   0x6   : > { %479 = sbr.rel (%p476_p2) target bundleno = 3904 (0xf40), region = 72  ;;  %s3392_s23 = smov (!%p476_p2), 4  }
   0x7   : > { %s3393_s24 = smov (!%p476_p2), 32   ;;  %s3394_s19 = smov (!%p476_p2), 124  }
   0x8   : > { %s3398_s21 = smov (!%p476_p2), 100   ;;  %s3399_s22 = smov (!%p476_p2), 44  }
   0x9   : > { %s3402_s28 = smov (!%p476_p2), 8   ;;  %s3403_s29 = smov (!%p476_p2), 64  }
   0xa   : > { %s3405_s16 = smov (!%p476_p2), 92  }
   0xb   : > { %s3947_s26 = smov (!%p557_p3, %s3020_s26), 1  ;;  %vm609_vm0 = vcmask 261120   ;;  %v3525_v10 = vld [vmem:[%s3933_s1] sm:$0xff]  ;;  %v3396_v50 = vmov 0.0   ;;  %vm3397_vm1 = vmmov 0   ;;  %vm833_vm2 = vcmask 64512  }
   0xc   : > { %s3075_s27 = sshll.u32 %s3947_s26, 4  ;;  %s3516_s14 = sshll.u32 %s3947_s26, 5  ;;  %780 = vrot.lane.b32.xlu1 %v3525_v10, %s3391_s20  ;;  %v3531_v11 = vld [vmem:[%s3934_s2] sm:$0xff]  ;;  %3170 = vmatprep.subr.mxu0 %v3396_v50  ;;  %vm772_vm3 = vcmask 31744   ;;  %vm2522_vm4 = vcmask 130048   ;;  %vm2525_vm5 = vcmask 195584  }
   0xd   : > { %s3509_s30 = scalar_lea.vmem %s3932_s0, %s3075_s27  ;;  %s569_s17 = scalar_lea.vmem %s3936_s4, %s3516_s14  ;;  %3172 = vmatprep.mubr.msk.f32.mxu0 %vm3397_vm1, %v3396_v50 }
   0xe   : > { %v605_v0 = vld [vmem:[%s3509_s30] sm:$0xff]  ;;  %v606_v1 = vld [vmem:[%s3509_s30 + $0x8] sm:$0xff]  ;;  %v637_v6 = vld [vmem:[%s569_s17 + $0x18] sm:$0xff]  ;;  %s564_s15 = scalar_lea.vmem %s3935_s3, %s3947_s26  ;;  %s572_s18 = scalar_lea.vmem %s3937_s5, %s3947_s26 }
   0xf   : > { %v607_v2 = vmul.f32 %v605_v0, %v605_v0  ;;  %v608_v3 = vmul.f32 %v606_v1, %v606_v1  ;;  %v636_v7 = vld [vmem:[%s569_s17 + $0x10] sm:$0xff]  ;;  %3149 = vmatprep.subr.mxu1 %v637_v6  ;;  %v635_v8 = vld [vmem:[%s569_s17 + $0x8] sm:$0xff]  ;;  %v634_v9 = vld [vmem:[%s569_s17] sm:$0xff]  ;;  %s3406_s17 = smov 120  }
  0x10   : > { %3150 = vmatpush3.msra.mxu1 %v637_v6  ;;  %800 = vrot.lane.b32.xlu1 %v3531_v11, %s3391_s20  ;;  %v3037_v19 = vld [vmem:[%s564_s15] ss:$0 sm:$0xff]  ;;  %s3395_s20 = smov 96   ;;  %s3404_s15 = smov 88  }
  0x11   : > { %v610_v4 = vsel %vm609_vm0, %v607_v2, 0.0  ;;  %v613_v5 = vsel %vm609_vm0, %v608_v3, 0.0  ;;  %3151 = vmatprep.subr.mxu1 %v636_v7  ;;  %v3038_v26 = vld [vmem:[%s572_s18] ss:$0 sm:$0xff]  ;;  %s3407_s18 = smov 52  }
  0x12   : > { %611 = vadd.xlane.f32.xlu0 %v610_v4  ;;  %3152 = vmatpush3.msra.mxu1 %v636_v7 }
  0x13   : > { %3153 = vmatprep.subr.mxu1 %v635_v8 }
  0x14   : > { %3154 = vmatpush3.msra.mxu1 %v635_v8  ;;  %775 = vrot.lane.b32.xlu1 %v3531_v11, %s3393_s24 }
  0x15   : > { %3155 = vmatprep.subr.mxu1 %v634_v9 }
  0x16   : > { %614 = vadd.xlane.f32.xlu0 %v613_v5  ;;  %3156 = vmatpush3.msra.mxu1 %v634_v9 }
  0x17   : > { %3160 = vmatprep.subr.mxu1 %v3396_v50 }
  0x18   : > { %795 = vrot.lane.b32.xlu1 %v3525_v10, %s3393_s24  ;;  %s3400_s24 = smov 12  }
  0x1c   : > { %731 = vrot.lane.b32.xlu1 %v3525_v10, %s3392_s23 }
  0x2c   : > { %749 = vrot.lane.b32.xlu0 %v3531_v11, %s3392_s23 }
  0x7e   : > { %v781_v25 = vpop.permute.xlu1 %780 }
  0x82   : > { %v801_v30 = vpop.permute.xlu1 %800 }
  0x86   : > { %v776_v36 = vpop.permute.xlu1 %775 }
  0x8a   : > { %v796_v39 = vpop.permute.xlu1 %795 }
  0x8e   : > { %v732_v41 = vpop.permute.xlu1 %731 }
  0x9b   : > { %v612_v12 = vpop.xlane.xlu0 %611 }
  0x9c   : > { %v617_v13 = vmul.f32 0.03125, %v612_v12 }
  0x9e   : > { %v619_v14 = vadd.f32 0.0001, %v617_v13 }
  0x9f   : > { %v615_v15 = vpop.xlane.xlu0 %614 }
  0xa0   : > { %3337 = vrsqrt.f32 %v619_v14  ;;  %v618_v16 = vmul.f32 0.03125, %v615_v15 }
  0xa2   : > { %v620_v17 = vadd.f32 0.0001, %v618_v16 }
  0xa3   : > { %v750_v33 = vpop.permute.xlu0 %749 }
  0xa4   : > { %3339 = vrsqrt.f32 %v620_v17 }
  0xad   : > { %v3338_v18 = vpop.eup %3337 }
  0xae   : > { %v623_v20 = vmul.f32 %v3338_v18, %v605_v0 }
  0xb0   : > { %v632_v21 = vmul.f32 %v3037_v19, %v623_v20 }
  0xb1   : > { %v3340_v22 = vpop.eup %3339 }
  0xb2   : > { %v624_v23 = vmul.f32 %v3340_v22, %v606_v1  ;;  %3157 = vmatprep.mubr.msk.f32.mxu1 %vm609_vm0, %v632_v21 }
  0xb4   : > { %v633_v24 = vmul.f32 %v3037_v19, %v624_v23 }
  0xb6   : > { %3158 = vmatmul.mubr.msk.f32.vlgmr.msra.gmra.mxu1 %vm609_vm0, %v633_v24 }
  0xb7   : > { %3162 = vmatprep.mubr.msk.f32.mxu1 %vm3397_vm1, %v3396_v50 }
 0x176   : > { %v3159_v27 = vpop.f32.mrf.mxu1 }
 0x177   : > { %v3550_v28 = vadd.f32 %v3159_v27, %v3038_v26 }
 0x178   : > { %v717_v29 = vpop.f32.mrf.mxu1 }
 0x179   : > { %v784_v31 = vmul.f32 %v781_v25, %v3550_v28  ;;  %v3553_v32 = vadd.f32 %v3038_v26, %v717_v29  ;;  %v753_v35 = vmul.f32 %v750_v33, %v3550_v28  ;;  %v804_v40 = vmul.f32 %v801_v30, %v3550_v28 }
 0x17a   : > { %v779_v47 = vmul.f32 %v776_v36, %v3550_v28  ;;  %v735_v52 = vmul.f32 %v732_v41, %v3550_v28  ;;  %v799_v53 = vmul.f32 %v796_v39, %v3550_v28  ;;  %v747_v61 = vmul.f32 %v3525_v10, %v3550_v28 }
 0x17b   : > { %789 = vrot.lane.b32.xlu0 %v784_v31, %s3394_s19  ;;  %v783_v34 = vmul.f32 %v781_v25, %v3553_v32  ;;  %v803_v37 = vmul.f32 %v801_v30, %v3553_v32  ;;  %v752_v38 = vmul.f32 %v750_v33, %v3553_v32  ;;  %v734_v42 = vmul.f32 %v732_v41, %v3553_v32 }
 0x17c   : > { %v778_v43 = vmul.f32 %v776_v36, %v3553_v32  ;;  %v798_v56 = vmul.f32 %v796_v39, %v3553_v32  ;;  %v746_v58 = vmul.f32 %v3525_v10, %v3553_v32  ;;  %v728_v4 = vmul.f32 %v3531_v11, %v3553_v32 }
 0x17d   : > { %787 = vrot.lane.b32.xlu1 %v783_v34, %s3394_s19  ;;  %v729_v9 = vmul.f32 %v3531_v11, %v3550_v28 }
 0x17f   : > { %758 = vrot.lane.b32.xlu0 %v753_v35, %s3394_s19 }
 0x181   : > { %807 = vrot.lane.b32.xlu1 %v803_v37, %s3394_s19 }
 0x185   : > { %756 = vrot.lane.b32.xlu1 %v752_v38, %s3394_s19 }
 0x189   : > { %809 = vrot.lane.b32.xlu1 %v804_v40, %s3394_s19 }
 0x18d   : > { %738 = vrot.lane.b32.xlu1 %v734_v42, %s3394_s19 }
 0x1ed   : > { %v790_v46 = vpop.permute.xlu0 %789 }
 0x1ee   : > { %v794_v49 = vsub.f32 %v779_v47, %v790_v46 }
 0x1ef   : > { %v788_v44 = vpop.permute.xlu1 %787 }
 0x1f0   : > { %v793_v45 = vsub.f32 %v778_v43, %v788_v44 }
 0x1f1   : > { %v759_v60 = vpop.permute.xlu0 %758 }
 0x1f2   : > { %817 = vrot.lane.b32.xlu1 %v793_v45, %s3395_s20  ;;  %v763_v62 = vadd.f32 %v759_v60, %v747_v61 }
 0x1f3   : > { %v808_v48 = vpop.permute.xlu1 %807 }
 0x1f4   : > { %v813_v57 = vadd.f32 %v808_v48, %v798_v56 }
 0x1f6   : > { %819 = vrot.lane.b32.xlu1 %v794_v49, %s3395_s20  ;;  %s3408_s20 = smov 20  }
 0x1f7   : > { %v757_v51 = vpop.permute.xlu1 %756 }
 0x1f8   : > { %v762_v59 = vadd.f32 %v757_v51, %v746_v58 }
 0x1fa   : > { %740 = vrot.lane.b32.xlu1 %v735_v52, %s3394_s19 }
 0x1fb   : > { %v810_v54 = vpop.permute.xlu1 %809 }
 0x1fc   : > { %v814_v55 = vadd.f32 %v810_v54, %v799_v53 }
 0x1fe   : > { %827 = vrot.lane.b32.xlu0 %v814_v55, %s3398_s21  ;;  %1227 = vrot.lane.b32.xlu1 %v3525_v10, %s3399_s22 }
 0x1ff   : > { %v739_v63 = vpop.permute.xlu1 %738 }
 0x200   : > { %v744_v6 = vsub.f32 %v728_v4, %v739_v63 }
 0x202   : > { %825 = vrot.lane.b32.xlu0 %v813_v57, %s3398_s21  ;;  %s3409_s21 = smov 48  }
 0x206   : > { %766 = vrot.lane.b32.xlu0 %v762_v59, %s3392_s23 }
 0x20a   : > { %768 = vrot.lane.b32.xlu0 %v763_v62, %s3392_s23  ;;  %s3401_s23 = smov 40  }
 0x20e   : > { %1247 = vrot.lane.b32.xlu0 %v3531_v11, %s3399_s22  ;;  %s3410_s22 = smov 16  }
 0x212   : > { %1169 = vrot.lane.b32.xlu0 %v3525_v10, %s3400_s24 }
 0x216   : > { %1189 = vrot.lane.b32.xlu0 %v3531_v11, %s3400_s24  ;;  %s3411_s24 = smov 56  }
 0x264   : > { %v818_v0 = vpop.permute.xlu1 %817 }
 0x268   : > { %v820_v2 = vpop.permute.xlu1 %819 }
 0x26c   : > { %v741_v7 = vpop.permute.xlu1 %740 }
 0x26d   : > { %v745_v14 = vsub.f32 %v729_v9, %v741_v7 }
 0x270   : > { %v828_v1 = vpop.permute.xlu0 %827  ;;  %v1228_v25 = vpop.permute.xlu1 %1227 }
 0x271   : > { %v832_v13 = vsel %vm772_vm3, %v820_v2, %v828_v1  ;;  %v1230_v26 = vmul.f32 %v1228_v25, %v3553_v32  ;;  %v1231_v31 = vmul.f32 %v1228_v25, %v3550_v28 }
 0x274   : > { %v826_v3 = vpop.permute.xlu0 %825 }
 0x275   : > { %v831_v5 = vsel %vm772_vm3, %v818_v0, %v826_v3 }
 0x276   : > { %3161 = vmatpush3.xpose.msk.msra.mxu1 %vm833_vm2, %v831_v5 }
 0x277   : > { %3165 = vmatprep.subr.mxu1 %v3396_v50 }
 0x278   : > { %v767_v8 = vpop.permute.xlu0 %766 }
 0x279   : > { %v773_v12 = vsel %vm772_vm3, %v744_v6, %v767_v8 }
 0x27a   : > { %3163 = vmatmul.mubr.msk.f32.vlgmr.msra.gmra.mxu1 %vm833_vm2, %v773_v12 }
 0x27b   : > { %3166 = vmatpush3.xpose.msk.msra.mxu1 %vm833_vm2, %v832_v13  ;;  %3167 = vmatprep.mubr.msk.f32.mxu1 %vm3397_vm1, %v3396_v50 }
 0x27c   : > { %v769_v15 = vpop.permute.xlu0 %768  ;;  %3175 = vmatprep.subr.mxu1 %v3396_v50 }
 0x27d   : > { %v774_v16 = vsel %vm772_vm3, %v745_v14, %v769_v15 }
 0x27e   : > { %3168 = vmatmul.mubr.msk.f32.vlgmr.msra.gmra.mxu1 %vm833_vm2, %v774_v16 }
 0x27f   : > { %3177 = vmatprep.mubr.msk.f32.mxu1 %vm3397_vm1, %v3396_v50 }
 0x280   : > { %v1248_v27 = vpop.permute.xlu0 %1247 }
 0x281   : > { %v1250_v29 = vmul.f32 %v1248_v27, %v3553_v32  ;;  %v1251_v33 = vmul.f32 %v1248_v27, %v3550_v28 }
 0x284   : > { %v1170_v30 = vpop.permute.xlu0 %1169 }
 0x285   : > { %v1172_v35 = vmul.f32 %v1170_v30, %v3553_v32  ;;  %v1173_v37 = vmul.f32 %v1170_v30, %v3550_v28 }
 0x288   : > { %v1190_v34 = vpop.permute.xlu0 %1189 }
 0x289   : > { %v1192_v36 = vmul.f32 %v1190_v34, %v3553_v32  ;;  %v1193_v38 = vmul.f32 %v1190_v34, %v3550_v28 }
 0x33a   : > { %v906_v17 = vpop.f32.mrf.mxu1 }
 0x33b   : > { %v3608_v18 = vmul.f32 0.35355338, %v906_v17 }
 0x33c   : > { %v3164_v19 = vpop.f32.mrf.mxu1 }
 0x33d   : > { %v988_v20 = vsel %vm833_vm2, %v3608_v18, -inf }
 0x33e   : > { %989 = vmax.xlane.f32.xlu1 %v988_v20  ;;  %v982_v21 = vpop.f32.mrf.mxu1 }
 0x33f   : > { %v3612_v22 = vmul.f32 0.35355338, %v982_v21 }
 0x340   : > { %v3169_v23 = vpop.f32.mrf.mxu1 }
 0x341   : > { %v991_v24 = vsel %vm833_vm2, %v3612_v22, -inf }
 0x342   : > { %992 = vmax.xlane.f32.xlu0 %v991_v24 }
 0x34f   : > { %1222 = vrot.lane.b32.xlu1 %v3531_v11, %s3401_s23 }
 0x353   : > { %1234 = vrot.lane.b32.xlu1 %v1230_v26, %s3394_s19 }
 0x357   : > { %1254 = vrot.lane.b32.xlu1 %v1250_v29, %s3394_s19 }
 0x358   : > { %1242 = vrot.lane.b32.xlu0 %v3525_v10, %s3401_s23 }
 0x35b   : > { %1164 = vrot.lane.b32.xlu1 %v3531_v11, %s3402_s28 }
 0x35c   : > { %1184 = vrot.lane.b32.xlu0 %v3525_v10, %s3402_s28 }
 0x35f   : > { %1236 = vrot.lane.b32.xlu1 %v1231_v31, %s3394_s19 }
 0x360   : > { %1256 = vrot.lane.b32.xlu0 %v1251_v33, %s3394_s19 }
 0x363   : > { %1176 = vrot.lane.b32.xlu1 %v1172_v35, %s3394_s19 }
 0x364   : > { %1196 = vrot.lane.b32.xlu0 %v1192_v36, %s3394_s19 }
 0x367   : > { %1178 = vrot.lane.b32.xlu1 %v1173_v37, %s3394_s19 }
 0x368   : > { %1198 = vrot.lane.b32.xlu0 %v1193_v38, %s3394_s19 }
 0x36b   : > { %1088 = vrot.lane.b32.xlu1 %v3550_v28, %s3403_s29 }
 0x36c   : > { %1011 = vrot.lane.b32.xlu0 %v3553_v32, %s3403_s29  ;;  %s3412_s29 = smov 80  }
 0x3c7   : > { %v990_v39 = vpop.xlane.xlu1 %989 }
 0x3c8   : > { %v994_v6 = vsub.f32 %v3608_v18, %v990_v39 }
 0x3ca   : > { %v996_v7 = vmul.f32 1.442695, %v994_v6 }
 0x3cb   : > { %v1223_v40 = vpop.permute.xlu1 %1222  ;;  %v993_v41 = vpop.xlane.xlu0 %992 }
 0x3cc   : > { %v1225_v42 = vmul.f32 %v1223_v40, %v3553_v32  ;;  %v1226_v56 = vmul.f32 %v1223_v40, %v3550_v28  ;;  %v995_v3 = vsub.f32 %v3612_v22, %v993_v41 }
 0x3ce   : > { %v998_v5 = vmul.f32 1.442695, %v995_v3 }
 0x3cf   : > { %v1235_v43 = vpop.permute.xlu1 %1234  ;;  %v1243_v44 = vpop.permute.xlu0 %1242 }
 0x3d0   : > { %v1240_v45 = vsub.f32 %v1225_v42, %v1235_v43  ;;  %v1245_v46 = vmul.f32 %v1243_v44, %v3553_v32  ;;  %v1246_v51 = vmul.f32 %v1243_v44, %v3550_v28  ;;  %3341 = vpow2.f32 %v998_v5 }
 0x3d1   : > { %3343 = vpow2.f32 %v996_v7 }
 0x3d2   : > { %1264 = vrot.lane.b32.xlu1 %v1240_v45, %s3404_s15 }
 0x3d3   : > { %v1255_v47 = vpop.permute.xlu1 %1254  ;;  %v1185_v48 = vpop.permute.xlu0 %1184 }
 0x3d4   : > { %v1260_v49 = vadd.f32 %v1255_v47, %v1245_v46  ;;  %v1187_v55 = vmul.f32 %v1185_v48, %v3553_v32  ;;  %v1188_v14 = vmul.f32 %v1185_v48, %v3550_v28 }
 0x3d6   : > { %1272 = vrot.lane.b32.xlu0 %v1260_v49, %s3405_s16 }
 0x3d7   : > { %v1165_v52 = vpop.permute.xlu1 %1164  ;;  %v1257_v53 = vpop.permute.xlu0 %1256 }
 0x3d8   : > { %v1261_v54 = vadd.f32 %v1257_v53, %v1246_v51  ;;  %v1167_v61 = vmul.f32 %v1165_v52, %v3553_v32  ;;  %v1168_v16 = vmul.f32 %v1165_v52, %v3550_v28 }
 0x3da   : > { %1274 = vrot.lane.b32.xlu0 %v1261_v54, %s3405_s16  ;;  %s3414_s16 = smov 116  }
 0x3db   : > { %v1237_v57 = vpop.permute.xlu1 %1236  ;;  %v1197_v58 = vpop.permute.xlu0 %1196 }
 0x3dc   : > { %v1241_v59 = vsub.f32 %v1226_v56, %v1237_v57  ;;  %v1202_v60 = vadd.f32 %v1197_v58, %v1187_v55 }
 0x3dd   : > { %v3342_v8 = vpop.eup %3341 }
 0x3de   : > { %1266 = vrot.lane.b32.xlu1 %v1241_v59, %s3404_s15  ;;  %1214 = vrot.lane.b32.xlu0 %v1202_v60, %s3394_s19  ;;  %v1003_v9 = vsel %vm833_vm2, %v3342_v8, 0.0  ;;  %v3344_v12 = vpop.eup %3343  ;;  %s3413_s15 = smov 84  }
 0x3df   : > { %v1177_v62 = vpop.permute.xlu1 %1176  ;;  %v1199_v63 = vpop.permute.xlu0 %1198  ;;  %v1000_v13 = vsel %vm833_vm2, %v3344_v12, 0.0 }
 0x3e0   : > { %v1182_v0 = vsub.f32 %v1167_v61, %v1177_v62  ;;  %v1203_v15 = vadd.f32 %v1199_v63, %v1188_v14 }
 0x3e2   : > { %1206 = vrot.lane.b32.xlu1 %v1182_v0, %s3406_s17 }
 0x3e3   : > { %v1179_v1 = vpop.permute.xlu1 %1178  ;;  %v1012_v2 = vpop.permute.xlu0 %1011 }
 0x3e4   : > { %3171 = vmatpush3.msra.mxu0 %v1012_v2  ;;  %v1183_v17 = vsub.f32 %v1168_v16, %v1179_v1 }
 0x3e5   : > { %3180 = vmatprep.subr.mxu0 %v3396_v50 }
 0x3e7   : > { %v1089_v4 = vpop.permute.xlu1 %1088 }
 0x3e8   : > { %3176 = vmatpush3.msra.mxu1 %v1089_v4 }
 0x3e9   : > { %3185 = vmatprep.subr.mxu1 %v3396_v50 }
 0x3fd   : > { %1004 = vadd.xlane.f32.xlu0 %v1003_v9 }
 0x406   : > { %1001 = vadd.xlane.f32.xlu1 %v1000_v13 }
 0x413   : > { %1216 = vrot.lane.b32.xlu0 %v1203_v15, %s3394_s19 }
 0x417   : > { %1208 = vrot.lane.b32.xlu1 %v1183_v17, %s3406_s17  ;;  %1691 = vrot.lane.b32.xlu0 %v3531_v11, %s3407_s18  ;;  %s3415_s17 = smov 112  }
 0x41b   : > { %1613 = vrot.lane.b32.xlu0 %v3525_v10, %s3408_s20  ;;  %1671 = vrot.lane.b32.xlu1 %v3525_v10, %s3407_s18  ;;  %s3416_s18 = smov 60  }
 0x41f   : > { %1633 = vrot.lane.b32.xlu0 %v3531_v11, %s3408_s20  ;;  %s3417_s20 = smov 28  }
 0x444   : > { %v1265_v20 = vpop.permute.xlu1 %1264 }
 0x448   : > { %v1273_v18 = vpop.permute.xlu0 %1272 }
 0x449   : > { %v1278_v36 = vsel %vm772_vm3, %v1265_v20, %v1273_v18 }
 0x44c   : > { %v1275_v19 = vpop.permute.xlu0 %1274 }
 0x450   : > { %v1215_v21 = vpop.permute.xlu0 %1214  ;;  %v1267_v22 = vpop.permute.xlu1 %1266 }
 0x451   : > { %v1279_v29 = vsel %vm772_vm3, %v1267_v22, %v1275_v19 }
 0x454   : > { %v1207_v24 = vpop.permute.xlu1 %1206 }
 0x455   : > { %v1220_v37 = vsel %vm772_vm3, %v1207_v24, %v1215_v21 }
 0x486   : > { %v1005_v23 = vpop.xlane.xlu0 %1004 }
 0x487   : > { %3345 = vrcp.f32 %v1005_v23 }
 0x48a   : > { %v1217_v31 = vpop.permute.xlu0 %1216 }
 0x48e   : > { %v1692_v51 = vpop.permute.xlu0 %1691 }
 0x48f   : > { %v1002_v25 = vpop.xlane.xlu1 %1001  ;;  %v1695_v54 = vmul.f32 %v1692_v51, %v3550_v28  ;;  %v1694_v57 = vmul.f32 %v1692_v51, %v3553_v32 }
 0x490   : > { %3347 = vrcp.f32 %v1002_v25 }
 0x492   : > { %v1614_v52 = vpop.permute.xlu0 %1613 }
 0x493   : > { %v1209_v30 = vpop.permute.xlu1 %1208  ;;  %v1616_v61 = vmul.f32 %v1614_v52, %v3553_v32  ;;  %v1617_v62 = vmul.f32 %v1614_v52, %v3550_v28 }
 0x494   : > { %v3346_v26 = vpop.eup %3345  ;;  %v1221_v33 = vsel %vm772_vm3, %v1209_v30, %v1217_v31 }
 0x495   : > { %v1009_v27 = vmul.f32 %v3346_v26, %v3342_v8 }
 0x496   : > { %v1634_v56 = vpop.permute.xlu0 %1633 }
 0x497   : > { %3178 = vmatmul.mubr.msk.f32.vlgmr.msra.gmra.mxu1 %vm833_vm2, %v1009_v27  ;;  %v1672_v53 = vpop.permute.xlu1 %1671  ;;  %v1636_v58 = vmul.f32 %v1634_v56, %v3553_v32  ;;  %v1637_v59 = vmul.f32 %v1634_v56, %v3550_v28 }
 0x498   : > { %3186 = vmatpush3.xpose.msk.msra.mxu1 %vm833_vm2, %v1279_v29  ;;  %3187 = vmatprep.mubr.msk.f32.mxu1 %vm3397_vm1, %v3396_v50  ;;  %v1674_v55 = vmul.f32 %v1672_v53, %v3553_v32  ;;  %v1675_v60 = vmul.f32 %v1672_v53, %v3550_v28 }
 0x499   : > { %3195 = vmatprep.subr.mxu1 %v3396_v50 }
 0x49b   : > { %3188 = vmatmul.mubr.msk.f32.vlgmr.msra.gmra.mxu1 %vm833_vm2, %v1221_v33 }
 0x49c   : > { %3197 = vmatprep.mubr.msk.f32.mxu1 %vm3397_vm1, %v3396_v50 }
 0x49d   : > { %v3348_v34 = vpop.eup %3347 }
 0x49e   : > { %v1008_v35 = vmul.f32 %v3348_v34, %v3344_v12 }
 0x4a0   : > { %3173 = vmatmul.mubr.msk.f32.vlgmr.msra.gmra.mxu0 %vm833_vm2, %v1008_v35 }
 0x4a1   : > { %3181 = vmatpush3.xpose.msk.msra.mxu0 %vm833_vm2, %v1278_v36  ;;  %3182 = vmatprep.mubr.msk.f32.mxu0 %vm3397_vm1, %v3396_v50 }
 0x4a2   : > { %3190 = vmatprep.subr.mxu0 %v3396_v50 }
 0x4a4   : > { %3183 = vmatmul.mubr.msk.f32.vlgmr.msra.gmra.mxu0 %vm833_vm2, %v1220_v37 }
 0x4a5   : > { %3192 = vmatprep.mubr.msk.f32.mxu0 %vm3397_vm1, %v3396_v50 }
 0x557   : > { %v3682_v38 = vpop.f32.mrf.mxu1 }
 0x559   : > { %v3179_v39 = vpop.f32.mrf.mxu1 }
 0x55b   : > { %v1428_v40 = vpop.f32.mrf.mxu1 }
 0x55c   : > { %v3684_v41 = vmul.f32 0.35355338, %v1428_v40 }
 0x55d   : > { %v3189_v42 = vpop.f32.mrf.mxu1 }
 0x55e   : > { %v1437_v43 = vsel %vm833_vm2, %v3684_v41, -inf }
 0x55f   : > { %1438 = vmax.xlane.f32.xlu0 %v1437_v43 }
 0x560   : > { %v3688_v44 = vpop.f32.mrf.mxu0 }
 0x562   : > { %v3174_v45 = vpop.f32.mrf.mxu0 }
 0x564   : > { %v1352_v46 = vpop.f32.mrf.mxu0 }
 0x565   : > { %v3690_v47 = vmul.f32 0.35355338, %v1352_v46 }
 0x566   : > { %v3184_v48 = vpop.f32.mrf.mxu0 }
 0x567   : > { %v1434_v49 = vsel %vm833_vm2, %v3690_v47, -inf }
 0x568   : > { %1435 = vmax.xlane.f32.xlu1 %v1434_v49 }
 0x575   : > { %1686 = vrot.lane.b32.xlu0 %v3525_v10, %s3409_s21 }
 0x579   : > { %1666 = vrot.lane.b32.xlu1 %v3531_v11, %s3409_s21  ;;  %1628 = vrot.lane.b32.xlu0 %v3525_v10, %s3410_s22 }
 0x57d   : > { %1678 = vrot.lane.b32.xlu1 %v1674_v55, %s3394_s19  ;;  %1700 = vrot.lane.b32.xlu0 %v1695_v54, %s3394_s19 }
 0x581   : > { %1698 = vrot.lane.b32.xlu1 %v1694_v57, %s3394_s19  ;;  %1640 = vrot.lane.b32.xlu0 %v1636_v58, %s3394_s19 }
 0x585   : > { %1608 = vrot.lane.b32.xlu1 %v3531_v11, %s3410_s22  ;;  %1642 = vrot.lane.b32.xlu0 %v1637_v59, %s3394_s19 }
 0x589   : > { %1680 = vrot.lane.b32.xlu1 %v1675_v60, %s3394_s19  ;;  %1456 = vrot.lane.b32.xlu0 %v3553_v32, %s3411_s24 }
 0x58d   : > { %1620 = vrot.lane.b32.xlu1 %v1616_v61, %s3394_s19 }
 0x591   : > { %1622 = vrot.lane.b32.xlu1 %v1617_v62, %s3394_s19 }
 0x595   : > { %1532 = vrot.lane.b32.xlu1 %v3550_v28, %s3411_s24 }
 0x5e8   : > { %v1439_v63 = vpop.xlane.xlu0 %1438 }
 0x5e9   : > { %v1441_v29 = vsub.f32 %v3684_v41, %v1439_v63 }
 0x5eb   : > { %v1444_v31 = vmul.f32 1.442695, %v1441_v29 }
 0x5ec   : > { %v1687_v0 = vpop.permute.xlu0 %1686 }
 0x5ed   : > { %v1689_v9 = vmul.f32 %v1687_v0, %v3553_v32  ;;  %v1690_v15 = vmul.f32 %v1687_v0, %v3550_v28  ;;  %3349 = vpow2.f32 %v1444_v31 }
 0x5f0   : > { %v1629_v1 = vpop.permute.xlu0 %1628 }
 0x5f1   : > { %v1436_v2 = vpop.xlane.xlu1 %1435  ;;  %v1631_v19 = vmul.f32 %v1629_v1, %v3553_v32  ;;  %v1632_v40 = vmul.f32 %v1629_v1, %v3550_v28 }
 0x5f2   : > { %v1440_v33 = vsub.f32 %v3690_v47, %v1436_v2 }
 0x5f4   : > { %v1701_v3 = vpop.permute.xlu0 %1700  ;;  %v1442_v34 = vmul.f32 1.442695, %v1440_v33 }
 0x5f5   : > { %v1667_v4 = vpop.permute.xlu1 %1666  ;;  %v1705_v18 = vadd.f32 %v1701_v3, %v1690_v15 }
 0x5f6   : > { %v1669_v5 = vmul.f32 %v1667_v4, %v3553_v32  ;;  %v1670_v20 = vmul.f32 %v1667_v4, %v3550_v28  ;;  %3351 = vpow2.f32 %v1442_v34 }
 0x5f8   : > { %v1641_v6 = vpop.permute.xlu0 %1640 }
 0x5f9   : > { %v1679_v7 = vpop.permute.xlu1 %1678  ;;  %v1646_v22 = vadd.f32 %v1641_v6, %v1631_v19 }
 0x5fa   : > { %v1684_v8 = vsub.f32 %v1669_v5, %v1679_v7  ;;  %v3350_v35 = vpop.eup %3349 }
 0x5fb   : > { %v1449_v36 = vsel %vm833_vm2, %v3350_v35, 0.0 }
 0x5fc   : > { %1708 = vrot.lane.b32.xlu1 %v1684_v8, %s3412_s29  ;;  %v1643_v12 = vpop.permute.xlu0 %1642 }
 0x5fd   : > { %v1699_v13 = vpop.permute.xlu1 %1698  ;;  %v1647_v41 = vadd.f32 %v1643_v12, %v1632_v40 }
 0x5fe   : > { %v1704_v14 = vadd.f32 %v1699_v13, %v1689_v9 }
 0x600   : > { %1716 = vrot.lane.b32.xlu0 %v1704_v14, %s3413_s15  ;;  %v1457_v16 = vpop.permute.xlu0 %1456 }
 0x601   : > { %v1609_v17 = vpop.permute.xlu1 %1608  ;;  %3191 = vmatpush3.msra.mxu0 %v1457_v16 }
 0x602   : > { %3200 = vmatprep.subr.mxu0 %v3396_v50  ;;  %v1611_v24 = vmul.f32 %v1609_v17, %v3553_v32  ;;  %v1612_v42 = vmul.f32 %v1609_v17, %v3550_v28 }
 0x603   : > { %v3352_v37 = vpop.eup %3351 }
 0x604   : > { %1718 = vrot.lane.b32.xlu0 %v1705_v18, %s3413_s15  ;;  %v1446_v39 = vsel %vm833_vm2, %v3352_v37, 0.0  ;;  %s3422_s15 = smov 104  }
 0x605   : > { %v1681_v21 = vpop.permute.xlu1 %1680 }
 0x606   : > { %v1685_v23 = vsub.f32 %v1670_v20, %v1681_v21 }
 0x608   : > { %1710 = vrot.lane.b32.xlu1 %v1685_v23, %s3412_s29  ;;  %1658 = vrot.lane.b32.xlu0 %v1646_v22, %s3414_s16  ;;  %s3418_s29 = smov 24  }
 0x609   : > { %v1621_v25 = vpop.permute.xlu1 %1620 }
 0x60a   : > { %v1626_v26 = vsub.f32 %v1611_v24, %v1621_v25 }
 0x60c   : > { %1650 = vrot.lane.b32.xlu1 %v1626_v26, %s3415_s17 }
 0x60d   : > { %v1623_v27 = vpop.permute.xlu1 %1622 }
 0x60e   : > { %v1627_v43 = vsub.f32 %v1612_v42, %v1623_v27 }
 0x611   : > { %v1533_v30 = vpop.permute.xlu1 %1532 }
 0x612   : > { %3196 = vmatpush3.msra.mxu1 %v1533_v30 }
 0x613   : > { %3205 = vmatprep.subr.mxu1 %v3396_v50 }
 0x627   : > { %1450 = vadd.xlane.f32.xlu0 %v1449_v36 }
 0x630   : > { %1447 = vadd.xlane.f32.xlu1 %v1446_v39 }
 0x63d   : > { %1660 = vrot.lane.b32.xlu0 %v1647_v41, %s3414_s16 }
 0x641   : > { %1652 = vrot.lane.b32.xlu1 %v1627_v43, %s3415_s17  ;;  %2135 = vrot.lane.b32.xlu0 %v3531_v11, %s3416_s18  ;;  %s591_s17 = scalar_lea.vmem %s3942_s10, %s3947_s26 }
 0x645   : > { %2057 = vrot.lane.b32.xlu0 %v3525_v10, %s3417_s20  ;;  %2115 = vrot.lane.b32.xlu1 %v3525_v10, %s3416_s18  ;;  %s580_s18 = scalar_lea.vmem %s3939_s7, %s3947_s26 }
 0x649   : > { %2077 = vrot.lane.b32.xlu0 %v3531_v11, %s3417_s20 }
 0x66e   : > { %v1709_v47 = vpop.permute.xlu1 %1708 }
 0x672   : > { %v1717_v45 = vpop.permute.xlu0 %1716 }
 0x673   : > { %v1722_v62 = vsel %vm772_vm3, %v1709_v47, %v1717_v45 }
 0x676   : > { %v1719_v46 = vpop.permute.xlu0 %1718 }
 0x67a   : > { %v1659_v48 = vpop.permute.xlu0 %1658  ;;  %v1711_v49 = vpop.permute.xlu1 %1710 }
 0x67b   : > { %v1723_v56 = vsel %vm772_vm3, %v1711_v49, %v1719_v46 }
 0x67e   : > { %v1651_v52 = vpop.permute.xlu1 %1650 }
 0x67f   : > { %v1664_v63 = vsel %vm772_vm3, %v1651_v52, %v1659_v48 }
 0x6b0   : > { %v1451_v51 = vpop.xlane.xlu0 %1450 }
 0x6b1   : > { %3353 = vrcp.f32 %v1451_v51 }
 0x6b4   : > { %v1661_v58 = vpop.permute.xlu0 %1660 }
 0x6b8   : > { %v2136_v14 = vpop.permute.xlu0 %2135 }
 0x6b9   : > { %v1448_v53 = vpop.xlane.xlu1 %1447  ;;  %v2139_v17 = vmul.f32 %v2136_v14, %v3550_v28  ;;  %v2138_v20 = vmul.f32 %v2136_v14, %v3553_v32 }
 0x6ba   : > { %3355 = vrcp.f32 %v1448_v53 }
 0x6bc   : > { %v2058_v15 = vpop.permute.xlu0 %2057 }
 0x6bd   : > { %v1653_v57 = vpop.permute.xlu1 %1652  ;;  %v2060_v23 = vmul.f32 %v2058_v15, %v3553_v32  ;;  %v2061_v24 = vmul.f32 %v2058_v15, %v3550_v28 }
 0x6be   : > { %v3354_v54 = vpop.eup %3353  ;;  %v1665_v59 = vsel %vm772_vm3, %v1653_v57, %v1661_v58 }
 0x6bf   : > { %v1455_v55 = vmul.f32 %v3354_v54, %v3350_v35 }
 0x6c0   : > { %v2078_v19 = vpop.permute.xlu0 %2077 }
 0x6c1   : > { %3198 = vmatmul.mubr.msk.f32.vlgmr.msra.gmra.mxu1 %vm833_vm2, %v1455_v55  ;;  %v2116_v16 = vpop.permute.xlu1 %2115  ;;  %v2080_v21 = vmul.f32 %v2078_v19, %v3553_v32  ;;  %v2081_v22 = vmul.f32 %v2078_v19, %v3550_v28 }
 0x6c2   : > { %3206 = vmatpush3.xpose.msk.msra.mxu1 %vm833_vm2, %v1723_v56  ;;  %3207 = vmatprep.mubr.msk.f32.mxu1 %vm3397_vm1, %v3396_v50  ;;  %v2118_v18 = vmul.f32 %v2116_v16, %v3553_v32 }
 0x6c3   : > { %3215 = vmatprep.subr.mxu1 %v3396_v50 }
 0x6c5   : > { %3208 = vmatmul.mubr.msk.f32.vlgmr.msra.gmra.mxu1 %vm833_vm2, %v1665_v59 }
 0x6c6   : > { %3217 = vmatprep.mubr.msk.f32.mxu1 %vm3397_vm1, %v3396_v50 }
 0x6c7   : > { %v3356_v60 = vpop.eup %3355 }
 0x6c8   : > { %v1454_v61 = vmul.f32 %v3356_v60, %v3352_v37 }
 0x6ca   : > { %3193 = vmatmul.mubr.msk.f32.vlgmr.msra.gmra.mxu0 %vm833_vm2, %v1454_v61 }
 0x6cb   : > { %3201 = vmatpush3.xpose.msk.msra.mxu0 %vm833_vm2, %v1722_v62  ;;  %3202 = vmatprep.mubr.msk.f32.mxu0 %vm3397_vm1, %v3396_v50 }
 0x6cc   : > { %3210 = vmatprep.subr.mxu0 %v3396_v50 }
 0x6ce   : > { %3203 = vmatmul.mubr.msk.f32.vlgmr.msra.gmra.mxu0 %vm833_vm2, %v1664_v63 }
 0x6cf   : > { %3212 = vmatprep.mubr.msk.f32.mxu0 %vm3397_vm1, %v3396_v50 }
 0x781   : > { %v3760_v0 = vpop.f32.mrf.mxu1 }
 0x783   : > { %v3199_v1 = vpop.f32.mrf.mxu1 }
 0x785   : > { %v1872_v2 = vpop.f32.mrf.mxu1 }
 0x786   : > { %v3762_v3 = vmul.f32 0.35355338, %v1872_v2 }
 0x787   : > { %v3209_v4 = vpop.f32.mrf.mxu1 }
 0x788   : > { %v1881_v5 = vsel %vm833_vm2, %v3762_v3, -inf }
 0x789   : > { %1882 = vmax.xlane.f32.xlu0 %v1881_v5 }
 0x78a   : > { %v3766_v6 = vpop.f32.mrf.mxu0 }
 0x78c   : > { %v3194_v7 = vpop.f32.mrf.mxu0 }
 0x78e   : > { %v1796_v8 = vpop.f32.mrf.mxu0 }
 0x78f   : > { %v3768_v9 = vmul.f32 0.35355338, %v1796_v8 }
 0x790   : > { %v3204_v12 = vpop.f32.mrf.mxu0 }
 0x791   : > { %v1878_v13 = vsel %vm833_vm2, %v3768_v9, -inf }
 0x792   : > { %1879 = vmax.xlane.f32.xlu1 %v1878_v13 }
 0x79f   : > { %2130 = vrot.lane.b32.xlu0 %v3525_v10, %s3411_s24 }
 0x7a3   : > { %2110 = vrot.lane.b32.xlu1 %v3531_v11, %s3411_s24  ;;  %2072 = vrot.lane.b32.xlu0 %v3525_v10, %s3418_s29  ;;  %v2119_v10 = vmul.f32 %v2116_v16, %v3550_v28  ;;  %s3419_s24 = smov 72  }
 0x7a7   : > { %2122 = vrot.lane.b32.xlu1 %v2118_v18, %s3394_s19  ;;  %2144 = vrot.lane.b32.xlu0 %v2139_v17, %s3394_s19 }
 0x7ab   : > { %2142 = vrot.lane.b32.xlu1 %v2138_v20, %s3394_s19  ;;  %2084 = vrot.lane.b32.xlu0 %v2080_v21, %s3394_s19 }
 0x7af   : > { %2052 = vrot.lane.b32.xlu1 %v3531_v11, %s3418_s29  ;;  %2086 = vrot.lane.b32.xlu0 %v2081_v22, %s3394_s19 }
 0x7b3   : > { %2124 = vrot.lane.b32.xlu1 %v2119_v10, %s3394_s19  ;;  %1900 = vrot.lane.b32.xlu0 %v3553_v32, %s3409_s21 }
 0x7b7   : > { %2064 = vrot.lane.b32.xlu1 %v2060_v23, %s3394_s19 }
 0x7bb   : > { %2066 = vrot.lane.b32.xlu1 %v2061_v24, %s3394_s19  ;;  %s3420_s19 = smov 76  }
 0x7bf   : > { %1976 = vrot.lane.b32.xlu1 %v3550_v28, %s3409_s21  ;;  %s3421_s21 = smov 108  }
 0x812   : > { %v1883_v11 = vpop.xlane.xlu0 %1882 }
 0x813   : > { %v1885_v56 = vsub.f32 %v3762_v3, %v1883_v11 }
 0x815   : > { %v1888_v58 = vmul.f32 1.442695, %v1885_v56 }
 0x816   : > { %v2131_v25 = vpop.permute.xlu0 %2130 }
 0x817   : > { %v2133_v36 = vmul.f32 %v2131_v25, %v3553_v32  ;;  %v2134_v41 = vmul.f32 %v2131_v25, %v3550_v28  ;;  %3357 = vpow2.f32 %v1888_v58 }
 0x81a   : > { %v2073_v26 = vpop.permute.xlu0 %2072 }
 0x81b   : > { %v1880_v27 = vpop.xlane.xlu1 %1879  ;;  %v2075_v46 = vmul.f32 %v2073_v26, %v3553_v32  ;;  %v2076_v2 = vmul.f32 %v2073_v26, %v3550_v28 }
 0x81c   : > { %v1884_v59 = vsub.f32 %v3768_v9, %v1880_v27 }
 0x81e   : > { %v2145_v29 = vpop.permute.xlu0 %2144  ;;  %v1886_v60 = vmul.f32 1.442695, %v1884_v59 }
 0x81f   : > { %v2111_v30 = vpop.permute.xlu1 %2110  ;;  %v2149_v45 = vadd.f32 %v2145_v29, %v2134_v41 }
 0x820   : > { %v2113_v31 = vmul.f32 %v2111_v30, %v3553_v32  ;;  %v2114_v47 = vmul.f32 %v2111_v30, %v3550_v28  ;;  %3359 = vpow2.f32 %v1886_v60 }
 0x822   : > { %v2085_v33 = vpop.permute.xlu0 %2084 }
 0x823   : > { %v2123_v34 = vpop.permute.xlu1 %2122  ;;  %v2090_v49 = vadd.f32 %v2085_v33, %v2075_v46 }
 0x824   : > { %v2128_v35 = vsub.f32 %v2113_v31, %v2123_v34  ;;  %v3358_v61 = vpop.eup %3357 }
 0x825   : > { %v1893_v62 = vsel %vm833_vm2, %v3358_v61, 0.0 }
 0x826   : > { %2152 = vrot.lane.b32.xlu1 %v2128_v35, %s3419_s24  ;;  %v2087_v37 = vpop.permute.xlu0 %2086 }
 0x827   : > { %v2143_v39 = vpop.permute.xlu1 %2142  ;;  %v2091_v3 = vadd.f32 %v2087_v37, %v2076_v2 }
 0x828   : > { %v2148_v40 = vadd.f32 %v2143_v39, %v2133_v36 }
 0x82a   : > { %2160 = vrot.lane.b32.xlu0 %v2148_v40, %s3420_s19  ;;  %v1901_v42 = vpop.permute.xlu0 %1900 }
 0x82b   : > { %v2053_v43 = vpop.permute.xlu1 %2052  ;;  %3211 = vmatpush3.msra.mxu0 %v1901_v42 }
 0x82c   : > { %3220 = vmatprep.subr.mxu0 %v3396_v50  ;;  %v2055_v52 = vmul.f32 %v2053_v43, %v3553_v32  ;;  %v2056_v4 = vmul.f32 %v2053_v43, %v3550_v28 }
 0x82d   : > { %v3360_v63 = vpop.eup %3359 }
 0x82e   : > { %2162 = vrot.lane.b32.xlu0 %v2149_v45, %s3420_s19  ;;  %v1890_v1 = vsel %vm833_vm2, %v3360_v63, 0.0  ;;  %s583_s19 = scalar_lea.vmem %s3940_s8, %s3947_s26 }
 0x82f   : > { %v2125_v48 = vpop.permute.xlu1 %2124 }
 0x830   : > { %v2129_v51 = vsub.f32 %v2114_v47, %v2125_v48 }
 0x832   : > { %2154 = vrot.lane.b32.xlu1 %v2129_v51, %s3419_s24  ;;  %2102 = vrot.lane.b32.xlu0 %v2090_v49, %s3421_s21  ;;  %s588_s24 = scalar_lea.vmem %s3941_s9, %s3516_s14 }
 0x833   : > { %v2065_v53 = vpop.permute.xlu1 %2064 }
 0x834   : > { %v2070_v54 = vsub.f32 %v2055_v52, %v2065_v53 }
 0x836   : > { %2094 = vrot.lane.b32.xlu1 %v2070_v54, %s3422_s15 }
 0x837   : > { %v2067_v55 = vpop.permute.xlu1 %2066 }
 0x838   : > { %v2071_v5 = vsub.f32 %v2056_v4, %v2067_v55 }
 0x83b   : > { %v1977_v57 = vpop.permute.xlu1 %1976 }
 0x83c   : > { %3216 = vmatpush3.msra.mxu1 %v1977_v57 }
 0x83d   : > { %3225 = vmatprep.subr.mxu1 %v3396_v50 }
 0x851   : > { %1894 = vadd.xlane.f32.xlu0 %v1893_v62 }
 0x85a   : > { %1891 = vadd.xlane.f32.xlu1 %v1890_v1 }
 0x867   : > { %2104 = vrot.lane.b32.xlu0 %v2091_v3, %s3421_s21  ;;  %s3079_s21 = sshll.u32 %s3947_s26, 7 }
 0x86b   : > { %2096 = vrot.lane.b32.xlu1 %v2071_v5, %s3422_s15 }
 0x898   : > { %v2153_v9 = vpop.permute.xlu1 %2152 }
 0x89c   : > { %v2161_v7 = vpop.permute.xlu0 %2160 }
 0x89d   : > { %v2166_v24 = vsel %vm772_vm3, %v2153_v9, %v2161_v7 }
 0x8a0   : > { %v2163_v8 = vpop.permute.xlu0 %2162 }
 0x8a4   : > { %v2103_v12 = vpop.permute.xlu0 %2102  ;;  %v2155_v13 = vpop.permute.xlu1 %2154 }
 0x8a5   : > { %v2167_v19 = vsel %vm772_vm3, %v2155_v13, %v2163_v8 }
 0x8a8   : > { %v2095_v15 = vpop.permute.xlu1 %2094 }
 0x8a9   : > { %v2108_v11 = vsel %vm772_vm3, %v2095_v15, %v2103_v12  ;;  %v3067_v15 = vld [vmem:[%s580_s18] ss:$0 sm:$0xff] }
 0x8da   : > { %v1895_v14 = vpop.xlane.xlu0 %1894 }
 0x8db   : > { %3361 = vrcp.f32 %v1895_v14 }
 0x8de   : > { %v2105_v21 = vpop.permute.xlu0 %2104 }
 0x8e3   : > { %v1892_v16 = vpop.xlane.xlu1 %1891 }
 0x8e4   : > { %3363 = vrcp.f32 %v1892_v16  ;;  %v3381_v16 = vld [vmem:[%s3509_s30 + $0x8] sm:$0xff] }
 0x8e7   : > { %v2097_v20 = vpop.permute.xlu1 %2096 }
 0x8e8   : > { %v3362_v17 = vpop.eup %3361  ;;  %v2109_v22 = vsel %vm772_vm3, %v2097_v20, %v2105_v21 }
 0x8e9   : > { %v1899_v18 = vmul.f32 %v3362_v17, %v3358_v61 }
 0x8eb   : > { %3218 = vmatmul.mubr.msk.f32.vlgmr.msra.gmra.mxu1 %vm833_vm2, %v1899_v18 }
 0x8ec   : > { %3226 = vmatpush3.xpose.msk.msra.mxu1 %vm833_vm2, %v2167_v19  ;;  %3227 = vmatprep.mubr.msk.f32.mxu1 %vm3397_vm1, %v3396_v50 }
 0x8ed   : > { %3235 = vmatprep.subr.mxu1 %v3396_v50 }
 0x8ef   : > { %3228 = vmatmul.mubr.msk.f32.vlgmr.msra.gmra.mxu1 %vm833_vm2, %v2109_v22 }
 0x8f0   : > { %3237 = vmatprep.mubr.msk.f32.mxu1 %vm3397_vm1, %v3396_v50 }
 0x8f1   : > { %v3364_v10 = vpop.eup %3363 }
 0x8f2   : > { %v1898_v23 = vmul.f32 %v3364_v10, %v3360_v63 }
 0x8f4   : > { %3213 = vmatmul.mubr.msk.f32.vlgmr.msra.gmra.mxu0 %vm833_vm2, %v1898_v23 }
 0x8f5   : > { %3221 = vmatpush3.xpose.msk.msra.mxu0 %vm833_vm2, %v2166_v24  ;;  %3222 = vmatprep.mubr.msk.f32.mxu0 %vm3397_vm1, %v3396_v50 }
 0x8f6   : > { %3230 = vmatprep.subr.mxu0 %v3396_v50 }
 0x8f8   : > { %3223 = vmatmul.mubr.msk.f32.vlgmr.msra.gmra.mxu0 %vm833_vm2, %v2108_v11  ;;  %v2652_v11 = vld [vmem:[%s588_s24 + $0x18] sm:$0xff] }
 0x8f9   : > { %3232 = vmatprep.mubr.msk.f32.mxu0 %vm3397_vm1, %v3396_v50 }
 0x9ab   : > { %v2048_v25 = vpop.f32.mrf.mxu1 }
 0x9ad   : > { %v3219_v26 = vpop.f32.mrf.mxu1 }
 0x9ae   : > { %v2650_v26 = vld [vmem:[%s588_s24 + $0x8] sm:$0xff] }
 0x9af   : > { %v2316_v27 = vpop.f32.mrf.mxu1 }
 0x9b0   : > { %v2321_v29 = vmul.f32 0.35355338, %v2316_v27  ;;  %v2649_v27 = vld [vmem:[%s588_s24] sm:$0xff] }
 0x9b1   : > { %v3229_v30 = vpop.f32.mrf.mxu1 }
 0x9b2   : > { %v2325_v31 = vsel %vm833_vm2, %v2321_v29, -inf }
 0x9b3   : > { %2326 = vmax.xlane.f32.xlu0 %v2325_v31 }
 0x9b4   : > { %v1972_v33 = vpop.f32.mrf.mxu0 }
 0x9b6   : > { %v3214_v34 = vpop.f32.mrf.mxu0 }
 0x9b8   : > { %v2240_v35 = vpop.f32.mrf.mxu0 }
 0x9b9   : > { %v2320_v36 = vmul.f32 0.35355338, %v2240_v35 }
 0x9ba   : > { %v3224_v37 = vpop.f32.mrf.mxu0 }
 0x9bb   : > { %v2322_v39 = vsel %vm833_vm2, %v2320_v36, -inf }
 0x9bc   : > { %2323 = vmax.xlane.f32.xlu1 %v2322_v39 }
 0xa3c   : > { %v2327_v40 = vpop.xlane.xlu0 %2326 }
 0xa3d   : > { %v2329_v41 = vsub.f32 %v2321_v29, %v2327_v40 }
 0xa3f   : > { %v2332_v42 = vmul.f32 1.442695, %v2329_v41  ;;  %v3068_v41 = vld [vmem:[%s583_s19] ss:$0 sm:$0xff] }
 0xa41   : > { %3365 = vpow2.f32 %v2332_v42 }
 0xa45   : > { %v2324_v50 = vpop.xlane.xlu1 %2323 }
 0xa46   : > { %v2328_v43 = vsub.f32 %v2320_v36, %v2324_v50 }
 0xa48   : > { %v2330_v45 = vmul.f32 1.442695, %v2328_v43 }
 0xa4a   : > { %3367 = vpow2.f32 %v2330_v45 }
 0xa4e   : > { %v3366_v46 = vpop.eup %3365 }
 0xa4f   : > { %v2337_v47 = vsel %vm833_vm2, %v3366_v46, 0.0 }
 0xa50   : > { %2338 = vadd.xlane.f32.xlu1 %v2337_v47 }
 0xa57   : > { %v3368_v48 = vpop.eup %3367 }
 0xa58   : > { %v2334_v49 = vsel %vm833_vm2, %v3368_v48, 0.0 }
 0xa59   : > { %2335 = vadd.xlane.f32.xlu0 %v2334_v49 }
 0xa61   : > { %2420 = vrot.lane.b32.xlu1 %v3550_v28, %s3401_s23 }
 0xa65   : > { %2498 = vrot.lane.b32.xlu1 %v3766_v6, %s3402_s28 }
 0xa69   : > { %2506 = vrot.lane.b32.xlu1 %v1972_v33, %s3410_s22 }
 0xa6f   : > { %2344 = vrot.lane.b32.xlu0 %v3553_v32, %s3401_s23 }
 0xa73   : > { %2500 = vrot.lane.b32.xlu0 %v3760_v0, %s3402_s28  ;;  %s3894_s28 = scalar_lea.vmem %s3943_s11, %s3079_s21 }
 0xa74   : > { %v2774_v43 = vld [vmem:[%s3894_s28 + $0x78] sm:$0xff]  ;;  %v2773_v45 = vld [vmem:[%s3894_s28 + $0x70] sm:$0xff]  ;;  %v2771_v47 = vld [vmem:[%s3894_s28 + $0x60] sm:$0xff] }
 0xa75   : > { %v2769_v49 = vld [vmem:[%s3894_s28 + $0x50] sm:$0xff] }
 0xa77   : > { %2508 = vrot.lane.b32.xlu0 %v2048_v25, %s3410_s22  ;;  %s577_s22 = scalar_lea.vmem %s3938_s6, %s3516_s14  ;;  %v2651_v25 = vld [vmem:[%s588_s24 + $0x10] sm:$0xff]  ;;  %s604_s14 = scalar_lea.vmem %s3945_s13, %s3075_s27 }
 0xa78   : > { %v2531_v0 = vld [vmem:[%s577_s22 + $0x18] sm:$0xff]  ;;  %v2530_v56 = vld [vmem:[%s577_s22 + $0x10] sm:$0xff]  ;;  %v2529_v57 = vld [vmem:[%s577_s22 + $0x8] sm:$0xff] }
 0xa79   : > { %v2528_v58 = vld [vmem:[%s577_s22] sm:$0xff] }
 0xad9   : > { %v2339_v51 = vpop.xlane.xlu1 %2338 }
 0xada   : > { %3369 = vrcp.f32 %v2339_v51  ;;  %v2768_v51 = vld [vmem:[%s3894_s28 + $0x48] sm:$0xff] }
 0xadd   : > { %v2421_v52 = vpop.permute.xlu1 %2420 }
 0xade   : > { %3236 = vmatpush3.msra.mxu1 %v2421_v52  ;;  %v2767_v52 = vld [vmem:[%s3894_s28 + $0x40] sm:$0xff] }
 0xadf   : > { %3240 = vmatprep.subr.mxu1 %v2531_v0 }
 0xae1   : > { %v2499_v1 = vpop.permute.xlu1 %2498 }
 0xae2   : > { %v2336_v53 = vpop.xlane.xlu0 %2335  ;;  %v2520_v4 = vsel %vm833_vm2, %v3688_v44, %v2499_v1 }
 0xae3   : > { %3371 = vrcp.f32 %v2336_v53  ;;  %v2766_v53 = vld [vmem:[%s3894_s28 + $0x38] sm:$0xff] }
 0xae5   : > { %v2507_v3 = vpop.permute.xlu1 %2506 }
 0xae6   : > { %v2345_v28 = vpop.permute.xlu0 %2344  ;;  %v2523_v7 = vsel %vm2522_vm4, %v2520_v4, %v2507_v3 }
 0xae7   : > { %v3370_v54 = vpop.eup %3369  ;;  %3231 = vmatpush3.msra.mxu0 %v2345_v28  ;;  %v2765_v28 = vld [vmem:[%s3894_s28 + $0x30] sm:$0xff] }
 0xae8   : > { %v2343_v6 = vmul.f32 %v3370_v54, %v3366_v46  ;;  %3262 = vmatprep.subr.mxu0 %v2774_v43  ;;  %v2772_v46 = vld [vmem:[%s3894_s28 + $0x68] sm:$0xff] }
 0xae9   : > { %v2764_v54 = vld [vmem:[%s3894_s28 + $0x28] sm:$0xff] }
 0xaea   : > { %3238 = vmatmul.mubr.msk.f32.vlgmr.msra.gmra.mxu1 %vm833_vm2, %v2343_v6  ;;  %v2501_v63 = vpop.permute.xlu0 %2500  ;;  %v2763_v6 = vld [vmem:[%s3894_s28 + $0x20] sm:$0xff] }
 0xaeb   : > { %3241 = vmatpush3.msra.mxu1 %v2531_v0  ;;  %v2521_v8 = vsel %vm833_vm2, %v3682_v38, %v2501_v63  ;;  %v3382_v38 = vld [vmem:[%s3509_s30] sm:$0xff]  ;;  %v2760_v0 = vld [vmem:[%s3894_s28 + $0x8] sm:$0xff] }
 0xaec   : > { %3242 = vmatprep.subr.mxu1 %v2530_v56 }
 0xaed   : > { %3243 = vmatpush3.msra.mxu1 %v2530_v56  ;;  %v2759_v56 = vld [vmem:[%s3894_s28] sm:$0xff] }
 0xaee   : > { %3244 = vmatprep.subr.mxu1 %v2529_v57  ;;  %v2509_v2 = vpop.permute.xlu0 %2508 }
 0xaef   : > { %3245 = vmatpush3.msra.mxu1 %v2529_v57  ;;  %v2524_v12 = vsel %vm2522_vm4, %v2521_v8, %v2509_v2  ;;  %v3069_v57 = vld [vmem:[%s591_s17] ss:$0 sm:$0xff] }
 0xaf0   : > { %v3372_v55 = vpop.eup %3371  ;;  %3246 = vmatprep.subr.mxu1 %v2528_v58 }
 0xaf1   : > { %v2342_v32 = vmul.f32 %v3372_v55, %v3368_v48  ;;  %3247 = vmatpush3.msra.mxu1 %v2528_v58  ;;  %v2770_v48 = vld [vmem:[%s3894_s28 + $0x58] sm:$0xff] }
 0xaf2   : > { %3251 = vmatprep.subr.mxu1 %v2652_v11  ;;  %v2762_v55 = vld [vmem:[%s3894_s28 + $0x18] sm:$0xff] }
 0xaf3   : > { %3233 = vmatmul.mubr.msk.f32.vlgmr.msra.gmra.mxu0 %vm833_vm2, %v2342_v32  ;;  %v2761_v32 = vld [vmem:[%s3894_s28 + $0x10] sm:$0xff] }
 0xaf4   : > { %3263 = vmatpush3.msra.mxu0 %v2774_v43 }
 0xaf5   : > { %3264 = vmatprep.subr.mxu0 %v2773_v45 }
 0xaf6   : > { %3265 = vmatpush3.msra.mxu0 %v2773_v45 }
 0xaf7   : > { %3266 = vmatprep.subr.mxu0 %v2772_v46 }
 0xaf8   : > { %3267 = vmatpush3.msra.mxu0 %v2772_v46 }
 0xaf9   : > { %3268 = vmatprep.subr.mxu0 %v2771_v47 }
 0xafa   : > { %3269 = vmatpush3.msra.mxu0 %v2771_v47 }
 0xafb   : > { %3270 = vmatprep.subr.mxu0 %v2770_v48 }
 0xafc   : > { %3271 = vmatpush3.msra.mxu0 %v2770_v48 }
 0xafd   : > { %3272 = vmatprep.subr.mxu0 %v2769_v49 }
 0xafe   : > { %3273 = vmatpush3.msra.mxu0 %v2769_v49 }
 0xaff   : > { %3274 = vmatprep.subr.mxu0 %v2768_v51 }
 0xb00   : > { %3275 = vmatpush3.msra.mxu0 %v2768_v51 }
 0xb01   : > { %3276 = vmatprep.subr.mxu0 %v2767_v52 }
 0xb02   : > { %3277 = vmatpush3.msra.mxu0 %v2767_v52 }
 0xb03   : > { %3278 = vmatprep.subr.mxu0 %v2766_v53 }
 0xb04   : > { %3279 = vmatpush3.msra.mxu0 %v2766_v53 }
 0xb05   : > { %3280 = vmatprep.subr.mxu0 %v2765_v28 }
 0xb06   : > { %3281 = vmatpush3.msra.mxu0 %v2765_v28 }
 0xb07   : > { %3282 = vmatprep.subr.mxu0 %v2764_v54 }
 0xb08   : > { %3283 = vmatpush3.msra.mxu0 %v2764_v54 }
 0xb09   : > { %3284 = vmatprep.subr.mxu0 %v2763_v6 }
 0xb0a   : > { %3285 = vmatpush3.msra.mxu0 %v2763_v6 }
 0xb0b   : > { %3286 = vmatprep.subr.mxu0 %v2762_v55 }
 0xb0c   : > { %3287 = vmatpush3.msra.mxu0 %v2762_v55 }
 0xb0d   : > { %3288 = vmatprep.subr.mxu0 %v2761_v32 }
 0xb0e   : > { %3289 = vmatpush3.msra.mxu0 %v2761_v32 }
 0xb0f   : > { %3290 = vmatprep.subr.mxu0 %v2760_v0 }
 0xb10   : > { %3291 = vmatpush3.msra.mxu0 %v2760_v0 }
 0xb11   : > { %3292 = vmatprep.subr.mxu0 %v2759_v56 }
 0xb12   : > { %3293 = vmatpush3.msra.mxu0 %v2759_v56 }
 0xbaa   : > { %v2492_v59 = vpop.f32.mrf.mxu1 }
 0xbab   : > { %2516 = vrot.lane.b32.xlu0 %v2492_v59, %s3418_s29 }
 0xbac   : > { %v3239_v60 = vpop.f32.mrf.mxu1 }
 0xbb3   : > { %v2416_v61 = vpop.f32.mrf.mxu0 }
 0xbb4   : > { %2514 = vrot.lane.b32.xlu1 %v2416_v61, %s3418_s29  ;;  %s599_s29 = scalar_lea.vmem %s3944_s12, %s3947_s26 }
 0xbb5   : > { %v3234_v62 = vpop.f32.mrf.mxu0 }
 0xc1d   : > { %v2517_v5 = vpop.permute.xlu0 %2516 }
 0xc1e   : > { %v2527_v14 = vsel %vm2525_vm5, %v2524_v12, %v2517_v5 }
 0xc26   : > { %v2515_v9 = vpop.permute.xlu1 %2514 }
 0xc27   : > { %v2526_v13 = vsel %vm2525_vm5, %v2523_v7, %v2515_v9 }
 0xc28   : > { %3248 = vmatprep.mubr.msk.f32.mxu1 %vm609_vm0, %v2526_v13 }
 0xc29   : > { %3249 = vmatmul.mubr.msk.f32.vlgmr.msra.gmra.mxu1 %vm609_vm0, %v2527_v14 }
 0xc2a   : > { %3252 = vmatpush3.msra.mxu1 %v2652_v11 }
 0xc2b   : > { %3253 = vmatprep.subr.mxu1 %v2651_v25 }
 0xc2c   : > { %3254 = vmatpush3.msra.mxu1 %v2651_v25 }
 0xc2d   : > { %3255 = vmatprep.subr.mxu1 %v2650_v26 }
 0xc2e   : > { %3256 = vmatpush3.msra.mxu1 %v2650_v26 }
 0xc2f   : > { %3257 = vmatprep.subr.mxu1 %v2649_v27 }
 0xc30   : > { %3258 = vmatpush3.msra.mxu1 %v2649_v27 }
 0xce9   : > { %v3250_v44 = vpop.f32.mrf.mxu1 }
 0xcea   : > { %v2614_v17 = vadd.f32 %v3381_v16, %v3250_v44 }
 0xceb   : > { %v2604_v18 = vpop.f32.mrf.mxu1 }
 0xcec   : > { %v3867_v19 = vadd.f32 %v3067_v15, %v2614_v17  ;;  %v2613_v20 = vadd.f32 %v3382_v38, %v2604_v18 }
 0xcee   : > { %v3870_v21 = vadd.f32 %v3067_v15, %v2613_v20  ;;  %v2625_v22 = vmul.f32 %v3867_v19, %v3867_v19  ;;  %v3072_v20 = vld [vmem:[%s599_s29] ss:$0 sm:$0xff] }
 0xcf0   : > { %v2629_v10 = vsel %vm609_vm0, %v2625_v22, 0.0  ;;  %v2624_v23 = vmul.f32 %v3870_v21, %v3870_v21 }
 0xcf1   : > { %2630 = vadd.xlane.f32.xlu0 %v2629_v10 }
 0xcf2   : > { %v2626_v24 = vsel %vm609_vm0, %v2624_v23, 0.0 }
 0xcf3   : > { %2627 = vadd.xlane.f32.xlu1 %v2626_v24 }
 0xd7a   : > { %v2631_v29 = vpop.xlane.xlu0 %2630 }
 0xd7b   : > { %v2633_v30 = vmul.f32 0.03125, %v2631_v29 }
 0xd7c   : > { %v2628_v31 = vpop.xlane.xlu1 %2627 }
 0xd7d   : > { %v2635_v33 = vadd.f32 0.0001, %v2633_v30  ;;  %v2632_v34 = vmul.f32 0.03125, %v2628_v31 }
 0xd7f   : > { %3373 = vrsqrt.f32 %v2635_v33  ;;  %v2634_v35 = vadd.f32 0.0001, %v2632_v34 }
 0xd81   : > { %3375 = vrsqrt.f32 %v2634_v35 }
 0xd8c   : > { %v3374_v36 = vpop.eup %3373 }
 0xd8d   : > { %v2639_v39 = vmul.f32 %v3374_v36, %v3867_v19 }
 0xd8e   : > { %v3376_v37 = vpop.eup %3375 }
 0xd8f   : > { %v2638_v40 = vmul.f32 %v3376_v37, %v3870_v21  ;;  %v2648_v50 = vmul.f32 %v3068_v41, %v2639_v39 }
 0xd91   : > { %v2647_v42 = vmul.f32 %v3068_v41, %v2638_v40 }
 0xd93   : > { %3259 = vmatprep.mubr.msk.f32.mxu1 %vm609_vm0, %v2647_v42 }
 0xd94   : > { %3260 = vmatmul.mubr.msk.f32.vlgmr.msra.gmra.mxu1 %vm609_vm0, %v2648_v50 }
 0xe54   : > { %v3261_v58 = vpop.f32.mrf.mxu1 }
 0xe55   : > { %v2738_v59 = vadd.f32 %v3261_v58, %v3069_v57 }
 0xe56   : > { %v2732_v60 = vpop.f32.mrf.mxu1 }
 0xe57   : > { %v2742_v61 = vmul.f32 %v2738_v59, %v2738_v59  ;;  %v2733_v62 = vadd.f32 %v3069_v57, %v2732_v60 }
 0xe59   : > { %v2744_v63 = vmul.f32 %v2742_v61, %v2738_v59  ;;  %v2741_v1 = vmul.f32 %v2733_v62, %v2733_v62 }
 0xe5b   : > { %v2746_v2 = vmul.f32 0.044715, %v2744_v63  ;;  %v2743_v3 = vmul.f32 %v2741_v1, %v2733_v62 }
 0xe5d   : > { %v2748_v4 = vadd.f32 %v2746_v2, %v2738_v59  ;;  %v2745_v5 = vmul.f32 0.044715, %v2743_v3 }
 0xe5f   : > { %v2750_v7 = vmul.f32 0.7978846, %v2748_v4  ;;  %v2747_v8 = vadd.f32 %v2745_v5, %v2733_v62 }
 0xe61   : > { %3377 = vtanh.f32 %v2750_v7  ;;  %v2749_v9 = vmul.f32 0.7978846, %v2747_v8 }
 0xe63   : > { %3379 = vtanh.f32 %v2749_v9 }
 0xe6e   : > { %v3378_v12 = vpop.eup %3377 }
 0xe6f   : > { %v2754_v13 = vadd.f32 1.0, %v3378_v12 }
 0xe70   : > { %v3380_v14 = vpop.eup %3379 }
 0xe71   : > { %v2753_v44 = vadd.f32 1.0, %v3380_v14  ;;  %v2756_v15 = vmul.f32 0.5, %v2754_v13 }
 0xe73   : > { %v2755_v16 = vmul.f32 0.5, %v2753_v44  ;;  %v2758_v18 = vmul.f32 %v2756_v15, %v2738_v59 }
 0xe75   : > { %v2757_v17 = vmul.f32 %v2755_v16, %v2733_v62 }
 0xe77   : > { %3294 = vmatprep.mubr.f32.mxu0 %v2757_v17 }
 0xe78   : > { %3295 = vmatmul.mubr.f32.vlgmr.msra.gmra.mxu0 %v2758_v18 }
 0xf38   : > { %v3296_v38 = vpop.f32.mrf.mxu0 }
 0xf39   : > { %v2851_v22 = vadd.f32 %v3296_v38, %v3867_v19 }
 0xf3a   : > { %v2841_v10 = vpop.f32.mrf.mxu0 }
 0xf3b   : > { %v2860_v23 = vadd.f32 %v3072_v20, %v2851_v22  ;;  %v2850_v24 = vadd.f32 %v2841_v10, %v3870_v21 }
 0xf3d   : > { %2862 = vst.msk [vmem:[%s604_s14 + $0x8] sm:$0xff] %vm609_vm0, %v2860_v23  ;;  %v2859_v11 = vadd.f32 %v3072_v20, %v2850_v24 }
 0xf3f   : > { %2861 = vst.msk [vmem:[%s604_s14] sm:$0xff] %vm609_vm0, %v2859_v11 }
 0xf40 PF: > { %s23_s25 = sadd.s32 1, %s3389_s25  }
 0xf41   : > { %p20_p4 = scmp.ge.s32.totalorder %s23_s25, 4  }
 0xf43   :  { %22 = sbr.rel (!%p20_p4) target bundleno = 1 (0x1), region = 132 }

</bundles_post_ra>
